<compile_context>
chip_gen: v7x
topology: tpu7x:2x2x1
jax: 0.10.0
libtpu: 0.0.40
codegen_flags: <defaults>
</compile_context>

<pallas_src>
from functools import partial

import jax
import jax.numpy as jnp
from jax.experimental import pallas as pl
from jax.experimental.pallas import tpu as pltpu


def _round_up(x, m):
    return ((x + m - 1) // m) * m


# ----------------------------------------------------------------------------
# Fused kernel (embedded input -> both LSTM layers -> MLP head)
# ----------------------------------------------------------------------------
def _make_fused_kernel(num_layers, T, BT, H):
    """Kernel factory; num_layers, T, BT, H are static Python ints."""
    H2, H8 = 2 * H, 8 * H

    def kernel(*refs):
        # ---- unpack refs ----------------------------------------------------
        x0_ref = refs[0]                                      # (T*BT, D0p) bf16
        layer_w = [refs[1 + 4 * l: 1 + 4 * (l + 1)] for l in range(num_layers)]
        base = 1 + 4 * num_layers
        fc1_w, fc1_b, fc2_w, fc2_b = refs[base: base + 4]
        o_ref = refs[base + 4]                                # (T*BT, OP) f32
        gxc_ref = refs[base + 5]                              # (T*BT, 8H) f32
        gxb_ref = refs[base + 6]                              # (T*BT, 8H) f32
        seq_refs = refs[base + 7: base + 7 + num_layers]      # (T*BT, 2H) f32

        # 'g'-gate lanes under the interleaved gate layout
        # [i_f i_b f_f f_b g_f g_b o_f o_b]  (each block H lanes).
        lane = jax.lax.broadcasted_iota(jnp.int32, (BT, H8), 1)
        is_g = jnp.logical_and(lane >= 4 * H, lane < 6 * H)

        layer_in = x0_ref
        for l in range(num_layers):
            wih_f, wih_b, whh, b = layer_w[l]
            seq = seq_refs[l]

            x_all = layer_in[...]
            if x_all.dtype != jnp.bfloat16:
                x_all = x_all.astype(jnp.bfloat16)

            # Input projection for ALL timesteps: two bf16 MXU passes per layer,
            # bias folded in once. Off the recurrence critical path.
            gxc_ref[...] = (
                jnp.dot(x_all, wih_f[...], preferred_element_type=jnp.float32)
                + b[...])
            gxb_ref[...] = jnp.dot(x_all, wih_b[...],
                                   preferred_element_type=jnp.float32)
            # Interleave the time-reversed backward pre-activations into the
            # forward slab (disjoint lane slots) so each recurrence step reads
            # a single contiguous row block.
            for t in range(T):
                tb = T - 1 - t
                gxc_ref[pl.ds(t * BT, BT), :] = (
                    gxc_ref[pl.ds(t * BT, BT), :]
                    + gxb_ref[pl.ds(tb * BT, BT), :])

            whh_v = whh[...]                                  # (2H, 8H) bf16, hoisted
            h = jnp.zeros((BT, H2), jnp.float32)              # [h_fw | h_bw]
            c = jnp.zeros((BT, H2), jnp.float32)              # [c_fw | c_bw]

            # Fully unrolled time loop; fw consumes t, bw consumes T-1-t
            # (matching PyTorch bidirectional semantics for full-length seqs).
            for t in range(T):
                tb = T - 1 - t
                # ONE block-diagonal recurrence matmul for both directions.
                g = (jnp.dot(h.astype(jnp.bfloat16), whh_v,
                             preferred_element_type=jnp.float32)
                     + gxc_ref[pl.ds(t * BT, BT), :])
                # sigmoid(x) = 0.5*(1 + tanh(x/2)); the /2 is pre-folded into
                # the packed i/f/o columns, so ONE tanh covers all 8H lanes.
                th = jnp.tanh(g)
                a = jnp.where(is_g, th, 0.5 * th + 0.5)
                # gate blocks: i=[0:2H), f=[2H:4H), g=[4H:6H), o=[6H:8H)
                c = a[:, 2 * H:4 * H] * c + a[:, 0:2 * H] * a[:, 4 * H:6 * H]
                h = a[:, 6 * H:8 * H] * jnp.tanh(c)
                seq[pl.ds(t * BT, BT), pl.ds(0, H)] = h[:, 0:H]
                seq[pl.ds(tb * BT, BT), pl.ds(H, H)] = h[:, H:H2]

            layer_in = seq
            # inter-layer dropout: identity at inference

        # Fused MLP head on the final (T*BT, 2H) slab; lane-dense padded output.
        feat = seq_refs[num_layers - 1][...].astype(jnp.bfloat16)
        hmid = (jnp.dot(feat, fc1_w[...], preferred_element_type=jnp.float32)
                + fc1_b[...])
        hmid = jnp.maximum(hmid, 0.0).astype(jnp.bfloat16)     # ReLU
        o_ref[...] = (
            jnp.dot(hmid, fc2_w[...], preferred_element_type=jnp.float32)
            + fc2_b[...])

    return kernel


# ----------------------------------------------------------------------------
# Parameter init (PyTorch layout) and one-time packing for the kernel
# ----------------------------------------------------------------------------
def _xavier_normal(key, shape):
    fan_out, fan_in = shape
    std = (2.0 / (fan_in + fan_out)) ** 0.5
    return std * jax.random.normal(key, shape, dtype=jnp.float32)


def init_handwriting_rnn_params(key, char_dim, hidden_dim, output_dim, num_layers=2):
    """Deterministic init: xavier-normal matrices, zero biases (PyTorch layout,
    separate bias_ih / bias_hh just like nn.LSTM)."""
    emb_dim = hidden_dim // 2
    keys = iter(jax.random.split(key, 3 + 4 * num_layers))
    params = {
        "emb": _xavier_normal(next(keys), (char_dim, emb_dim)),
        "fc1_w": _xavier_normal(next(keys), (hidden_dim, 2 * hidden_dim)),
        "fc1_b": jnp.zeros((hidden_dim,), jnp.float32),
        "fc2_w": _xavier_normal(next(keys), (output_dim, hidden_dim)),
        "fc2_b": jnp.zeros((output_dim,), jnp.float32),
        "lstm": [],
    }
    for layer in range(num_layers):
        in_dim = (emb_dim + output_dim) if layer == 0 else 2 * hidden_dim
        lp = {}
        for d in ("fw", "bw"):
            lp[f"w_ih_{d}"] = _xavier_normal(next(keys), (4 * hidden_dim, in_dim))
            lp[f"w_hh_{d}"] = _xavier_normal(next(keys), (4 * hidden_dim, hidden_dim))
            lp[f"b_ih_{d}"] = jnp.zeros((4 * hidden_dim,), jnp.float32)
            lp[f"b_hh_{d}"] = jnp.zeros((4 * hidden_dim,), jnp.float32)
        params["lstm"].append(lp)
    return params


# Pre-scale for the single-tanh gate trick: sigmoid(x) = 0.5 + 0.5*tanh(x/2),
# so i/f/o pre-activations are halved at pack time (g stays unscaled).
_GATE_SCALE = (0.5, 0.5, 1.0, 0.5)   # (i, f, g, o)


def _scatter_gate_cols(w_t, H, direction):
    """(rows, 4H) in PyTorch gate order (i,f,g,o) -> (rows, 8H) in the
    interleaved layout [i_f i_b f_f f_b g_f g_b o_f o_b], with the tanh-half
    pre-scale folded in.  Only this direction's column slots are populated."""
    rows = w_t.shape[0]
    out = jnp.zeros((rows, 8 * H), jnp.float32)
    off = 0 if direction == "fw" else H
    for gi, s in enumerate(_GATE_SCALE):
        out = out.at[:, 2 * gi * H + off: 2 * gi * H + off + H].set(
            s * w_t[:, gi * H:(gi + 1) * H].astype(jnp.float32))
    return out


def pack_params(params):
    """One-time prep: transpose to (in, out), scatter fw/bw gate columns into
    the block-diagonal interleaved layout, fold in the sigmoid 1/2 scale, sum
    bias_ih + bias_hh, cast matmul weights to bf16, pad layer-0 K and the fc2
    output to lane-dense multiples of 128."""
    fc2_w = params["fc2_w"]                                    # (O, H)
    O = fc2_w.shape[0]
    OP = _round_up(O, 128)
    H = params["fc1_w"].shape[0]
    packed = {
        "emb": params["emb"].astype(jnp.float32),
        "fc1_w": params["fc1_w"].T.astype(jnp.bfloat16),       # (2H, H)
        "fc1_b": params["fc1_b"].reshape(1, -1).astype(jnp.float32),
        "fc2_w": jnp.pad(fc2_w.T, ((0, 0), (0, OP - O))).astype(jnp.bfloat16),
        "fc2_b": jnp.pad(params["fc2_b"].reshape(1, -1),
                         ((0, 0), (0, OP - O))).astype(jnp.float32),
        "lstm": [],
    }
    for l, lp in enumerate(params["lstm"]):
        D = lp["w_ih_fw"].shape[1]
        Dp = _round_up(D, 128) if l == 0 else D                # lane-dense K for layer 0

        def pad_rows(w_t):
            return jnp.pad(w_t, ((0, Dp - w_t.shape[0]), (0, 0)))

        wih_f = _scatter_gate_cols(pad_rows(lp["w_ih_fw"].T), H, "fw").astype(jnp.bfloat16)
        wih_b = _scatter_gate_cols(pad_rows(lp["w_ih_bw"].T), H, "bw").astype(jnp.bfloat16)
        # Block-diagonal recurrence weight: rows [0:H]=fw, [H:2H]=bw.
        whh = jnp.concatenate(
            [_scatter_gate_cols(lp["w_hh_fw"].T, H, "fw"),
             _scatter_gate_cols(lp["w_hh_bw"].T, H, "bw")], axis=0).astype(jnp.bfloat16)
        b_f = (lp["b_ih_fw"] + lp["b_hh_fw"]).reshape(1, -1)   # bias_ih + bias_hh
        b_b = (lp["b_ih_bw"] + lp["b_hh_bw"]).reshape(1, -1)
        b_cat = (_scatter_gate_cols(b_f, H, "fw")
                 + _scatter_gate_cols(b_b, H, "bw")).astype(jnp.float32)
        packed["lstm"].append({"wih_f": wih_f, "wih_b": wih_b,
                               "whh": whh, "b": b_cat})
    return packed


# ----------------------------------------------------------------------------
# Forward pass (inference; dropout = identity)
# ----------------------------------------------------------------------------
@partial(jax.jit, static_argnames=("out_dim",))
def handwriting_rnn_forward(packed, char_input, stroke_input, *, out_dim):
    lstm = packed["lstm"]
    num_layers = len(lstm)
    H = packed["fc1_w"].shape[1]
    OP = packed["fc2_w"].shape[1]
    D0p = lstm[0]["wih_f"].shape[0]                            # padded layer-0 K

    # Embedding lookup (gather) + stroke repeat + concat — glue in plain JAX.
    char_embed = jnp.take(packed["emb"], char_input, axis=0)  # (B, T, H/2)
    B, T, _ = char_embed.shape
    if stroke_input.shape[1] != T:
        stroke_input = jnp.tile(stroke_input, (1, T, 1))       # torch .repeat(1, T, 1)
    combined = jnp.concatenate(
        [char_embed, stroke_input.astype(jnp.float32)], axis=-1)  # (B, T, D0)
    D0 = combined.shape[-1]

    # Batch tiling: one grid step per batch tile. A "parallel" axis lets
    # megacore / v7x shard it across TensorCores; tiles stay >= 256 rows so
    # the recurrence matmul M dim stays filled.
    Bp = _round_up(B, 8)
    BT = Bp if Bp <= 256 else 256
    Bp = _round_up(Bp, BT)
    NB = Bp // BT

    # Time-major inside each batch tile, K padded to 128 lanes, bf16 input.
    x = jnp.transpose(combined, (1, 0, 2))                     # (T, B, D0)
    x = jnp.pad(x, ((0, 0), (0, Bp - B), (0, D0p - D0)))       # (T, Bp, D0p)
    x = (x.reshape(T, NB, BT, D0p).transpose(1, 0, 2, 3)
          .reshape(NB, T * BT, D0p).astype(jnp.bfloat16))

    flat_w = []
    for lp in lstm:
        flat_w += [lp["wih_f"], lp["wih_b"], lp["whh"], lp["b"]]
    flat_w += [packed["fc1_w"], packed["fc1_b"], packed["fc2_w"], packed["fc2_b"]]

    # Weights: full-array blocks with constant index maps -> VMEM resident.
    w_specs = [pl.BlockSpec(w.shape, lambda b: (0, 0)) for w in flat_w]

    scratch = ([pltpu.VMEM((T * BT, 8 * H), jnp.float32) for _ in range(2)]
               + [pltpu.VMEM((T * BT, 2 * H), jnp.float32) for _ in range(num_layers)])

    # Scoped-VMEM budget from the actual footprint (defaults are only 16–32 MiB).
    def nbytes(a):
        return int(a.size) * a.dtype.itemsize
    need = (2 * (sum(nbytes(w) for w in flat_w)
                 + T * BT * D0p * 2 + T * BT * OP * 4)          # double-buffered I/O
            + 4 * (2 * T * BT * 8 * H + num_layers * T * BT * 2 * H)  # scratch
            + (1 << 20))
    vmem_limit = int(min(max(need, 32 << 20), 128 << 20))

    out = pl.pallas_call(
        _make_fused_kernel(num_layers, T, BT, H),
        out_shape=jax.ShapeDtypeStruct((NB, T * BT, OP), jnp.float32),
        grid=(NB,),
        in_specs=[pl.BlockSpec((None, T * BT, D0p), lambda b: (b, 0, 0))] + w_specs,
        out_specs=pl.BlockSpec((None, T * BT, OP), lambda b: (b, 0, 0)),
        scratch_shapes=scratch,
        compiler_params=pltpu.CompilerParams(
            dimension_semantics=("parallel",),
            vmem_limit_bytes=vmem_limit),
    )(x, *flat_w)

    out = out.reshape(NB, T, BT, OP).transpose(1, 0, 2, 3).reshape(T, Bp, OP)
    out = out[:, :B, :out_dim]                                 # (T, B, O)
    return jnp.transpose(out, (1, 0, 2))                       # (B, T, O)


# ----------------------------------------------------------------------------
# Pure-JAX reference (PyTorch semantics) for a correctness check
# ----------------------------------------------------------------------------
def reference_forward(params, char_input, stroke_input):
    emb = jnp.take(params["emb"], char_input, axis=0)
    B, T, _ = emb.shape
    if stroke_input.shape[1] != T:
        stroke_input = jnp.tile(stroke_input, (1, T, 1))
    x = jnp.concatenate([emb, stroke_input.astype(jnp.float32)], axis=-1)
    for lp in params["lstm"]:
        outs = []
        for d in ("fw", "bw"):
            w_ih, w_hh = lp[f"w_ih_{d}"], lp[f"w_hh_{d}"]
            bias = lp[f"b_ih_{d}"] + lp[f"b_hh_{d}"]
            Hh = w_hh.shape[1]
            seq = x[:, ::-1] if d == "bw" else x
            h = jnp.zeros((B, Hh), jnp.float32)
            c = jnp.zeros((B, Hh), jnp.float32)
            hs = []
            for t in range(T):
                z = seq[:, t] @ w_ih.T + h @ w_hh.T + bias
                i, f, g, o = jnp.split(z, 4, axis=-1)
                i, f, o = jax.nn.sigmoid(i), jax.nn.sigmoid(f), jax.nn.sigmoid(o)
                g = jnp.tanh(g)
                c = f * c + i * g
                h = o * jnp.tanh(c)
                hs.append(h)
            hs = jnp.stack(hs, axis=1)
            if d == "bw":
                hs = hs[:, ::-1]
            outs.append(hs)
        x = jnp.concatenate(outs, axis=-1)
    y = jnp.maximum(x @ params["fc1_w"].T + params["fc1_b"], 0.0)
    return y @ params["fc2_w"].T + params["fc2_b"]


# ----------------------------------------------------------------------------
if __name__ == "__main__":
    CHAR_DIM, HIDDEN_DIM, OUTPUT_DIM, NUM_LAYERS = 12, 32, 3, 2
    B, T = 2, 8

    key = jax.random.PRNGKey(0)
    k_param, k_char, k_stroke = jax.random.split(key, 3)

    raw_params = init_handwriting_rnn_params(
        k_param, CHAR_DIM, HIDDEN_DIM, OUTPUT_DIM, NUM_LAYERS)
    packed_params = pack_params(raw_params)    # one-time transpose/scatter/cast/pad

    char_input = jax.random.randint(k_char, (B, T), 0, CHAR_DIM, dtype=jnp.int32)
    # (B, 1, O) stroke input exercises the repeat-to-seq-length branch.
    stroke_input = jax.random.normal(k_stroke, (B, 1, OUTPUT_DIM), dtype=jnp.float32)

    out = handwriting_rnn_forward(packed_params, char_input, stroke_input,
                                  out_dim=OUTPUT_DIM)
    out = jax.block_until_ready(out)

    assert out.shape == (B, T, OUTPUT_DIM), out.shape
    assert bool(jnp.all(jnp.isfinite(out)))

    ref = reference_forward(raw_params, char_input, stroke_input)
    assert bool(jnp.allclose(out, ref, atol=5e-2, rtol=5e-2)), \
        float(jnp.max(jnp.abs(out - ref)))
    print("KERNEL_OK")
</pallas_src>

<mosaic_0001>
module attributes {stable_mosaic.version = 11 : i64} {
  func.func @kernel(%arg0: i32, %arg1: memref<1x64x128xbf16, #tpu.memory_space<vmem>>, %arg2: memref<128x256xbf16, #tpu.memory_space<vmem>>, %arg3: memref<128x256xbf16, #tpu.memory_space<vmem>>, %arg4: memref<64x256xbf16, #tpu.memory_space<vmem>>, %arg5: memref<1x256xf32, #tpu.memory_space<vmem>>, %arg6: memref<64x256xbf16, #tpu.memory_space<vmem>>, %arg7: memref<64x256xbf16, #tpu.memory_space<vmem>>, %arg8: memref<64x256xbf16, #tpu.memory_space<vmem>>, %arg9: memref<1x256xf32, #tpu.memory_space<vmem>>, %arg10: memref<64x32xbf16, #tpu.memory_space<vmem>>, %arg11: memref<1x32xf32, #tpu.memory_space<vmem>>, %arg12: memref<32x128xbf16, #tpu.memory_space<vmem>>, %arg13: memref<1x128xf32, #tpu.memory_space<vmem>>, %arg14: memref<1x64x128xf32, #tpu.memory_space<vmem>>, %arg15: memref<64x256xf32, #tpu.memory_space<vmem>>, %arg16: memref<64x256xf32, #tpu.memory_space<vmem>>, %arg17: memref<64x64xf32, #tpu.memory_space<vmem>>, %arg18: memref<64x64xf32, #tpu.memory_space<vmem>>) attributes {dimension_semantics = [#tpu.dimension_semantics<parallel>], iteration_bounds = array<i64: 1>, scalar_prefetch = 0 : i64, scratch_operands = 4 : i64, tpu.core_type = #tpu.core_type<tc>, window_params = [{transform_indices = @transform_0, window_bounds = array<i64: 1, 64, 128>}, {pipeline_mode = #tpu.pipeline_mode<synchronous>, transform_indices = @transform_1, window_bounds = array<i64: 128, 256>}, {pipeline_mode = #tpu.pipeline_mode<synchronous>, transform_indices = @transform_2, window_bounds = array<i64: 128, 256>}, {pipeline_mode = #tpu.pipeline_mode<synchronous>, transform_indices = @transform_3, window_bounds = array<i64: 64, 256>}, {pipeline_mode = #tpu.pipeline_mode<synchronous>, transform_indices = @transform_4, window_bounds = array<i64: 1, 256>}, {pipeline_mode = #tpu.pipeline_mode<synchronous>, transform_indices = @transform_5, window_bounds = array<i64: 64, 256>}, {pipeline_mode = #tpu.pipeline_mode<synchronous>, transform_indices = @transform_6, window_bounds = array<i64: 64, 256>}, {pipeline_mode = #tpu.pipeline_mode<synchronous>, transform_indices = @transform_7, window_bounds = array<i64: 64, 256>}, {pipeline_mode = #tpu.pipeline_mode<synchronous>, transform_indices = @transform_8, window_bounds = array<i64: 1, 256>}, {pipeline_mode = #tpu.pipeline_mode<synchronous>, transform_indices = @transform_9, window_bounds = array<i64: 64, 32>}, {pipeline_mode = #tpu.pipeline_mode<synchronous>, transform_indices = @transform_10, window_bounds = array<i64: 1, 32>}, {pipeline_mode = #tpu.pipeline_mode<synchronous>, transform_indices = @transform_11, window_bounds = array<i64: 32, 128>}, {pipeline_mode = #tpu.pipeline_mode<synchronous>, transform_indices = @transform_12, window_bounds = array<i64: 1, 128>}, {transform_indices = @transform_13, window_bounds = array<i64: 1, 64, 128>}]} {
    %0 = tpu.iota {dimensions = array<i32: 1>} : vector<8x256xi32>
    %c128_i32 = arith.constant 128 : i32
    %1 = vector.broadcast %c128_i32 : i32 to vector<8x256xi32>
    %2 = arith.cmpi sge, %0, %1 : vector<8x256xi32>
    %c192_i32 = arith.constant 192 : i32
    %3 = vector.broadcast %c192_i32 : i32 to vector<8x256xi32>
    %4 = arith.cmpi slt, %0, %3 : vector<8x256xi32>
    %5 = arith.andi %2, %4 : vector<8x256xi1>
    %c0 = arith.constant 0 : index
    %c0_0 = arith.constant 0 : index
    %c0_1 = arith.constant 0 : index
    %6 = vector.load %arg1[%c0, %c0_0, %c0_1] : memref<1x64x128xbf16, #tpu.memory_space<vmem>>, vector<1x64x128xbf16>
    %7 = vector.shape_cast %6 : vector<1x64x128xbf16> to vector<64x128xbf16>
    %c0_2 = arith.constant 0 : index
    %c0_3 = arith.constant 0 : index
    %8 = vector.load %arg2[%c0_2, %c0_3] : memref<128x256xbf16, #tpu.memory_space<vmem>>, vector<128x256xbf16>
    %cst = arith.constant dense<0.000000e+00> : vector<64x256xf32>
    %9 = tpu.matmul %7, %8, %cst {dimension_numbers = #tpu.dot_dimension_numbers<[1], [0], [0], [1], [0, 0, 1, 1], [], []>} : vector<64x128xbf16>, vector<128x256xbf16>, vector<64x256xf32> -> vector<64x256xf32>
    %c0_4 = arith.constant 0 : index
    %c0_5 = arith.constant 0 : index
    %10 = vector.load %arg5[%c0_4, %c0_5] : memref<1x256xf32, #tpu.memory_space<vmem>>, vector<1x256xf32>
    %11 = vector.broadcast %10 : vector<1x256xf32> to vector<64x256xf32>
    %12 = arith.addf %9, %11 : vector<64x256xf32>
    %c0_6 = arith.constant 0 : index
    %c0_7 = arith.constant 0 : index
    %13 = vector.load %arg15[%c0_6, %c0_7] : memref<64x256xf32, #tpu.memory_space<vmem>>, vector<64x256xf32>
    tpu.vector_store %arg15[%c0_6, %c0_7], %12 {strides = array<i32>} : memref<64x256xf32, #tpu.memory_space<vmem>>, vector<64x256xf32>,
    %c0_8 = arith.constant 0 : index
    %c0_9 = arith.constant 0 : index
    %14 = vector.load %arg3[%c0_8, %c0_9] : memref<128x256xbf16, #tpu.memory_space<vmem>>, vector<128x256xbf16>
    %cst_10 = arith.constant dense<0.000000e+00> : vector<64x256xf32>
    %15 = tpu.matmul %7, %14, %cst_10 {dimension_numbers = #tpu.dot_dimension_numbers<[1], [0], [0], [1], [0, 0, 1, 1], [], []>} : vector<64x128xbf16>, vector<128x256xbf16>, vector<64x256xf32> -> vector<64x256xf32>
    %c0_11 = arith.constant 0 : index
    %c0_12 = arith.constant 0 : index
    %16 = vector.load %arg16[%c0_11, %c0_12] : memref<64x256xf32, #tpu.memory_space<vmem>>, vector<64x256xf32>
    tpu.vector_store %arg16[%c0_11, %c0_12], %15 {strides = array<i32>} : memref<64x256xf32, #tpu.memory_space<vmem>>, vector<64x256xf32>,
    %c0_13 = arith.constant 0 : index
    %c0_14 = arith.constant 0 : index
    %17 = vector.load %arg15[%c0_13, %c0_14] : memref<64x256xf32, #tpu.memory_space<vmem>>, vector<8x256xf32>
    %c56 = arith.constant 56 : index
    %c0_15 = arith.constant 0 : index
    %18 = vector.load %arg16[%c56, %c0_15] : memref<64x256xf32, #tpu.memory_space<vmem>>, vector<8x256xf32>
    %19 = arith.addf %17, %18 : vector<8x256xf32>
    %c0_16 = arith.constant 0 : index
    %c0_17 = arith.constant 0 : index
    %20 = vector.load %arg15[%c0_16, %c0_17] : memref<64x256xf32, #tpu.memory_space<vmem>>, vector<8x256xf32>
    tpu.vector_store %arg15[%c0_16, %c0_17], %19 {strides = array<i32>} : memref<64x256xf32, #tpu.memory_space<vmem>>, vector<8x256xf32>,
    %c8 = arith.constant 8 : index
    %c0_18 = arith.constant 0 : index
    %21 = vector.load %arg15[%c8, %c0_18] : memref<64x256xf32, #tpu.memory_space<vmem>>, vector<8x256xf32>
    %c48 = arith.constant 48 : index
    %c0_19 = arith.constant 0 : index
    %22 = vector.load %arg16[%c48, %c0_19] : memref<64x256xf32, #tpu.memory_space<vmem>>, vector<8x256xf32>
    %23 = arith.addf %21, %22 : vector<8x256xf32>
    %c8_20 = arith.constant 8 : index
    %c0_21 = arith.constant 0 : index
    %24 = vector.load %arg15[%c8_20, %c0_21] : memref<64x256xf32, #tpu.memory_space<vmem>>, vector<8x256xf32>
    tpu.vector_store %arg15[%c8_20, %c0_21], %23 {strides = array<i32>} : memref<64x256xf32, #tpu.memory_space<vmem>>, vector<8x256xf32>,
    %c16 = arith.constant 16 : index
    %c0_22 = arith.constant 0 : index
    %25 = vector.load %arg15[%c16, %c0_22] : memref<64x256xf32, #tpu.memory_space<vmem>>, vector<8x256xf32>
    %c40 = arith.constant 40 : index
    %c0_23 = arith.constant 0 : index
    %26 = vector.load %arg16[%c40, %c0_23] : memref<64x256xf32, #tpu.memory_space<vmem>>, vector<8x256xf32>
    %27 = arith.addf %25, %26 : vector<8x256xf32>
    %c16_24 = arith.constant 16 : index
    %c0_25 = arith.constant 0 : index
    %28 = vector.load %arg15[%c16_24, %c0_25] : memref<64x256xf32, #tpu.memory_space<vmem>>, vector<8x256xf32>
    tpu.vector_store %arg15[%c16_24, %c0_25], %27 {strides = array<i32>} : memref<64x256xf32, #tpu.memory_space<vmem>>, vector<8x256xf32>,
    %c24 = arith.constant 24 : index
    %c0_26 = arith.constant 0 : index
    %29 = vector.load %arg15[%c24, %c0_26] : memref<64x256xf32, #tpu.memory_space<vmem>>, vector<8x256xf32>
    %c32 = arith.constant 32 : index
    %c0_27 = arith.constant 0 : index
    %30 = vector.load %arg16[%c32, %c0_27] : memref<64x256xf32, #tpu.memory_space<vmem>>, vector<8x256xf32>
    %31 = arith.addf %29, %30 : vector<8x256xf32>
    %c24_28 = arith.constant 24 : index
    %c0_29 = arith.constant 0 : index
    %32 = vector.load %arg15[%c24_28, %c0_29] : memref<64x256xf32, #tpu.memory_space<vmem>>, vector<8x256xf32>
    tpu.vector_store %arg15[%c24_28, %c0_29], %31 {strides = array<i32>} : memref<64x256xf32, #tpu.memory_space<vmem>>, vector<8x256xf32>,
    %c32_30 = arith.constant 32 : index
    %c0_31 = arith.constant 0 : index
    %33 = vector.load %arg15[%c32_30, %c0_31] : memref<64x256xf32, #tpu.memory_space<vmem>>, vector<8x256xf32>
    %c24_32 = arith.constant 24 : index
    %c0_33 = arith.constant 0 : index
    %34 = vector.load %arg16[%c24_32, %c0_33] : memref<64x256xf32, #tpu.memory_space<vmem>>, vector<8x256xf32>
    %35 = arith.addf %33, %34 : vector<8x256xf32>
    %c32_34 = arith.constant 32 : index
    %c0_35 = arith.constant 0 : index
    %36 = vector.load %arg15[%c32_34, %c0_35] : memref<64x256xf32, #tpu.memory_space<vmem>>, vector<8x256xf32>
    tpu.vector_store %arg15[%c32_34, %c0_35], %35 {strides = array<i32>} : memref<64x256xf32, #tpu.memory_space<vmem>>, vector<8x256xf32>,
    %c40_36 = arith.constant 40 : index
    %c0_37 = arith.constant 0 : index
    %37 = vector.load %arg15[%c40_36, %c0_37] : memref<64x256xf32, #tpu.memory_space<vmem>>, vector<8x256xf32>
    %c16_38 = arith.constant 16 : index
    %c0_39 = arith.constant 0 : index
    %38 = vector.load %arg16[%c16_38, %c0_39] : memref<64x256xf32, #tpu.memory_space<vmem>>, vector<8x256xf32>
    %39 = arith.addf %37, %38 : vector<8x256xf32>
    %c40_40 = arith.constant 40 : index
    %c0_41 = arith.constant 0 : index
    %40 = vector.load %arg15[%c40_40, %c0_41] : memref<64x256xf32, #tpu.memory_space<vmem>>, vector<8x256xf32>
    tpu.vector_store %arg15[%c40_40, %c0_41], %39 {strides = array<i32>} : memref<64x256xf32, #tpu.memory_space<vmem>>, vector<8x256xf32>,
    %c48_42 = arith.constant 48 : index
    %c0_43 = arith.constant 0 : index
    %41 = vector.load %arg15[%c48_42, %c0_43] : memref<64x256xf32, #tpu.memory_space<vmem>>, vector<8x256xf32>
    %c8_44 = arith.constant 8 : index
    %c0_45 = arith.constant 0 : index
    %42 = vector.load %arg16[%c8_44, %c0_45] : memref<64x256xf32, #tpu.memory_space<vmem>>, vector<8x256xf32>
    %43 = arith.addf %41, %42 : vector<8x256xf32>
    %c48_46 = arith.constant 48 : index
    %c0_47 = arith.constant 0 : index
    %44 = vector.load %arg15[%c48_46, %c0_47] : memref<64x256xf32, #tpu.memory_space<vmem>>, vector<8x256xf32>
    tpu.vector_store %arg15[%c48_46, %c0_47], %43 {strides = array<i32>} : memref<64x256xf32, #tpu.memory_space<vmem>>, vector<8x256xf32>,
    %c56_48 = arith.constant 56 : index
    %c0_49 = arith.constant 0 : index
    %45 = vector.load %arg15[%c56_48, %c0_49] : memref<64x256xf32, #tpu.memory_space<vmem>>, vector<8x256xf32>
    %c0_50 = arith.constant 0 : index
    %c0_51 = arith.constant 0 : index
    %46 = vector.load %arg16[%c0_50, %c0_51] : memref<64x256xf32, #tpu.memory_space<vmem>>, vector<8x256xf32>
    %47 = arith.addf %45, %46 : vector<8x256xf32>
    %c56_52 = arith.constant 56 : index
    %c0_53 = arith.constant 0 : index
    %48 = vector.load %arg15[%c56_52, %c0_53] : memref<64x256xf32, #tpu.memory_space<vmem>>, vector<8x256xf32>
    tpu.vector_store %arg15[%c56_52, %c0_53], %47 {strides = array<i32>} : memref<64x256xf32, #tpu.memory_space<vmem>>, vector<8x256xf32>,
    %c0_54 = arith.constant 0 : index
    %c0_55 = arith.constant 0 : index
    %49 = vector.load %arg4[%c0_54, %c0_55] : memref<64x256xbf16, #tpu.memory_space<vmem>>, vector<64x256xbf16>
    %cst_56 = arith.constant 0.000000e+00 : f32
    %50 = vector.broadcast %cst_56 : f32 to vector<8x64xf32>
    %cst_57 = arith.constant 0.000000e+00 : f32
    %51 = vector.broadcast %cst_57 : f32 to vector<8x64xf32>
    %52 = arith.truncf %50 : vector<8x64xf32> to vector<8x64xbf16>
    %cst_58 = arith.constant dense<0.000000e+00> : vector<8x256xf32>
    %53 = tpu.matmul %52, %49, %cst_58 {dimension_numbers = #tpu.dot_dimension_numbers<[1], [0], [0], [1], [0, 0, 1, 1], [], []>} : vector<8x64xbf16>, vector<64x256xbf16>, vector<8x256xf32> -> vector<8x256xf32>
    %c0_59 = arith.constant 0 : index
    %c0_60 = arith.constant 0 : index
    %54 = vector.load %arg15[%c0_59, %c0_60] : memref<64x256xf32, #tpu.memory_space<vmem>>, vector<8x256xf32>
    %55 = arith.addf %53, %54 : vector<8x256xf32>
    %56 = math.tanh %55 : vector<8x256xf32>
    %cst_61 = arith.constant 5.000000e-01 : f32
    %57 = vector.broadcast %cst_61 : f32 to vector<8x256xf32>
    %58 = arith.mulf %57, %56 : vector<8x256xf32>
    %cst_62 = arith.constant 5.000000e-01 : f32
    %59 = vector.broadcast %cst_62 : f32 to vector<8x256xf32>
    %60 = arith.addf %58, %59 : vector<8x256xf32>
    %61 = arith.select %5, %56, %60 : vector<8x256xi1>, vector<8x256xf32>
    %62 = vector.extract_strided_slice %61 {offsets = [0, 64], sizes = [8, 64], strides = [1, 1]} : vector<8x256xf32> to vector<8x64xf32>
    %63 = arith.mulf %62, %51 : vector<8x64xf32>
    %64 = vector.extract_strided_slice %61 {offsets = [0, 0], sizes = [8, 64], strides = [1, 1]} : vector<8x256xf32> to vector<8x64xf32>
    %65 = vector.extract_strided_slice %61 {offsets = [0, 128], sizes = [8, 64], strides = [1, 1]} : vector<8x256xf32> to vector<8x64xf32>
    %66 = arith.mulf %64, %65 : vector<8x64xf32>
    %67 = arith.addf %63, %66 : vector<8x64xf32>
    %68 = vector.extract_strided_slice %61 {offsets = [0, 192], sizes = [8, 64], strides = [1, 1]} : vector<8x256xf32> to vector<8x64xf32>
    %69 = math.tanh %67 : vector<8x64xf32>
    %70 = arith.mulf %68, %69 : vector<8x64xf32>
    %71 = vector.extract_strided_slice %70 {offsets = [0, 0], sizes = [8, 32], strides = [1, 1]} : vector<8x64xf32> to vector<8x32xf32>
    %c0_63 = arith.constant 0 : index
    %c0_64 = arith.constant 0 : index
    %72 = vector.load %arg17[%c0_63, %c0_64] : memref<64x64xf32, #tpu.memory_space<vmem>>, vector<8x32xf32>
    tpu.vector_store %arg17[%c0_63, %c0_64], %71 {strides = array<i32>} : memref<64x64xf32, #tpu.memory_space<vmem>>, vector<8x32xf32>,
    %73 = vector.extract_strided_slice %70 {offsets = [0, 32], sizes = [8, 32], strides = [1, 1]} : vector<8x64xf32> to vector<8x32xf32>
    %c56_65 = arith.constant 56 : index
    %c32_66 = arith.constant 32 : index
    %74 = vector.load %arg17[%c56_65, %c32_66] : memref<64x64xf32, #tpu.memory_space<vmem>>, vector<8x32xf32>
    tpu.vector_store %arg17[%c56_65, %c32_66], %73 {strides = array<i32>} : memref<64x64xf32, #tpu.memory_space<vmem>>, vector<8x32xf32>,
    %75 = arith.truncf %70 : vector<8x64xf32> to vector<8x64xbf16>
    %cst_67 = arith.constant dense<0.000000e+00> : vector<8x256xf32>
    %76 = tpu.matmul %75, %49, %cst_67 {dimension_numbers = #tpu.dot_dimension_numbers<[1], [0], [0], [1], [0, 0, 1, 1], [], []>} : vector<8x64xbf16>, vector<64x256xbf16>, vector<8x256xf32> -> vector<8x256xf32>
    %c8_68 = arith.constant 8 : index
    %c0_69 = arith.constant 0 : index
    %77 = vector.load %arg15[%c8_68, %c0_69] : memref<64x256xf32, #tpu.memory_space<vmem>>, vector<8x256xf32>
    %78 = arith.addf %76, %77 : vector<8x256xf32>
    %79 = math.tanh %78 : vector<8x256xf32>
    %cst_70 = arith.constant 5.000000e-01 : f32
    %80 = vector.broadcast %cst_70 : f32 to vector<8x256xf32>
    %81 = arith.mulf %80, %79 : vector<8x256xf32>
    %cst_71 = arith.constant 5.000000e-01 : f32
    %82 = vector.broadcast %cst_71 : f32 to vector<8x256xf32>
    %83 = arith.addf %81, %82 : vector<8x256xf32>
    %84 = arith.select %5, %79, %83 : vector<8x256xi1>, vector<8x256xf32>
    %85 = vector.extract_strided_slice %84 {offsets = [0, 64], sizes = [8, 64], strides = [1, 1]} : vector<8x256xf32> to vector<8x64xf32>
    %86 = arith.mulf %85, %67 : vector<8x64xf32>
    %87 = vector.extract_strided_slice %84 {offsets = [0, 0], sizes = [8, 64], strides = [1, 1]} : vector<8x256xf32> to vector<8x64xf32>
    %88 = vector.extract_strided_slice %84 {offsets = [0, 128], sizes = [8, 64], strides = [1, 1]} : vector<8x256xf32> to vector<8x64xf32>
    %89 = arith.mulf %87, %88 : vector<8x64xf32>
    %90 = arith.addf %86, %89 : vector<8x64xf32>
    %91 = vector.extract_strided_slice %84 {offsets = [0, 192], sizes = [8, 64], strides = [1, 1]} : vector<8x256xf32> to vector<8x64xf32>
    %92 = math.tanh %90 : vector<8x64xf32>
    %93 = arith.mulf %91, %92 : vector<8x64xf32>
    %94 = vector.extract_strided_slice %93 {offsets = [0, 0], sizes = [8, 32], strides = [1, 1]} : vector<8x64xf32> to vector<8x32xf32>
    %c8_72 = arith.constant 8 : index
    %c0_73 = arith.constant 0 : index
    %95 = vector.load %arg17[%c8_72, %c0_73] : memref<64x64xf32, #tpu.memory_space<vmem>>, vector<8x32xf32>
    tpu.vector_store %arg17[%c8_72, %c0_73], %94 {strides = array<i32>} : memref<64x64xf32, #tpu.memory_space<vmem>>, vector<8x32xf32>,
    %96 = vector.extract_strided_slice %93 {offsets = [0, 32], sizes = [8, 32], strides = [1, 1]} : vector<8x64xf32> to vector<8x32xf32>
    %c48_74 = arith.constant 48 : index
    %c32_75 = arith.constant 32 : index
    %97 = vector.load %arg17[%c48_74, %c32_75] : memref<64x64xf32, #tpu.memory_space<vmem>>, vector<8x32xf32>
    tpu.vector_store %arg17[%c48_74, %c32_75], %96 {strides = array<i32>} : memref<64x64xf32, #tpu.memory_space<vmem>>, vector<8x32xf32>,
    %98 = arith.truncf %93 : vector<8x64xf32> to vector<8x64xbf16>
    %cst_76 = arith.constant dense<0.000000e+00> : vector<8x256xf32>
    %99 = tpu.matmul %98, %49, %cst_76 {dimension_numbers = #tpu.dot_dimension_numbers<[1], [0], [0], [1], [0, 0, 1, 1], [], []>} : vector<8x64xbf16>, vector<64x256xbf16>, vector<8x256xf32> -> vector<8x256xf32>
    %c16_77 = arith.constant 16 : index
    %c0_78 = arith.constant 0 : index
    %100 = vector.load %arg15[%c16_77, %c0_78] : memref<64x256xf32, #tpu.memory_space<vmem>>, vector<8x256xf32>
    %101 = arith.addf %99, %100 : vector<8x256xf32>
    %102 = math.tanh %101 : vector<8x256xf32>
    %cst_79 = arith.constant 5.000000e-01 : f32
    %103 = vector.broadcast %cst_79 : f32 to vector<8x256xf32>
    %104 = arith.mulf %103, %102 : vector<8x256xf32>
    %cst_80 = arith.constant 5.000000e-01 : f32
    %105 = vector.broadcast %cst_80 : f32 to vector<8x256xf32>
    %106 = arith.addf %104, %105 : vector<8x256xf32>
    %107 = arith.select %5, %102, %106 : vector<8x256xi1>, vector<8x256xf32>
    %108 = vector.extract_strided_slice %107 {offsets = [0, 64], sizes = [8, 64], strides = [1, 1]} : vector<8x256xf32> to vector<8x64xf32>
    %109 = arith.mulf %108, %90 : vector<8x64xf32>
    %110 = vector.extract_strided_slice %107 {offsets = [0, 0], sizes = [8, 64], strides = [1, 1]} : vector<8x256xf32> to vector<8x64xf32>
    %111 = vector.extract_strided_slice %107 {offsets = [0, 128], sizes = [8, 64], strides = [1, 1]} : vector<8x256xf32> to vector<8x64xf32>
    %112 = arith.mulf %110, %111 : vector<8x64xf32>
    %113 = arith.addf %109, %112 : vector<8x64xf32>
    %114 = vector.extract_strided_slice %107 {offsets = [0, 192], sizes = [8, 64], strides = [1, 1]} : vector<8x256xf32> to vector<8x64xf32>
    %115 = math.tanh %113 : vector<8x64xf32>
    %116 = arith.mulf %114, %115 : vector<8x64xf32>
    %117 = vector.extract_strided_slice %116 {offsets = [0, 0], sizes = [8, 32], strides = [1, 1]} : vector<8x64xf32> to vector<8x32xf32>
    %c16_81 = arith.constant 16 : index
    %c0_82 = arith.constant 0 : index
    %118 = vector.load %arg17[%c16_81, %c0_82] : memref<64x64xf32, #tpu.memory_space<vmem>>, vector<8x32xf32>
    tpu.vector_store %arg17[%c16_81, %c0_82], %117 {strides = array<i32>} : memref<64x64xf32, #tpu.memory_space<vmem>>, vector<8x32xf32>,
    %119 = vector.extract_strided_slice %116 {offsets = [0, 32], sizes = [8, 32], strides = [1, 1]} : vector<8x64xf32> to vector<8x32xf32>
    %c40_83 = arith.constant 40 : index
    %c32_84 = arith.constant 32 : index
    %120 = vector.load %arg17[%c40_83, %c32_84] : memref<64x64xf32, #tpu.memory_space<vmem>>, vector<8x32xf32>
    tpu.vector_store %arg17[%c40_83, %c32_84], %119 {strides = array<i32>} : memref<64x64xf32, #tpu.memory_space<vmem>>, vector<8x32xf32>,
    %121 = arith.truncf %116 : vector<8x64xf32> to vector<8x64xbf16>
    %cst_85 = arith.constant dense<0.000000e+00> : vector<8x256xf32>
    %122 = tpu.matmul %121, %49, %cst_85 {dimension_numbers = #tpu.dot_dimension_numbers<[1], [0], [0], [1], [0, 0, 1, 1], [], []>} : vector<8x64xbf16>, vector<64x256xbf16>, vector<8x256xf32> -> vector<8x256xf32>
    %c24_86 = arith.constant 24 : index
    %c0_87 = arith.constant 0 : index
    %123 = vector.load %arg15[%c24_86, %c0_87] : memref<64x256xf32, #tpu.memory_space<vmem>>, vector<8x256xf32>
    %124 = arith.addf %122, %123 : vector<8x256xf32>
    %125 = math.tanh %124 : vector<8x256xf32>
    %cst_88 = arith.constant 5.000000e-01 : f32
    %126 = vector.broadcast %cst_88 : f32 to vector<8x256xf32>
    %127 = arith.mulf %126, %125 : vector<8x256xf32>
    %cst_89 = arith.constant 5.000000e-01 : f32
    %128 = vector.broadcast %cst_89 : f32 to vector<8x256xf32>
    %129 = arith.addf %127, %128 : vector<8x256xf32>
    %130 = arith.select %5, %125, %129 : vector<8x256xi1>, vector<8x256xf32>
    %131 = vector.extract_strided_slice %130 {offsets = [0, 64], sizes = [8, 64], strides = [1, 1]} : vector<8x256xf32> to vector<8x64xf32>
    %132 = arith.mulf %131, %113 : vector<8x64xf32>
    %133 = vector.extract_strided_slice %130 {offsets = [0, 0], sizes = [8, 64], strides = [1, 1]} : vector<8x256xf32> to vector<8x64xf32>
    %134 = vector.extract_strided_slice %130 {offsets = [0, 128], sizes = [8, 64], strides = [1, 1]} : vector<8x256xf32> to vector<8x64xf32>
    %135 = arith.mulf %133, %134 : vector<8x64xf32>
    %136 = arith.addf %132, %135 : vector<8x64xf32>
    %137 = vector.extract_strided_slice %130 {offsets = [0, 192], sizes = [8, 64], strides = [1, 1]} : vector<8x256xf32> to vector<8x64xf32>
    %138 = math.tanh %136 : vector<8x64xf32>
    %139 = arith.mulf %137, %138 : vector<8x64xf32>
    %140 = vector.extract_strided_slice %139 {offsets = [0, 0], sizes = [8, 32], strides = [1, 1]} : vector<8x64xf32> to vector<8x32xf32>
    %c24_90 = arith.constant 24 : index
    %c0_91 = arith.constant 0 : index
    %141 = vector.load %arg17[%c24_90, %c0_91] : memref<64x64xf32, #tpu.memory_space<vmem>>, vector<8x32xf32>
    tpu.vector_store %arg17[%c24_90, %c0_91], %140 {strides = array<i32>} : memref<64x64xf32, #tpu.memory_space<vmem>>, vector<8x32xf32>,
    %142 = vector.extract_strided_slice %139 {offsets = [0, 32], sizes = [8, 32], strides = [1, 1]} : vector<8x64xf32> to vector<8x32xf32>
    %c32_92 = arith.constant 32 : index
    %c32_93 = arith.constant 32 : index
    %143 = vector.load %arg17[%c32_92, %c32_93] : memref<64x64xf32, #tpu.memory_space<vmem>>, vector<8x32xf32>
    tpu.vector_store %arg17[%c32_92, %c32_93], %142 {strides = array<i32>} : memref<64x64xf32, #tpu.memory_space<vmem>>, vector<8x32xf32>,
    %144 = arith.truncf %139 : vector<8x64xf32> to vector<8x64xbf16>
    %cst_94 = arith.constant dense<0.000000e+00> : vector<8x256xf32>
    %145 = tpu.matmul %144, %49, %cst_94 {dimension_numbers = #tpu.dot_dimension_numbers<[1], [0], [0], [1], [0, 0, 1, 1], [], []>} : vector<8x64xbf16>, vector<64x256xbf16>, vector<8x256xf32> -> vector<8x256xf32>
    %c32_95 = arith.constant 32 : index
    %c0_96 = arith.constant 0 : index
    %146 = vector.load %arg15[%c32_95, %c0_96] : memref<64x256xf32, #tpu.memory_space<vmem>>, vector<8x256xf32>
    %147 = arith.addf %145, %146 : vector<8x256xf32>
    %148 = math.tanh %147 : vector<8x256xf32>
    %cst_97 = arith.constant 5.000000e-01 : f32
    %149 = vector.broadcast %cst_97 : f32 to vector<8x256xf32>
    %150 = arith.mulf %149, %148 : vector<8x256xf32>
    %cst_98 = arith.constant 5.000000e-01 : f32
    %151 = vector.broadcast %cst_98 : f32 to vector<8x256xf32>
    %152 = arith.addf %150, %151 : vector<8x256xf32>
    %153 = arith.select %5, %148, %152 : vector<8x256xi1>, vector<8x256xf32>
    %154 = vector.extract_strided_slice %153 {offsets = [0, 64], sizes = [8, 64], strides = [1, 1]} : vector<8x256xf32> to vector<8x64xf32>
    %155 = arith.mulf %154, %136 : vector<8x64xf32>
    %156 = vector.extract_strided_slice %153 {offsets = [0, 0], sizes = [8, 64], strides = [1, 1]} : vector<8x256xf32> to vector<8x64xf32>
    %157 = vector.extract_strided_slice %153 {offsets = [0, 128], sizes = [8, 64], strides = [1, 1]} : vector<8x256xf32> to vector<8x64xf32>
    %158 = arith.mulf %156, %157 : vector<8x64xf32>
    %159 = arith.addf %155, %158 : vector<8x64xf32>
    %160 = vector.extract_strided_slice %153 {offsets = [0, 192], sizes = [8, 64], strides = [1, 1]} : vector<8x256xf32> to vector<8x64xf32>
    %161 = math.tanh %159 : vector<8x64xf32>
    %162 = arith.mulf %160, %161 : vector<8x64xf32>
    %163 = vector.extract_strided_slice %162 {offsets = [0, 0], sizes = [8, 32], strides = [1, 1]} : vector<8x64xf32> to vector<8x32xf32>
    %c32_99 = arith.constant 32 : index
    %c0_100 = arith.constant 0 : index
    %164 = vector.load %arg17[%c32_99, %c0_100] : memref<64x64xf32, #tpu.memory_space<vmem>>, vector<8x32xf32>
    tpu.vector_store %arg17[%c32_99, %c0_100], %163 {strides = array<i32>} : memref<64x64xf32, #tpu.memory_space<vmem>>, vector<8x32xf32>,
    %165 = vector.extract_strided_slice %162 {offsets = [0, 32], sizes = [8, 32], strides = [1, 1]} : vector<8x64xf32> to vector<8x32xf32>
    %c24_101 = arith.constant 24 : index
    %c32_102 = arith.constant 32 : index
    %166 = vector.load %arg17[%c24_101, %c32_102] : memref<64x64xf32, #tpu.memory_space<vmem>>, vector<8x32xf32>
    tpu.vector_store %arg17[%c24_101, %c32_102], %165 {strides = array<i32>} : memref<64x64xf32, #tpu.memory_space<vmem>>, vector<8x32xf32>,
    %167 = arith.truncf %162 : vector<8x64xf32> to vector<8x64xbf16>
    %cst_103 = arith.constant dense<0.000000e+00> : vector<8x256xf32>
    %168 = tpu.matmul %167, %49, %cst_103 {dimension_numbers = #tpu.dot_dimension_numbers<[1], [0], [0], [1], [0, 0, 1, 1], [], []>} : vector<8x64xbf16>, vector<64x256xbf16>, vector<8x256xf32> -> vector<8x256xf32>
    %c40_104 = arith.constant 40 : index
    %c0_105 = arith.constant 0 : index
    %169 = vector.load %arg15[%c40_104, %c0_105] : memref<64x256xf32, #tpu.memory_space<vmem>>, vector<8x256xf32>
    %170 = arith.addf %168, %169 : vector<8x256xf32>
    %171 = math.tanh %170 : vector<8x256xf32>
    %cst_106 = arith.constant 5.000000e-01 : f32
    %172 = vector.broadcast %cst_106 : f32 to vector<8x256xf32>
    %173 = arith.mulf %172, %171 : vector<8x256xf32>
    %cst_107 = arith.constant 5.000000e-01 : f32
    %174 = vector.broadcast %cst_107 : f32 to vector<8x256xf32>
    %175 = arith.addf %173, %174 : vector<8x256xf32>
    %176 = arith.select %5, %171, %175 : vector<8x256xi1>, vector<8x256xf32>
    %177 = vector.extract_strided_slice %176 {offsets = [0, 64], sizes = [8, 64], strides = [1, 1]} : vector<8x256xf32> to vector<8x64xf32>
    %178 = arith.mulf %177, %159 : vector<8x64xf32>
    %179 = vector.extract_strided_slice %176 {offsets = [0, 0], sizes = [8, 64], strides = [1, 1]} : vector<8x256xf32> to vector<8x64xf32>
    %180 = vector.extract_strided_slice %176 {offsets = [0, 128], sizes = [8, 64], strides = [1, 1]} : vector<8x256xf32> to vector<8x64xf32>
    %181 = arith.mulf %179, %180 : vector<8x64xf32>
    %182 = arith.addf %178, %181 : vector<8x64xf32>
    %183 = vector.extract_strided_slice %176 {offsets = [0, 192], sizes = [8, 64], strides = [1, 1]} : vector<8x256xf32> to vector<8x64xf32>
    %184 = math.tanh %182 : vector<8x64xf32>
    %185 = arith.mulf %183, %184 : vector<8x64xf32>
    %186 = vector.extract_strided_slice %185 {offsets = [0, 0], sizes = [8, 32], strides = [1, 1]} : vector<8x64xf32> to vector<8x32xf32>
    %c40_108 = arith.constant 40 : index
    %c0_109 = arith.constant 0 : index
    %187 = vector.load %arg17[%c40_108, %c0_109] : memref<64x64xf32, #tpu.memory_space<vmem>>, vector<8x32xf32>
    tpu.vector_store %arg17[%c40_108, %c0_109], %186 {strides = array<i32>} : memref<64x64xf32, #tpu.memory_space<vmem>>, vector<8x32xf32>,
    %188 = vector.extract_strided_slice %185 {offsets = [0, 32], sizes = [8, 32], strides = [1, 1]} : vector<8x64xf32> to vector<8x32xf32>
    %c16_110 = arith.constant 16 : index
    %c32_111 = arith.constant 32 : index
    %189 = vector.load %arg17[%c16_110, %c32_111] : memref<64x64xf32, #tpu.memory_space<vmem>>, vector<8x32xf32>
    tpu.vector_store %arg17[%c16_110, %c32_111], %188 {strides = array<i32>} : memref<64x64xf32, #tpu.memory_space<vmem>>, vector<8x32xf32>,
    %190 = arith.truncf %185 : vector<8x64xf32> to vector<8x64xbf16>
    %cst_112 = arith.constant dense<0.000000e+00> : vector<8x256xf32>
    %191 = tpu.matmul %190, %49, %cst_112 {dimension_numbers = #tpu.dot_dimension_numbers<[1], [0], [0], [1], [0, 0, 1, 1], [], []>} : vector<8x64xbf16>, vector<64x256xbf16>, vector<8x256xf32> -> vector<8x256xf32>
    %c48_113 = arith.constant 48 : index
    %c0_114 = arith.constant 0 : index
    %192 = vector.load %arg15[%c48_113, %c0_114] : memref<64x256xf32, #tpu.memory_space<vmem>>, vector<8x256xf32>
    %193 = arith.addf %191, %192 : vector<8x256xf32>
    %194 = math.tanh %193 : vector<8x256xf32>
    %cst_115 = arith.constant 5.000000e-01 : f32
    %195 = vector.broadcast %cst_115 : f32 to vector<8x256xf32>
    %196 = arith.mulf %195, %194 : vector<8x256xf32>
    %cst_116 = arith.constant 5.000000e-01 : f32
    %197 = vector.broadcast %cst_116 : f32 to vector<8x256xf32>
    %198 = arith.addf %196, %197 : vector<8x256xf32>
    %199 = arith.select %5, %194, %198 : vector<8x256xi1>, vector<8x256xf32>
    %200 = vector.extract_strided_slice %199 {offsets = [0, 64], sizes = [8, 64], strides = [1, 1]} : vector<8x256xf32> to vector<8x64xf32>
    %201 = arith.mulf %200, %182 : vector<8x64xf32>
    %202 = vector.extract_strided_slice %199 {offsets = [0, 0], sizes = [8, 64], strides = [1, 1]} : vector<8x256xf32> to vector<8x64xf32>
    %203 = vector.extract_strided_slice %199 {offsets = [0, 128], sizes = [8, 64], strides = [1, 1]} : vector<8x256xf32> to vector<8x64xf32>
    %204 = arith.mulf %202, %203 : vector<8x64xf32>
    %205 = arith.addf %201, %204 : vector<8x64xf32>
    %206 = vector.extract_strided_slice %199 {offsets = [0, 192], sizes = [8, 64], strides = [1, 1]} : vector<8x256xf32> to vector<8x64xf32>
    %207 = math.tanh %205 : vector<8x64xf32>
    %208 = arith.mulf %206, %207 : vector<8x64xf32>
    %209 = vector.extract_strided_slice %208 {offsets = [0, 0], sizes = [8, 32], strides = [1, 1]} : vector<8x64xf32> to vector<8x32xf32>
    %c48_117 = arith.constant 48 : index
    %c0_118 = arith.constant 0 : index
    %210 = vector.load %arg17[%c48_117, %c0_118] : memref<64x64xf32, #tpu.memory_space<vmem>>, vector<8x32xf32>
    tpu.vector_store %arg17[%c48_117, %c0_118], %209 {strides = array<i32>} : memref<64x64xf32, #tpu.memory_space<vmem>>, vector<8x32xf32>,
    %211 = vector.extract_strided_slice %208 {offsets = [0, 32], sizes = [8, 32], strides = [1, 1]} : vector<8x64xf32> to vector<8x32xf32>
    %c8_119 = arith.constant 8 : index
    %c32_120 = arith.constant 32 : index
    %212 = vector.load %arg17[%c8_119, %c32_120] : memref<64x64xf32, #tpu.memory_space<vmem>>, vector<8x32xf32>
    tpu.vector_store %arg17[%c8_119, %c32_120], %211 {strides = array<i32>} : memref<64x64xf32, #tpu.memory_space<vmem>>, vector<8x32xf32>,
    %213 = arith.truncf %208 : vector<8x64xf32> to vector<8x64xbf16>
    %cst_121 = arith.constant dense<0.000000e+00> : vector<8x256xf32>
    %214 = tpu.matmul %213, %49, %cst_121 {dimension_numbers = #tpu.dot_dimension_numbers<[1], [0], [0], [1], [0, 0, 1, 1], [], []>} : vector<8x64xbf16>, vector<64x256xbf16>, vector<8x256xf32> -> vector<8x256xf32>
    %c56_122 = arith.constant 56 : index
    %c0_123 = arith.constant 0 : index
    %215 = vector.load %arg15[%c56_122, %c0_123] : memref<64x256xf32, #tpu.memory_space<vmem>>, vector<8x256xf32>
    %216 = arith.addf %214, %215 : vector<8x256xf32>
    %217 = math.tanh %216 : vector<8x256xf32>
    %cst_124 = arith.constant 5.000000e-01 : f32
    %218 = vector.broadcast %cst_124 : f32 to vector<8x256xf32>
    %219 = arith.mulf %218, %217 : vector<8x256xf32>
    %cst_125 = arith.constant 5.000000e-01 : f32
    %220 = vector.broadcast %cst_125 : f32 to vector<8x256xf32>
    %221 = arith.addf %219, %220 : vector<8x256xf32>
    %222 = arith.select %5, %217, %221 : vector<8x256xi1>, vector<8x256xf32>
    %223 = vector.extract_strided_slice %222 {offsets = [0, 64], sizes = [8, 64], strides = [1, 1]} : vector<8x256xf32> to vector<8x64xf32>
    %224 = arith.mulf %223, %205 : vector<8x64xf32>
    %225 = vector.extract_strided_slice %222 {offsets = [0, 0], sizes = [8, 64], strides = [1, 1]} : vector<8x256xf32> to vector<8x64xf32>
    %226 = vector.extract_strided_slice %222 {offsets = [0, 128], sizes = [8, 64], strides = [1, 1]} : vector<8x256xf32> to vector<8x64xf32>
    %227 = arith.mulf %225, %226 : vector<8x64xf32>
    %228 = arith.addf %224, %227 : vector<8x64xf32>
    %229 = vector.extract_strided_slice %222 {offsets = [0, 192], sizes = [8, 64], strides = [1, 1]} : vector<8x256xf32> to vector<8x64xf32>
    %230 = math.tanh %228 : vector<8x64xf32>
    %231 = arith.mulf %229, %230 : vector<8x64xf32>
    %232 = vector.extract_strided_slice %231 {offsets = [0, 0], sizes = [8, 32], strides = [1, 1]} : vector<8x64xf32> to vector<8x32xf32>
    %c56_126 = arith.constant 56 : index
    %c0_127 = arith.constant 0 : index
    %233 = vector.load %arg17[%c56_126, %c0_127] : memref<64x64xf32, #tpu.memory_space<vmem>>, vector<8x32xf32>
    tpu.vector_store %arg17[%c56_126, %c0_127], %232 {strides = array<i32>} : memref<64x64xf32, #tpu.memory_space<vmem>>, vector<8x32xf32>,
    %234 = vector.extract_strided_slice %231 {offsets = [0, 32], sizes = [8, 32], strides = [1, 1]} : vector<8x64xf32> to vector<8x32xf32>
    %c0_128 = arith.constant 0 : index
    %c32_129 = arith.constant 32 : index
    %235 = vector.load %arg17[%c0_128, %c32_129] : memref<64x64xf32, #tpu.memory_space<vmem>>, vector<8x32xf32>
    tpu.vector_store %arg17[%c0_128, %c32_129], %234 {strides = array<i32>} : memref<64x64xf32, #tpu.memory_space<vmem>>, vector<8x32xf32>,
    %c0_130 = arith.constant 0 : index
    %c0_131 = arith.constant 0 : index
    %236 = vector.load %arg17[%c0_130, %c0_131] : memref<64x64xf32, #tpu.memory_space<vmem>>, vector<64x64xf32>
    %237 = arith.truncf %236 : vector<64x64xf32> to vector<64x64xbf16>
    %c0_132 = arith.constant 0 : index
    %c0_133 = arith.constant 0 : index
    %238 = vector.load %arg6[%c0_132, %c0_133] : memref<64x256xbf16, #tpu.memory_space<vmem>>, vector<64x256xbf16>
    %cst_134 = arith.constant dense<0.000000e+00> : vector<64x256xf32>
    %239 = tpu.matmul %237, %238, %cst_134 {dimension_numbers = #tpu.dot_dimension_numbers<[1], [0], [0], [1], [0, 0, 1, 1], [], []>} : vector<64x64xbf16>, vector<64x256xbf16>, vector<64x256xf32> -> vector<64x256xf32>
    %c0_135 = arith.constant 0 : index
    %c0_136 = arith.constant 0 : index
    %240 = vector.load %arg9[%c0_135, %c0_136] : memref<1x256xf32, #tpu.memory_space<vmem>>, vector<1x256xf32>
    %241 = vector.broadcast %240 : vector<1x256xf32> to vector<64x256xf32>
    %242 = arith.addf %239, %241 : vector<64x256xf32>
    %c0_137 = arith.constant 0 : index
    %c0_138 = arith.constant 0 : index
    %243 = vector.load %arg15[%c0_137, %c0_138] : memref<64x256xf32, #tpu.memory_space<vmem>>, vector<64x256xf32>
    tpu.vector_store %arg15[%c0_137, %c0_138], %242 {strides = array<i32>} : memref<64x256xf32, #tpu.memory_space<vmem>>, vector<64x256xf32>,
    %c0_139 = arith.constant 0 : index
    %c0_140 = arith.constant 0 : index
    %244 = vector.load %arg7[%c0_139, %c0_140] : memref<64x256xbf16, #tpu.memory_space<vmem>>, vector<64x256xbf16>
    %cst_141 = arith.constant dense<0.000000e+00> : vector<64x256xf32>
    %245 = tpu.matmul %237, %244, %cst_141 {dimension_numbers = #tpu.dot_dimension_numbers<[1], [0], [0], [1], [0, 0, 1, 1], [], []>} : vector<64x64xbf16>, vector<64x256xbf16>, vector<64x256xf32> -> vector<64x256xf32>
    %c0_142 = arith.constant 0 : index
    %c0_143 = arith.constant 0 : index
    %246 = vector.load %arg16[%c0_142, %c0_143] : memref<64x256xf32, #tpu.memory_space<vmem>>, vector<64x256xf32>
    tpu.vector_store %arg16[%c0_142, %c0_143], %245 {strides = array<i32>} : memref<64x256xf32, #tpu.memory_space<vmem>>, vector<64x256xf32>,
    %c0_144 = arith.constant 0 : index
    %c0_145 = arith.constant 0 : index
    %247 = vector.load %arg15[%c0_144, %c0_145] : memref<64x256xf32, #tpu.memory_space<vmem>>, vector<8x256xf32>
    %c56_146 = arith.constant 56 : index
    %c0_147 = arith.constant 0 : index
    %248 = vector.load %arg16[%c56_146, %c0_147] : memref<64x256xf32, #tpu.memory_space<vmem>>, vector<8x256xf32>
    %249 = arith.addf %247, %248 : vector<8x256xf32>
    %c0_148 = arith.constant 0 : index
    %c0_149 = arith.constant 0 : index
    %250 = vector.load %arg15[%c0_148, %c0_149] : memref<64x256xf32, #tpu.memory_space<vmem>>, vector<8x256xf32>
    tpu.vector_store %arg15[%c0_148, %c0_149], %249 {strides = array<i32>} : memref<64x256xf32, #tpu.memory_space<vmem>>, vector<8x256xf32>,
    %c8_150 = arith.constant 8 : index
    %c0_151 = arith.constant 0 : index
    %251 = vector.load %arg15[%c8_150, %c0_151] : memref<64x256xf32, #tpu.memory_space<vmem>>, vector<8x256xf32>
    %c48_152 = arith.constant 48 : index
    %c0_153 = arith.constant 0 : index
    %252 = vector.load %arg16[%c48_152, %c0_153] : memref<64x256xf32, #tpu.memory_space<vmem>>, vector<8x256xf32>
    %253 = arith.addf %251, %252 : vector<8x256xf32>
    %c8_154 = arith.constant 8 : index
    %c0_155 = arith.constant 0 : index
    %254 = vector.load %arg15[%c8_154, %c0_155] : memref<64x256xf32, #tpu.memory_space<vmem>>, vector<8x256xf32>
    tpu.vector_store %arg15[%c8_154, %c0_155], %253 {strides = array<i32>} : memref<64x256xf32, #tpu.memory_space<vmem>>, vector<8x256xf32>,
    %c16_156 = arith.constant 16 : index
    %c0_157 = arith.constant 0 : index
    %255 = vector.load %arg15[%c16_156, %c0_157] : memref<64x256xf32, #tpu.memory_space<vmem>>, vector<8x256xf32>
    %c40_158 = arith.constant 40 : index
    %c0_159 = arith.constant 0 : index
    %256 = vector.load %arg16[%c40_158, %c0_159] : memref<64x256xf32, #tpu.memory_space<vmem>>, vector<8x256xf32>
    %257 = arith.addf %255, %256 : vector<8x256xf32>
    %c16_160 = arith.constant 16 : index
    %c0_161 = arith.constant 0 : index
    %258 = vector.load %arg15[%c16_160, %c0_161] : memref<64x256xf32, #tpu.memory_space<vmem>>, vector<8x256xf32>
    tpu.vector_store %arg15[%c16_160, %c0_161], %257 {strides = array<i32>} : memref<64x256xf32, #tpu.memory_space<vmem>>, vector<8x256xf32>,
    %c24_162 = arith.constant 24 : index
    %c0_163 = arith.constant 0 : index
    %259 = vector.load %arg15[%c24_162, %c0_163] : memref<64x256xf32, #tpu.memory_space<vmem>>, vector<8x256xf32>
    %c32_164 = arith.constant 32 : index
    %c0_165 = arith.constant 0 : index
    %260 = vector.load %arg16[%c32_164, %c0_165] : memref<64x256xf32, #tpu.memory_space<vmem>>, vector<8x256xf32>
    %261 = arith.addf %259, %260 : vector<8x256xf32>
    %c24_166 = arith.constant 24 : index
    %c0_167 = arith.constant 0 : index
    %262 = vector.load %arg15[%c24_166, %c0_167] : memref<64x256xf32, #tpu.memory_space<vmem>>, vector<8x256xf32>
    tpu.vector_store %arg15[%c24_166, %c0_167], %261 {strides = array<i32>} : memref<64x256xf32, #tpu.memory_space<vmem>>, vector<8x256xf32>,
    %c32_168 = arith.constant 32 : index
    %c0_169 = arith.constant 0 : index
    %263 = vector.load %arg15[%c32_168, %c0_169] : memref<64x256xf32, #tpu.memory_space<vmem>>, vector<8x256xf32>
    %c24_170 = arith.constant 24 : index
    %c0_171 = arith.constant 0 : index
    %264 = vector.load %arg16[%c24_170, %c0_171] : memref<64x256xf32, #tpu.memory_space<vmem>>, vector<8x256xf32>
    %265 = arith.addf %263, %264 : vector<8x256xf32>
    %c32_172 = arith.constant 32 : index
    %c0_173 = arith.constant 0 : index
    %266 = vector.load %arg15[%c32_172, %c0_173] : memref<64x256xf32, #tpu.memory_space<vmem>>, vector<8x256xf32>
    tpu.vector_store %arg15[%c32_172, %c0_173], %265 {strides = array<i32>} : memref<64x256xf32, #tpu.memory_space<vmem>>, vector<8x256xf32>,
    %c40_174 = arith.constant 40 : index
    %c0_175 = arith.constant 0 : index
    %267 = vector.load %arg15[%c40_174, %c0_175] : memref<64x256xf32, #tpu.memory_space<vmem>>, vector<8x256xf32>
    %c16_176 = arith.constant 16 : index
    %c0_177 = arith.constant 0 : index
    %268 = vector.load %arg16[%c16_176, %c0_177] : memref<64x256xf32, #tpu.memory_space<vmem>>, vector<8x256xf32>
    %269 = arith.addf %267, %268 : vector<8x256xf32>
    %c40_178 = arith.constant 40 : index
    %c0_179 = arith.constant 0 : index
    %270 = vector.load %arg15[%c40_178, %c0_179] : memref<64x256xf32, #tpu.memory_space<vmem>>, vector<8x256xf32>
    tpu.vector_store %arg15[%c40_178, %c0_179], %269 {strides = array<i32>} : memref<64x256xf32, #tpu.memory_space<vmem>>, vector<8x256xf32>,
    %c48_180 = arith.constant 48 : index
    %c0_181 = arith.constant 0 : index
    %271 = vector.load %arg15[%c48_180, %c0_181] : memref<64x256xf32, #tpu.memory_space<vmem>>, vector<8x256xf32>
    %c8_182 = arith.constant 8 : index
    %c0_183 = arith.constant 0 : index
    %272 = vector.load %arg16[%c8_182, %c0_183] : memref<64x256xf32, #tpu.memory_space<vmem>>, vector<8x256xf32>
    %273 = arith.addf %271, %272 : vector<8x256xf32>
    %c48_184 = arith.constant 48 : index
    %c0_185 = arith.constant 0 : index
    %274 = vector.load %arg15[%c48_184, %c0_185] : memref<64x256xf32, #tpu.memory_space<vmem>>, vector<8x256xf32>
    tpu.vector_store %arg15[%c48_184, %c0_185], %273 {strides = array<i32>} : memref<64x256xf32, #tpu.memory_space<vmem>>, vector<8x256xf32>,
    %c56_186 = arith.constant 56 : index
    %c0_187 = arith.constant 0 : index
    %275 = vector.load %arg15[%c56_186, %c0_187] : memref<64x256xf32, #tpu.memory_space<vmem>>, vector<8x256xf32>
    %c0_188 = arith.constant 0 : index
    %c0_189 = arith.constant 0 : index
    %276 = vector.load %arg16[%c0_188, %c0_189] : memref<64x256xf32, #tpu.memory_space<vmem>>, vector<8x256xf32>
    %277 = arith.addf %275, %276 : vector<8x256xf32>
    %c56_190 = arith.constant 56 : index
    %c0_191 = arith.constant 0 : index
    %278 = vector.load %arg15[%c56_190, %c0_191] : memref<64x256xf32, #tpu.memory_space<vmem>>, vector<8x256xf32>
    tpu.vector_store %arg15[%c56_190, %c0_191], %277 {strides = array<i32>} : memref<64x256xf32, #tpu.memory_space<vmem>>, vector<8x256xf32>,
    %c0_192 = arith.constant 0 : index
    %c0_193 = arith.constant 0 : index
    %279 = vector.load %arg8[%c0_192, %c0_193] : memref<64x256xbf16, #tpu.memory_space<vmem>>, vector<64x256xbf16>
    %cst_194 = arith.constant 0.000000e+00 : f32
    %280 = vector.broadcast %cst_194 : f32 to vector<8x64xf32>
    %cst_195 = arith.constant 0.000000e+00 : f32
    %281 = vector.broadcast %cst_195 : f32 to vector<8x64xf32>
    %282 = arith.truncf %280 : vector<8x64xf32> to vector<8x64xbf16>
    %cst_196 = arith.constant dense<0.000000e+00> : vector<8x256xf32>
    %283 = tpu.matmul %282, %279, %cst_196 {dimension_numbers = #tpu.dot_dimension_numbers<[1], [0], [0], [1], [0, 0, 1, 1], [], []>} : vector<8x64xbf16>, vector<64x256xbf16>, vector<8x256xf32> -> vector<8x256xf32>
    %c0_197 = arith.constant 0 : index
    %c0_198 = arith.constant 0 : index
    %284 = vector.load %arg15[%c0_197, %c0_198] : memref<64x256xf32, #tpu.memory_space<vmem>>, vector<8x256xf32>
    %285 = arith.addf %283, %284 : vector<8x256xf32>
    %286 = math.tanh %285 : vector<8x256xf32>
    %cst_199 = arith.constant 5.000000e-01 : f32
    %287 = vector.broadcast %cst_199 : f32 to vector<8x256xf32>
    %288 = arith.mulf %287, %286 : vector<8x256xf32>
    %cst_200 = arith.constant 5.000000e-01 : f32
    %289 = vector.broadcast %cst_200 : f32 to vector<8x256xf32>
    %290 = arith.addf %288, %289 : vector<8x256xf32>
    %291 = arith.select %5, %286, %290 : vector<8x256xi1>, vector<8x256xf32>
    %292 = vector.extract_strided_slice %291 {offsets = [0, 64], sizes = [8, 64], strides = [1, 1]} : vector<8x256xf32> to vector<8x64xf32>
    %293 = arith.mulf %292, %281 : vector<8x64xf32>
    %294 = vector.extract_strided_slice %291 {offsets = [0, 0], sizes = [8, 64], strides = [1, 1]} : vector<8x256xf32> to vector<8x64xf32>
    %295 = vector.extract_strided_slice %291 {offsets = [0, 128], sizes = [8, 64], strides = [1, 1]} : vector<8x256xf32> to vector<8x64xf32>
    %296 = arith.mulf %294, %295 : vector<8x64xf32>
    %297 = arith.addf %293, %296 : vector<8x64xf32>
    %298 = vector.extract_strided_slice %291 {offsets = [0, 192], sizes = [8, 64], strides = [1, 1]} : vector<8x256xf32> to vector<8x64xf32>
    %299 = math.tanh %297 : vector<8x64xf32>
    %300 = arith.mulf %298, %299 : vector<8x64xf32>
    %301 = vector.extract_strided_slice %300 {offsets = [0, 0], sizes = [8, 32], strides = [1, 1]} : vector<8x64xf32> to vector<8x32xf32>
    %c0_201 = arith.constant 0 : index
    %c0_202 = arith.constant 0 : index
    %302 = vector.load %arg18[%c0_201, %c0_202] : memref<64x64xf32, #tpu.memory_space<vmem>>, vector<8x32xf32>
    tpu.vector_store %arg18[%c0_201, %c0_202], %301 {strides = array<i32>} : memref<64x64xf32, #tpu.memory_space<vmem>>, vector<8x32xf32>,
    %303 = vector.extract_strided_slice %300 {offsets = [0, 32], sizes = [8, 32], strides = [1, 1]} : vector<8x64xf32> to vector<8x32xf32>
    %c56_203 = arith.constant 56 : index
    %c32_204 = arith.constant 32 : index
    %304 = vector.load %arg18[%c56_203, %c32_204] : memref<64x64xf32, #tpu.memory_space<vmem>>, vector<8x32xf32>
    tpu.vector_store %arg18[%c56_203, %c32_204], %303 {strides = array<i32>} : memref<64x64xf32, #tpu.memory_space<vmem>>, vector<8x32xf32>,
    %305 = arith.truncf %300 : vector<8x64xf32> to vector<8x64xbf16>
    %cst_205 = arith.constant dense<0.000000e+00> : vector<8x256xf32>
    %306 = tpu.matmul %305, %279, %cst_205 {dimension_numbers = #tpu.dot_dimension_numbers<[1], [0], [0], [1], [0, 0, 1, 1], [], []>} : vector<8x64xbf16>, vector<64x256xbf16>, vector<8x256xf32> -> vector<8x256xf32>
    %c8_206 = arith.constant 8 : index
    %c0_207 = arith.constant 0 : index
    %307 = vector.load %arg15[%c8_206, %c0_207] : memref<64x256xf32, #tpu.memory_space<vmem>>, vector<8x256xf32>
    %308 = arith.addf %306, %307 : vector<8x256xf32>
    %309 = math.tanh %308 : vector<8x256xf32>
    %cst_208 = arith.constant 5.000000e-01 : f32
    %310 = vector.broadcast %cst_208 : f32 to vector<8x256xf32>
    %311 = arith.mulf %310, %309 : vector<8x256xf32>
    %cst_209 = arith.constant 5.000000e-01 : f32
    %312 = vector.broadcast %cst_209 : f32 to vector<8x256xf32>
    %313 = arith.addf %311, %312 : vector<8x256xf32>
    %314 = arith.select %5, %309, %313 : vector<8x256xi1>, vector<8x256xf32>
    %315 = vector.extract_strided_slice %314 {offsets = [0, 64], sizes = [8, 64], strides = [1, 1]} : vector<8x256xf32> to vector<8x64xf32>
    %316 = arith.mulf %315, %297 : vector<8x64xf32>
    %317 = vector.extract_strided_slice %314 {offsets = [0, 0], sizes = [8, 64], strides = [1, 1]} : vector<8x256xf32> to vector<8x64xf32>
    %318 = vector.extract_strided_slice %314 {offsets = [0, 128], sizes = [8, 64], strides = [1, 1]} : vector<8x256xf32> to vector<8x64xf32>
    %319 = arith.mulf %317, %318 : vector<8x64xf32>
    %320 = arith.addf %316, %319 : vector<8x64xf32>
    %321 = vector.extract_strided_slice %314 {offsets = [0, 192], sizes = [8, 64], strides = [1, 1]} : vector<8x256xf32> to vector<8x64xf32>
    %322 = math.tanh %320 : vector<8x64xf32>
    %323 = arith.mulf %321, %322 : vector<8x64xf32>
    %324 = vector.extract_strided_slice %323 {offsets = [0, 0], sizes = [8, 32], strides = [1, 1]} : vector<8x64xf32> to vector<8x32xf32>
    %c8_210 = arith.constant 8 : index
    %c0_211 = arith.constant 0 : index
    %325 = vector.load %arg18[%c8_210, %c0_211] : memref<64x64xf32, #tpu.memory_space<vmem>>, vector<8x32xf32>
    tpu.vector_store %arg18[%c8_210, %c0_211], %324 {strides = array<i32>} : memref<64x64xf32, #tpu.memory_space<vmem>>, vector<8x32xf32>,
    %326 = vector.extract_strided_slice %323 {offsets = [0, 32], sizes = [8, 32], strides = [1, 1]} : vector<8x64xf32> to vector<8x32xf32>
    %c48_212 = arith.constant 48 : index
    %c32_213 = arith.constant 32 : index
    %327 = vector.load %arg18[%c48_212, %c32_213] : memref<64x64xf32, #tpu.memory_space<vmem>>, vector<8x32xf32>
    tpu.vector_store %arg18[%c48_212, %c32_213], %326 {strides = array<i32>} : memref<64x64xf32, #tpu.memory_space<vmem>>, vector<8x32xf32>,
    %328 = arith.truncf %323 : vector<8x64xf32> to vector<8x64xbf16>
    %cst_214 = arith.constant dense<0.000000e+00> : vector<8x256xf32>
    %329 = tpu.matmul %328, %279, %cst_214 {dimension_numbers = #tpu.dot_dimension_numbers<[1], [0], [0], [1], [0, 0, 1, 1], [], []>} : vector<8x64xbf16>, vector<64x256xbf16>, vector<8x256xf32> -> vector<8x256xf32>
    %c16_215 = arith.constant 16 : index
    %c0_216 = arith.constant 0 : index
    %330 = vector.load %arg15[%c16_215, %c0_216] : memref<64x256xf32, #tpu.memory_space<vmem>>, vector<8x256xf32>
    %331 = arith.addf %329, %330 : vector<8x256xf32>
    %332 = math.tanh %331 : vector<8x256xf32>
    %cst_217 = arith.constant 5.000000e-01 : f32
    %333 = vector.broadcast %cst_217 : f32 to vector<8x256xf32>
    %334 = arith.mulf %333, %332 : vector<8x256xf32>
    %cst_218 = arith.constant 5.000000e-01 : f32
    %335 = vector.broadcast %cst_218 : f32 to vector<8x256xf32>
    %336 = arith.addf %334, %335 : vector<8x256xf32>
    %337 = arith.select %5, %332, %336 : vector<8x256xi1>, vector<8x256xf32>
    %338 = vector.extract_strided_slice %337 {offsets = [0, 64], sizes = [8, 64], strides = [1, 1]} : vector<8x256xf32> to vector<8x64xf32>
    %339 = arith.mulf %338, %320 : vector<8x64xf32>
    %340 = vector.extract_strided_slice %337 {offsets = [0, 0], sizes = [8, 64], strides = [1, 1]} : vector<8x256xf32> to vector<8x64xf32>
    %341 = vector.extract_strided_slice %337 {offsets = [0, 128], sizes = [8, 64], strides = [1, 1]} : vector<8x256xf32> to vector<8x64xf32>
    %342 = arith.mulf %340, %341 : vector<8x64xf32>
    %343 = arith.addf %339, %342 : vector<8x64xf32>
    %344 = vector.extract_strided_slice %337 {offsets = [0, 192], sizes = [8, 64], strides = [1, 1]} : vector<8x256xf32> to vector<8x64xf32>
    %345 = math.tanh %343 : vector<8x64xf32>
    %346 = arith.mulf %344, %345 : vector<8x64xf32>
    %347 = vector.extract_strided_slice %346 {offsets = [0, 0], sizes = [8, 32], strides = [1, 1]} : vector<8x64xf32> to vector<8x32xf32>
    %c16_219 = arith.constant 16 : index
    %c0_220 = arith.constant 0 : index
    %348 = vector.load %arg18[%c16_219, %c0_220] : memref<64x64xf32, #tpu.memory_space<vmem>>, vector<8x32xf32>
    tpu.vector_store %arg18[%c16_219, %c0_220], %347 {strides = array<i32>} : memref<64x64xf32, #tpu.memory_space<vmem>>, vector<8x32xf32>,
    %349 = vector.extract_strided_slice %346 {offsets = [0, 32], sizes = [8, 32], strides = [1, 1]} : vector<8x64xf32> to vector<8x32xf32>
    %c40_221 = arith.constant 40 : index
    %c32_222 = arith.constant 32 : index
    %350 = vector.load %arg18[%c40_221, %c32_222] : memref<64x64xf32, #tpu.memory_space<vmem>>, vector<8x32xf32>
    tpu.vector_store %arg18[%c40_221, %c32_222], %349 {strides = array<i32>} : memref<64x64xf32, #tpu.memory_space<vmem>>, vector<8x32xf32>,
    %351 = arith.truncf %346 : vector<8x64xf32> to vector<8x64xbf16>
    %cst_223 = arith.constant dense<0.000000e+00> : vector<8x256xf32>
    %352 = tpu.matmul %351, %279, %cst_223 {dimension_numbers = #tpu.dot_dimension_numbers<[1], [0], [0], [1], [0, 0, 1, 1], [], []>} : vector<8x64xbf16>, vector<64x256xbf16>, vector<8x256xf32> -> vector<8x256xf32>
    %c24_224 = arith.constant 24 : index
    %c0_225 = arith.constant 0 : index
    %353 = vector.load %arg15[%c24_224, %c0_225] : memref<64x256xf32, #tpu.memory_space<vmem>>, vector<8x256xf32>
    %354 = arith.addf %352, %353 : vector<8x256xf32>
    %355 = math.tanh %354 : vector<8x256xf32>
    %cst_226 = arith.constant 5.000000e-01 : f32
    %356 = vector.broadcast %cst_226 : f32 to vector<8x256xf32>
    %357 = arith.mulf %356, %355 : vector<8x256xf32>
    %cst_227 = arith.constant 5.000000e-01 : f32
    %358 = vector.broadcast %cst_227 : f32 to vector<8x256xf32>
    %359 = arith.addf %357, %358 : vector<8x256xf32>
    %360 = arith.select %5, %355, %359 : vector<8x256xi1>, vector<8x256xf32>
    %361 = vector.extract_strided_slice %360 {offsets = [0, 64], sizes = [8, 64], strides = [1, 1]} : vector<8x256xf32> to vector<8x64xf32>
    %362 = arith.mulf %361, %343 : vector<8x64xf32>
    %363 = vector.extract_strided_slice %360 {offsets = [0, 0], sizes = [8, 64], strides = [1, 1]} : vector<8x256xf32> to vector<8x64xf32>
    %364 = vector.extract_strided_slice %360 {offsets = [0, 128], sizes = [8, 64], strides = [1, 1]} : vector<8x256xf32> to vector<8x64xf32>
    %365 = arith.mulf %363, %364 : vector<8x64xf32>
    %366 = arith.addf %362, %365 : vector<8x64xf32>
    %367 = vector.extract_strided_slice %360 {offsets = [0, 192], sizes = [8, 64], strides = [1, 1]} : vector<8x256xf32> to vector<8x64xf32>
    %368 = math.tanh %366 : vector<8x64xf32>
    %369 = arith.mulf %367, %368 : vector<8x64xf32>
    %370 = vector.extract_strided_slice %369 {offsets = [0, 0], sizes = [8, 32], strides = [1, 1]} : vector<8x64xf32> to vector<8x32xf32>
    %c24_228 = arith.constant 24 : index
    %c0_229 = arith.constant 0 : index
    %371 = vector.load %arg18[%c24_228, %c0_229] : memref<64x64xf32, #tpu.memory_space<vmem>>, vector<8x32xf32>
    tpu.vector_store %arg18[%c24_228, %c0_229], %370 {strides = array<i32>} : memref<64x64xf32, #tpu.memory_space<vmem>>, vector<8x32xf32>,
    %372 = vector.extract_strided_slice %369 {offsets = [0, 32], sizes = [8, 32], strides = [1, 1]} : vector<8x64xf32> to vector<8x32xf32>
    %c32_230 = arith.constant 32 : index
    %c32_231 = arith.constant 32 : index
    %373 = vector.load %arg18[%c32_230, %c32_231] : memref<64x64xf32, #tpu.memory_space<vmem>>, vector<8x32xf32>
    tpu.vector_store %arg18[%c32_230, %c32_231], %372 {strides = array<i32>} : memref<64x64xf32, #tpu.memory_space<vmem>>, vector<8x32xf32>,
    %374 = arith.truncf %369 : vector<8x64xf32> to vector<8x64xbf16>
    %cst_232 = arith.constant dense<0.000000e+00> : vector<8x256xf32>
    %375 = tpu.matmul %374, %279, %cst_232 {dimension_numbers = #tpu.dot_dimension_numbers<[1], [0], [0], [1], [0, 0, 1, 1], [], []>} : vector<8x64xbf16>, vector<64x256xbf16>, vector<8x256xf32> -> vector<8x256xf32>
    %c32_233 = arith.constant 32 : index
    %c0_234 = arith.constant 0 : index
    %376 = vector.load %arg15[%c32_233, %c0_234] : memref<64x256xf32, #tpu.memory_space<vmem>>, vector<8x256xf32>
    %377 = arith.addf %375, %376 : vector<8x256xf32>
    %378 = math.tanh %377 : vector<8x256xf32>
    %cst_235 = arith.constant 5.000000e-01 : f32
    %379 = vector.broadcast %cst_235 : f32 to vector<8x256xf32>
    %380 = arith.mulf %379, %378 : vector<8x256xf32>
    %cst_236 = arith.constant 5.000000e-01 : f32
    %381 = vector.broadcast %cst_236 : f32 to vector<8x256xf32>
    %382 = arith.addf %380, %381 : vector<8x256xf32>
    %383 = arith.select %5, %378, %382 : vector<8x256xi1>, vector<8x256xf32>
    %384 = vector.extract_strided_slice %383 {offsets = [0, 64], sizes = [8, 64], strides = [1, 1]} : vector<8x256xf32> to vector<8x64xf32>
    %385 = arith.mulf %384, %366 : vector<8x64xf32>
    %386 = vector.extract_strided_slice %383 {offsets = [0, 0], sizes = [8, 64], strides = [1, 1]} : vector<8x256xf32> to vector<8x64xf32>
    %387 = vector.extract_strided_slice %383 {offsets = [0, 128], sizes = [8, 64], strides = [1, 1]} : vector<8x256xf32> to vector<8x64xf32>
    %388 = arith.mulf %386, %387 : vector<8x64xf32>
    %389 = arith.addf %385, %388 : vector<8x64xf32>
    %390 = vector.extract_strided_slice %383 {offsets = [0, 192], sizes = [8, 64], strides = [1, 1]} : vector<8x256xf32> to vector<8x64xf32>
    %391 = math.tanh %389 : vector<8x64xf32>
    %392 = arith.mulf %390, %391 : vector<8x64xf32>
    %393 = vector.extract_strided_slice %392 {offsets = [0, 0], sizes = [8, 32], strides = [1, 1]} : vector<8x64xf32> to vector<8x32xf32>
    %c32_237 = arith.constant 32 : index
    %c0_238 = arith.constant 0 : index
    %394 = vector.load %arg18[%c32_237, %c0_238] : memref<64x64xf32, #tpu.memory_space<vmem>>, vector<8x32xf32>
    tpu.vector_store %arg18[%c32_237, %c0_238], %393 {strides = array<i32>} : memref<64x64xf32, #tpu.memory_space<vmem>>, vector<8x32xf32>,
    %395 = vector.extract_strided_slice %392 {offsets = [0, 32], sizes = [8, 32], strides = [1, 1]} : vector<8x64xf32> to vector<8x32xf32>
    %c24_239 = arith.constant 24 : index
    %c32_240 = arith.constant 32 : index
    %396 = vector.load %arg18[%c24_239, %c32_240] : memref<64x64xf32, #tpu.memory_space<vmem>>, vector<8x32xf32>
    tpu.vector_store %arg18[%c24_239, %c32_240], %395 {strides = array<i32>} : memref<64x64xf32, #tpu.memory_space<vmem>>, vector<8x32xf32>,
    %397 = arith.truncf %392 : vector<8x64xf32> to vector<8x64xbf16>
    %cst_241 = arith.constant dense<0.000000e+00> : vector<8x256xf32>
    %398 = tpu.matmul %397, %279, %cst_241 {dimension_numbers = #tpu.dot_dimension_numbers<[1], [0], [0], [1], [0, 0, 1, 1], [], []>} : vector<8x64xbf16>, vector<64x256xbf16>, vector<8x256xf32> -> vector<8x256xf32>
    %c40_242 = arith.constant 40 : index
    %c0_243 = arith.constant 0 : index
    %399 = vector.load %arg15[%c40_242, %c0_243] : memref<64x256xf32, #tpu.memory_space<vmem>>, vector<8x256xf32>
    %400 = arith.addf %398, %399 : vector<8x256xf32>
    %401 = math.tanh %400 : vector<8x256xf32>
    %cst_244 = arith.constant 5.000000e-01 : f32
    %402 = vector.broadcast %cst_244 : f32 to vector<8x256xf32>
    %403 = arith.mulf %402, %401 : vector<8x256xf32>
    %cst_245 = arith.constant 5.000000e-01 : f32
    %404 = vector.broadcast %cst_245 : f32 to vector<8x256xf32>
    %405 = arith.addf %403, %404 : vector<8x256xf32>
    %406 = arith.select %5, %401, %405 : vector<8x256xi1>, vector<8x256xf32>
    %407 = vector.extract_strided_slice %406 {offsets = [0, 64], sizes = [8, 64], strides = [1, 1]} : vector<8x256xf32> to vector<8x64xf32>
    %408 = arith.mulf %407, %389 : vector<8x64xf32>
    %409 = vector.extract_strided_slice %406 {offsets = [0, 0], sizes = [8, 64], strides = [1, 1]} : vector<8x256xf32> to vector<8x64xf32>
    %410 = vector.extract_strided_slice %406 {offsets = [0, 128], sizes = [8, 64], strides = [1, 1]} : vector<8x256xf32> to vector<8x64xf32>
    %411 = arith.mulf %409, %410 : vector<8x64xf32>
    %412 = arith.addf %408, %411 : vector<8x64xf32>
    %413 = vector.extract_strided_slice %406 {offsets = [0, 192], sizes = [8, 64], strides = [1, 1]} : vector<8x256xf32> to vector<8x64xf32>
    %414 = math.tanh %412 : vector<8x64xf32>
    %415 = arith.mulf %413, %414 : vector<8x64xf32>
    %416 = vector.extract_strided_slice %415 {offsets = [0, 0], sizes = [8, 32], strides = [1, 1]} : vector<8x64xf32> to vector<8x32xf32>
    %c40_246 = arith.constant 40 : index
    %c0_247 = arith.constant 0 : index
    %417 = vector.load %arg18[%c40_246, %c0_247] : memref<64x64xf32, #tpu.memory_space<vmem>>, vector<8x32xf32>
    tpu.vector_store %arg18[%c40_246, %c0_247], %416 {strides = array<i32>} : memref<64x64xf32, #tpu.memory_space<vmem>>, vector<8x32xf32>,
    %418 = vector.extract_strided_slice %415 {offsets = [0, 32], sizes = [8, 32], strides = [1, 1]} : vector<8x64xf32> to vector<8x32xf32>
    %c16_248 = arith.constant 16 : index
    %c32_249 = arith.constant 32 : index
    %419 = vector.load %arg18[%c16_248, %c32_249] : memref<64x64xf32, #tpu.memory_space<vmem>>, vector<8x32xf32>
    tpu.vector_store %arg18[%c16_248, %c32_249], %418 {strides = array<i32>} : memref<64x64xf32, #tpu.memory_space<vmem>>, vector<8x32xf32>,
    %420 = arith.truncf %415 : vector<8x64xf32> to vector<8x64xbf16>
    %cst_250 = arith.constant dense<0.000000e+00> : vector<8x256xf32>
    %421 = tpu.matmul %420, %279, %cst_250 {dimension_numbers = #tpu.dot_dimension_numbers<[1], [0], [0], [1], [0, 0, 1, 1], [], []>} : vector<8x64xbf16>, vector<64x256xbf16>, vector<8x256xf32> -> vector<8x256xf32>
    %c48_251 = arith.constant 48 : index
    %c0_252 = arith.constant 0 : index
    %422 = vector.load %arg15[%c48_251, %c0_252] : memref<64x256xf32, #tpu.memory_space<vmem>>, vector<8x256xf32>
    %423 = arith.addf %421, %422 : vector<8x256xf32>
    %424 = math.tanh %423 : vector<8x256xf32>
    %cst_253 = arith.constant 5.000000e-01 : f32
    %425 = vector.broadcast %cst_253 : f32 to vector<8x256xf32>
    %426 = arith.mulf %425, %424 : vector<8x256xf32>
    %cst_254 = arith.constant 5.000000e-01 : f32
    %427 = vector.broadcast %cst_254 : f32 to vector<8x256xf32>
    %428 = arith.addf %426, %427 : vector<8x256xf32>
    %429 = arith.select %5, %424, %428 : vector<8x256xi1>, vector<8x256xf32>
    %430 = vector.extract_strided_slice %429 {offsets = [0, 64], sizes = [8, 64], strides = [1, 1]} : vector<8x256xf32> to vector<8x64xf32>
    %431 = arith.mulf %430, %412 : vector<8x64xf32>
    %432 = vector.extract_strided_slice %429 {offsets = [0, 0], sizes = [8, 64], strides = [1, 1]} : vector<8x256xf32> to vector<8x64xf32>
    %433 = vector.extract_strided_slice %429 {offsets = [0, 128], sizes = [8, 64], strides = [1, 1]} : vector<8x256xf32> to vector<8x64xf32>
    %434 = arith.mulf %432, %433 : vector<8x64xf32>
    %435 = arith.addf %431, %434 : vector<8x64xf32>
    %436 = vector.extract_strided_slice %429 {offsets = [0, 192], sizes = [8, 64], strides = [1, 1]} : vector<8x256xf32> to vector<8x64xf32>
    %437 = math.tanh %435 : vector<8x64xf32>
    %438 = arith.mulf %436, %437 : vector<8x64xf32>
    %439 = vector.extract_strided_slice %438 {offsets = [0, 0], sizes = [8, 32], strides = [1, 1]} : vector<8x64xf32> to vector<8x32xf32>
    %c48_255 = arith.constant 48 : index
    %c0_256 = arith.constant 0 : index
    %440 = vector.load %arg18[%c48_255, %c0_256] : memref<64x64xf32, #tpu.memory_space<vmem>>, vector<8x32xf32>
    tpu.vector_store %arg18[%c48_255, %c0_256], %439 {strides = array<i32>} : memref<64x64xf32, #tpu.memory_space<vmem>>, vector<8x32xf32>,
    %441 = vector.extract_strided_slice %438 {offsets = [0, 32], sizes = [8, 32], strides = [1, 1]} : vector<8x64xf32> to vector<8x32xf32>
    %c8_257 = arith.constant 8 : index
    %c32_258 = arith.constant 32 : index
    %442 = vector.load %arg18[%c8_257, %c32_258] : memref<64x64xf32, #tpu.memory_space<vmem>>, vector<8x32xf32>
    tpu.vector_store %arg18[%c8_257, %c32_258], %441 {strides = array<i32>} : memref<64x64xf32, #tpu.memory_space<vmem>>, vector<8x32xf32>,
    %443 = arith.truncf %438 : vector<8x64xf32> to vector<8x64xbf16>
    %cst_259 = arith.constant dense<0.000000e+00> : vector<8x256xf32>
    %444 = tpu.matmul %443, %279, %cst_259 {dimension_numbers = #tpu.dot_dimension_numbers<[1], [0], [0], [1], [0, 0, 1, 1], [], []>} : vector<8x64xbf16>, vector<64x256xbf16>, vector<8x256xf32> -> vector<8x256xf32>
    %c56_260 = arith.constant 56 : index
    %c0_261 = arith.constant 0 : index
    %445 = vector.load %arg15[%c56_260, %c0_261] : memref<64x256xf32, #tpu.memory_space<vmem>>, vector<8x256xf32>
    %446 = arith.addf %444, %445 : vector<8x256xf32>
    %447 = math.tanh %446 : vector<8x256xf32>
    %cst_262 = arith.constant 5.000000e-01 : f32
    %448 = vector.broadcast %cst_262 : f32 to vector<8x256xf32>
    %449 = arith.mulf %448, %447 : vector<8x256xf32>
    %cst_263 = arith.constant 5.000000e-01 : f32
    %450 = vector.broadcast %cst_263 : f32 to vector<8x256xf32>
    %451 = arith.addf %449, %450 : vector<8x256xf32>
    %452 = arith.select %5, %447, %451 : vector<8x256xi1>, vector<8x256xf32>
    %453 = vector.extract_strided_slice %452 {offsets = [0, 64], sizes = [8, 64], strides = [1, 1]} : vector<8x256xf32> to vector<8x64xf32>
    %454 = arith.mulf %453, %435 : vector<8x64xf32>
    %455 = vector.extract_strided_slice %452 {offsets = [0, 0], sizes = [8, 64], strides = [1, 1]} : vector<8x256xf32> to vector<8x64xf32>
    %456 = vector.extract_strided_slice %452 {offsets = [0, 128], sizes = [8, 64], strides = [1, 1]} : vector<8x256xf32> to vector<8x64xf32>
    %457 = arith.mulf %455, %456 : vector<8x64xf32>
    %458 = arith.addf %454, %457 : vector<8x64xf32>
    %459 = vector.extract_strided_slice %452 {offsets = [0, 192], sizes = [8, 64], strides = [1, 1]} : vector<8x256xf32> to vector<8x64xf32>
    %460 = math.tanh %458 : vector<8x64xf32>
    %461 = arith.mulf %459, %460 : vector<8x64xf32>
    %462 = vector.extract_strided_slice %461 {offsets = [0, 0], sizes = [8, 32], strides = [1, 1]} : vector<8x64xf32> to vector<8x32xf32>
    %c56_264 = arith.constant 56 : index
    %c0_265 = arith.constant 0 : index
    %463 = vector.load %arg18[%c56_264, %c0_265] : memref<64x64xf32, #tpu.memory_space<vmem>>, vector<8x32xf32>
    tpu.vector_store %arg18[%c56_264, %c0_265], %462 {strides = array<i32>} : memref<64x64xf32, #tpu.memory_space<vmem>>, vector<8x32xf32>,
    %464 = vector.extract_strided_slice %461 {offsets = [0, 32], sizes = [8, 32], strides = [1, 1]} : vector<8x64xf32> to vector<8x32xf32>
    %c0_266 = arith.constant 0 : index
    %c32_267 = arith.constant 32 : index
    %465 = vector.load %arg18[%c0_266, %c32_267] : memref<64x64xf32, #tpu.memory_space<vmem>>, vector<8x32xf32>
    tpu.vector_store %arg18[%c0_266, %c32_267], %464 {strides = array<i32>} : memref<64x64xf32, #tpu.memory_space<vmem>>, vector<8x32xf32>,
    %c0_268 = arith.constant 0 : index
    %c0_269 = arith.constant 0 : index
    %466 = vector.load %arg18[%c0_268, %c0_269] : memref<64x64xf32, #tpu.memory_space<vmem>>, vector<64x64xf32>
    %467 = arith.truncf %466 : vector<64x64xf32> to vector<64x64xbf16>
    %c0_270 = arith.constant 0 : index
    %c0_271 = arith.constant 0 : index
    %468 = vector.load %arg10[%c0_270, %c0_271] : memref<64x32xbf16, #tpu.memory_space<vmem>>, vector<64x32xbf16>
    %cst_272 = arith.constant dense<0.000000e+00> : vector<64x32xf32>
    %469 = tpu.matmul %467, %468, %cst_272 {dimension_numbers = #tpu.dot_dimension_numbers<[1], [0], [0], [1], [0, 0, 1, 1], [], []>} : vector<64x64xbf16>, vector<64x32xbf16>, vector<64x32xf32> -> vector<64x32xf32>
    %c0_273 = arith.constant 0 : index
    %c0_274 = arith.constant 0 : index
    %470 = vector.load %arg11[%c0_273, %c0_274] : memref<1x32xf32, #tpu.memory_space<vmem>>, vector<1x32xf32>
    %471 = vector.broadcast %470 : vector<1x32xf32> to vector<64x32xf32>
    %472 = arith.addf %469, %471 : vector<64x32xf32>
    %cst_275 = arith.constant 0.000000e+00 : f32
    %473 = vector.broadcast %cst_275 : f32 to vector<64x32xf32>
    %474 = arith.maximumf %472, %473 : vector<64x32xf32>
    %475 = arith.truncf %474 : vector<64x32xf32> to vector<64x32xbf16>
    %c0_276 = arith.constant 0 : index
    %c0_277 = arith.constant 0 : index
    %476 = vector.load %arg12[%c0_276, %c0_277] : memref<32x128xbf16, #tpu.memory_space<vmem>>, vector<32x128xbf16>
    %cst_278 = arith.constant dense<0.000000e+00> : vector<64x128xf32>
    %477 = tpu.matmul %475, %476, %cst_278 {dimension_numbers = #tpu.dot_dimension_numbers<[1], [0], [0], [1], [0, 0, 1, 1], [], []>} : vector<64x32xbf16>, vector<32x128xbf16>, vector<64x128xf32> -> vector<64x128xf32>
    %c0_279 = arith.constant 0 : index
    %c0_280 = arith.constant 0 : index
    %478 = vector.load %arg13[%c0_279, %c0_280] : memref<1x128xf32, #tpu.memory_space<vmem>>, vector<1x128xf32>
    %479 = vector.broadcast %478 : vector<1x128xf32> to vector<64x128xf32>
    %480 = arith.addf %477, %479 : vector<64x128xf32>
    %c0_281 = arith.constant 0 : index
    %c0_282 = arith.constant 0 : index
    %c0_283 = arith.constant 0 : index
    %481 = vector.load %arg14[%c0_281, %c0_282, %c0_283] : memref<1x64x128xf32, #tpu.memory_space<vmem>>, vector<1x64x128xf32>
    %482 = vector.shape_cast %481 : vector<1x64x128xf32> to vector<64x128xf32>
    %483 = vector.shape_cast %480 : vector<64x128xf32> to vector<1x64x128xf32>
    tpu.vector_store %arg14[%c0_281, %c0_282, %c0_283], %483 {strides = array<i32>} : memref<1x64x128xf32, #tpu.memory_space<vmem>>, vector<1x64x128xf32>,
    return
  }
  func.func @transform_0(%arg0: i32) -> (i32, i32, i32) {
    %c0_i32 = arith.constant 0 : i32
    %c0_i32_0 = arith.constant 0 : i32
    %c0_i32_1 = arith.constant 0 : i32
    return %arg0, %c0_i32, %c0_i32_0 : i32, i32, i32
  }
  func.func @transform_1(%arg0: i32) -> (i32, i32) {
    %c0_i32 = arith.constant 0 : i32
    %c0_i32_0 = arith.constant 0 : i32
    %c0_i32_1 = arith.constant 0 : i32
    return %c0_i32, %c0_i32_0 : i32, i32
  }
  func.func @transform_2(%arg0: i32) -> (i32, i32) {
    %c0_i32 = arith.constant 0 : i32
    %c0_i32_0 = arith.constant 0 : i32
    %c0_i32_1 = arith.constant 0 : i32
    return %c0_i32, %c0_i32_0 : i32, i32
  }
  func.func @transform_3(%arg0: i32) -> (i32, i32) {
    %c0_i32 = arith.constant 0 : i32
    %c0_i32_0 = arith.constant 0 : i32
    %c0_i32_1 = arith.constant 0 : i32
    return %c0_i32, %c0_i32_0 : i32, i32
  }
  func.func @transform_4(%arg0: i32) -> (i32, i32) {
    %c0_i32 = arith.constant 0 : i32
    %c0_i32_0 = arith.constant 0 : i32
    %c0_i32_1 = arith.constant 0 : i32
    return %c0_i32, %c0_i32_0 : i32, i32
  }
  func.func @transform_5(%arg0: i32) -> (i32, i32) {
    %c0_i32 = arith.constant 0 : i32
    %c0_i32_0 = arith.constant 0 : i32
    %c0_i32_1 = arith.constant 0 : i32
    return %c0_i32, %c0_i32_0 : i32, i32
  }
  func.func @transform_6(%arg0: i32) -> (i32, i32) {
    %c0_i32 = arith.constant 0 : i32
    %c0_i32_0 = arith.constant 0 : i32
    %c0_i32_1 = arith.constant 0 : i32
    return %c0_i32, %c0_i32_0 : i32, i32
  }
  func.func @transform_7(%arg0: i32) -> (i32, i32) {
    %c0_i32 = arith.constant 0 : i32
    %c0_i32_0 = arith.constant 0 : i32
    %c0_i32_1 = arith.constant 0 : i32
    return %c0_i32, %c0_i32_0 : i32, i32
  }
  func.func @transform_8(%arg0: i32) -> (i32, i32) {
    %c0_i32 = arith.constant 0 : i32
    %c0_i32_0 = arith.constant 0 : i32
    %c0_i32_1 = arith.constant 0 : i32
    return %c0_i32, %c0_i32_0 : i32, i32
  }
  func.func @transform_9(%arg0: i32) -> (i32, i32) {
    %c0_i32 = arith.constant 0 : i32
    %c0_i32_0 = arith.constant 0 : i32
    %c0_i32_1 = arith.constant 0 : i32
    return %c0_i32, %c0_i32_0 : i32, i32
  }
  func.func @transform_10(%arg0: i32) -> (i32, i32) {
    %c0_i32 = arith.constant 0 : i32
    %c0_i32_0 = arith.constant 0 : i32
    %c0_i32_1 = arith.constant 0 : i32
    return %c0_i32, %c0_i32_0 : i32, i32
  }
  func.func @transform_11(%arg0: i32) -> (i32, i32) {
    %c0_i32 = arith.constant 0 : i32
    %c0_i32_0 = arith.constant 0 : i32
    %c0_i32_1 = arith.constant 0 : i32
    return %c0_i32, %c0_i32_0 : i32, i32
  }
  func.func @transform_12(%arg0: i32) -> (i32, i32) {
    %c0_i32 = arith.constant 0 : i32
    %c0_i32_0 = arith.constant 0 : i32
    %c0_i32_1 = arith.constant 0 : i32
    return %c0_i32, %c0_i32_0 : i32, i32
  }
  func.func @transform_13(%arg0: i32) -> (i32, i32, i32) {
    %c0_i32 = arith.constant 0 : i32
    %c0_i32_0 = arith.constant 0 : i32
    %c0_i32_1 = arith.constant 0 : i32
    return %arg0, %c0_i32, %c0_i32_0 : i32, i32, i32
  }
}

</mosaic_0001>

<bundles_post_ra>
// kernel: handwriting_rnn_forward.1
= control target key start
LH: loop header
LB: loop body
LE: loop exit
PB: predicated region body
PF: predicated region fallthrough
CT: control target
= control target key end

     0   :  { %18 = vsyncpa [#allocation7], 0  ;;  %s3859_s0 = inlined_call_operand.vmem [shape: bf16[1,64,128], index: 0, kind: input, shape index: {}]   ;;  %s3860_s1 = inlined_call_operand.vmem [shape: bf16[128,256], index: 1, kind: input, shape index: {}]   ;;  %s3861_s2 = inlined_call_operand.vmem [shape: bf16[128,256], index: 2, kind: input, shape index: {}]   ;;  %s3862_s3 = inlined_call_operand.hbm [shape: bf16[64,256], index: 3, kind: input, shape index: {}]   ;;  %s3863_s4 = inlined_call_operand.vmem [shape: f32[1,256], index: 4, kind: input, shape index: {}]   ;;  %s3864_s5 = inlined_call_operand.hbm [shape: bf16[64,256], index: 5, kind: input, shape index: {}]   ;;  %s3865_s6 = inlined_call_operand.hbm [shape: bf16[64,256], index: 6, kind: input, shape index: {}]   ;;  %s3866_s7 = inlined_call_operand.hbm [shape: bf16[64,256], index: 7, kind: input, shape index: {}]   ;;  %s3867_s8 = inlined_call_operand.vmem [shape: f32[1,256], index: 8, kind: input, shape index: {}]   ;;  %s3868_s9 = inlined_call_operand.vmem [shape: bf16[64,32], index: 9, kind: input, shape index: {}]   ;;  %s3869_s10 = inlined_call_operand.hbm [shape: f32[1,32], index: 10, kind: input, shape index: {}]   ;;  %s3870_s11 = inlined_call_operand.hbm [shape: bf16[32,128], index: 11, kind: input, shape index: {}]   ;;  %s3871_s12 = inlined_call_operand.hbm [shape: f32[1,128], index: 12, kind: input, shape index: {}]   ;;  %s3872_s13 = inlined_call_operand.vmem [shape: f32[1,64,128], index: 13, kind: output, shape index: {}]  }
   0x1   :  { %19 = vsyncpa [#allocation9], 0 }
   0x2   :  { %20 = vsyncpa [#allocation12], 0 }
   0x3   :  { %21 = vsyncpa [#allocation15], 0  ;;  %s3033_s25 = smov [#allocation8]   ;;  %s3034_s27 = smov [#allocation11]  }
   0x4   :  { %s47_s26 = sshll.u32 %s3033_s25, 4  ;;  %s71_s28 = sshll.u32 %s3034_s27, 4  ;;  %s48_s26 = int_to_ptr.vmem [resolvable:$true] %s47_s26  ;;  %s3115_s28 = int_to_ptr.vmem [resolvable:$true] %s71_s28 }
   0x5   :  { %s2871_s14 = scalar_lea.hbm %s3864_s5, 1024 }
   0x6   :  { %p2872_p0 = scmp.ne.s32.totalorder %s3864_s5, %s2871_s14  ;;  %p2875_p1 = scmp.lt.u32.totalorder %s2871_s14, %s3864_s5 }
   0x8   :  { %p2877_p2 = pnand %p2875_p1, %p2872_p0 }
   0xa   :  { %2880 = shalt.err (!%p2877_p2)
}
   0xb   :  { %s2881_s19 = scalar_lea.vmem %s48_s26, 1024  ;;  %p2886_p4 = scmp.lt.s32.totalorder %s48_s26, %s48_s26 }
   0xc   :  { %p2882_p3 = scmp.ne.s32.totalorder %s48_s26, %s2881_s19  ;;  %p2887_p5 = scmp.lt.s32.totalorder %s2881_s19, %s2881_s19 }
   0xe   :  { %p2888_p6 = por %p2887_p5, %p2886_p4 }
  0x10   :  { %p2889_p7 = pnand %p2888_p6, %p2882_p3 }
  0x12   :  { %2892 = shalt.err (!%p2889_p7)
}
  0x13   :  { %s3035_s20 = smov 128   ;;  %s3036_s21 = smov 8  }
  0x14   :  { %53 = dma.hbm_to_vmem [thread:$0]  %s3864_s5, 1024, %s48_s26, [#allocation9], %s3035_s20, %s3035_s20, %s3036_s21  }
  0x15   :  { %s2893_s27 = scalar_lea.hbm %s3866_s7, 1024 }
  0x16   :  { %p2894_p8 = scmp.ne.s32.totalorder %s3866_s7, %s2893_s27  ;;  %p2897_p9 = scmp.lt.u32.totalorder %s2893_s27, %s3866_s7 }
  0x18   :  { %p2899_p10 = pnand %p2897_p9, %p2894_p8 }
  0x1a   :  { %2902 = shalt.err (!%p2899_p10)
}
  0x1b   :  { %s2903_s16 = scalar_lea.vmem %s3115_s28, 1024  ;;  %p2908_p12 = scmp.lt.s32.totalorder %s3115_s28, %s3115_s28 }
  0x1c   :  { %p2904_p11 = scmp.ne.s32.totalorder %s3115_s28, %s2903_s16  ;;  %p2909_p13 = scmp.lt.s32.totalorder %s2903_s16, %s2903_s16 }
  0x1e   :  { %p2910_p0 = por %p2909_p13, %p2908_p12 }
  0x20   :  { %p2911_p1 = pnand %p2910_p0, %p2904_p11 }
  0x22   :  { %2914 = shalt.err (!%p2911_p1)
}
  0x23   :  { %77 = dma.hbm_to_vmem [thread:$0]  %s3866_s7, 1024, %s3115_s28, [#allocation12], %s3035_s20, %s3035_s20, %s3036_s21  }
  0x24   :  { %s3037_s17 = smov [#allocation14]   ;;  %s2915_s23 = scalar_lea.hbm %s3870_s11, 256 }
  0x25   :  { %s97_s18 = sshll.u32 %s3037_s17, 4  ;;  %p2916_p2 = scmp.ne.s32.totalorder %s3870_s11, %s2915_s23  ;;  %s98_s18 = int_to_ptr.vmem [resolvable:$true] %s97_s18 }
  0x26   :  { %p2919_p3 = scmp.lt.u32.totalorder %s2915_s23, %s3870_s11 }
  0x28   :  { %p2921_p4 = pnand %p2919_p3, %p2916_p2 }
  0x2a   :  { %2924 = shalt.err (!%p2921_p4)
}
  0x2b   :  { %s2925_s30 = scalar_lea.vmem %s98_s18, 256  ;;  %p2930_p6 = scmp.lt.s32.totalorder %s98_s18, %s98_s18 }
  0x2c   :  { %p2926_p5 = scmp.ne.s32.totalorder %s98_s18, %s2925_s30  ;;  %p2931_p7 = scmp.lt.s32.totalorder %s2925_s30, %s2925_s30 }
  0x2e   :  { %p2932_p8 = por %p2931_p7, %p2930_p6 }
  0x30   :  { %p2933_p9 = pnand %p2932_p8, %p2926_p5 }
  0x32   :  { %2936 = shalt.err (!%p2933_p9)
}
  0x33   :  { %s3038_s7 = smov 64   ;;  %s3039_s28 = smov 4  }
  0x34   :  { %103 = dma.hbm_to_vmem [thread:$0]  %s3870_s11, 256, %s98_s18, [#allocation15], %s3038_s7, %s3038_s7, %s3039_s28  }
  0x35   :  { %s3040_s16 = smov [#allocation6]   ;;  %s3041_s26 = smov [#allocation10]  }
  0x36   :  { %s33_s5 = sshll.u32 %s3040_s16, 4  ;;  %s59_s17 = sshll.u32 %s3041_s26, 4  ;;  %s34_s5 = int_to_ptr.vmem [resolvable:$true] %s33_s5  ;;  %s60_s17 = int_to_ptr.vmem [resolvable:$true] %s59_s17 }
  0x37   :  { %s2937_s23 = scalar_lea.hbm %s3862_s3, 1024 }
  0x38   :  { %p2938_p10 = scmp.ne.s32.totalorder %s3862_s3, %s2937_s23  ;;  %p2941_p11 = scmp.lt.u32.totalorder %s2937_s23, %s3862_s3 }
  0x3a   :  { %p2943_p12 = pnand %p2941_p11, %p2938_p10 }
  0x3c   :  { %2946 = shalt.err (!%p2943_p12)
}
  0x3d   :  { %s2947_s11 = scalar_lea.vmem %s34_s5, 1024  ;;  %p2952_p0 = scmp.lt.s32.totalorder %s34_s5, %s34_s5 }
  0x3e   :  { %p2948_p13 = scmp.ne.s32.totalorder %s34_s5, %s2947_s11  ;;  %p2953_p1 = scmp.lt.s32.totalorder %s2947_s11, %s2947_s11 }
  0x40   :  { %p2954_p2 = por %p2953_p1, %p2952_p0 }
  0x42   :  { %p2955_p3 = pnand %p2954_p2, %p2948_p13 }
  0x44   :  { %2958 = shalt.err (!%p2955_p3)
}
  0x45   :  { %39 = dma.hbm_to_vmem [thread:$0]  %s3862_s3, 1024, %s34_s5, [#allocation7], %s3035_s20, %s3035_s20, %s3036_s21  }
  0x46   :  { %s2959_s15 = scalar_lea.hbm %s3865_s6, 1024 }
  0x47   :  { %p2960_p4 = scmp.ne.s32.totalorder %s3865_s6, %s2959_s15  ;;  %p2963_p5 = scmp.lt.u32.totalorder %s2959_s15, %s3865_s6 }
  0x49   :  { %p2965_p6 = pnand %p2963_p5, %p2960_p4 }
  0x4b   :  { %2968 = shalt.err (!%p2965_p6)
}
  0x4c   :  { %s2969_s23 = scalar_lea.vmem %s60_s17, 1024  ;;  %p2974_p8 = scmp.lt.s32.totalorder %s60_s17, %s60_s17 }
  0x4d   :  { %p2970_p7 = scmp.ne.s32.totalorder %s60_s17, %s2969_s23  ;;  %p2975_p9 = scmp.lt.s32.totalorder %s2969_s23, %s2969_s23 }
  0x4f   :  { %p2976_p10 = por %p2975_p9, %p2974_p8 }
  0x51   :  { %p2977_p11 = pnand %p2976_p10, %p2970_p7 }
  0x53   :  { %2980 = shalt.err (!%p2977_p11)
}
  0x54   :  { %65 = dma.hbm_to_vmem [thread:$0]  %s3865_s6, 1024, %s60_s17, [#allocation9], %s3035_s20, %s3035_s20, %s3036_s21  }
  0x55   :  { %s3042_s24 = smov [#allocation13]   ;;  %s3043_s27 = smov [#allocation16]  }
  0x56   :  { %s88_s25 = sshll.u32 %s3042_s24, 4  ;;  %s110_s29 = sshll.u32 %s3043_s27, 4  ;;  %s89_s25 = int_to_ptr.vmem [resolvable:$true] %s88_s25  ;;  %s111_s29 = int_to_ptr.vmem [resolvable:$true] %s110_s29 }
  0x57   :  { %s2981_s30 = scalar_lea.hbm %s3869_s10, 16 }
  0x58   :  { %p2982_p12 = scmp.ne.s32.totalorder %s3869_s10, %s2981_s30  ;;  %p2985_p13 = scmp.lt.u32.totalorder %s2981_s30, %s3869_s10 }
  0x5a   :  { %p2987_p0 = pnand %p2985_p13, %p2982_p12 }
  0x5c   :  { %2990 = shalt.err (!%p2987_p0)
}
  0x5d   :  { %s2991_s6 = scalar_lea.vmem %s89_s25, 16  ;;  %s2995_s20 = scalar_lea.vmem %s89_s25, 32 }
  0x5e   :  { %p2992_p1 = scmp.ne.s32.totalorder %s89_s25, %s2991_s6  ;;  %p2996_p2 = scmp.lt.s32.totalorder %s89_s25, %s89_s25 }
  0x5f   :  { %p2997_p3 = scmp.lt.s32.totalorder %s2995_s20, %s2991_s6 }
  0x61   :  { %p2998_p4 = por %p2997_p3, %p2996_p2 }
  0x63   :  { %p2999_p5 = pnand %p2998_p4, %p2992_p1 }
  0x65   :  { %3002 = shalt.err (!%p2999_p5)
}
  0x66   :  { %91 = dma.hbm_to_vmem [thread:$0]  %s3869_s10, 16, %s89_s25, [#allocation12]  }
  0x67   :  { %s3003_s22 = scalar_lea.hbm %s3871_s12, 16 }
  0x68   :  { %p3004_p6 = scmp.ne.s32.totalorder %s3871_s12, %s3003_s22  ;;  %p3007_p7 = scmp.lt.u32.totalorder %s3003_s22, %s3871_s12 }
  0x6a   :  { %p3009_p8 = pnand %p3007_p7, %p3004_p6 }
  0x6c   :  { %3012 = shalt.err (!%p3009_p8)
}
  0x6d   :  { %s3013_s27 = scalar_lea.vmem %s111_s29, 16  ;;  %s3017_s11 = scalar_lea.vmem %s111_s29, 32 }
  0x6e   :  { %p3014_p9 = scmp.ne.s32.totalorder %s111_s29, %s3013_s27  ;;  %p3018_p10 = scmp.lt.s32.totalorder %s111_s29, %s111_s29 }
  0x6f   :  { %p3019_p11 = scmp.lt.s32.totalorder %s3017_s11, %s3013_s27 }
  0x71   :  { %p3020_p12 = por %p3019_p11, %p3018_p10 }
  0x73   :  { %p3021_p13 = pnand %p3020_p12, %p3014_p9 }
  0x75   :  { %3024 = shalt.err (!%p3021_p13)
}
  0x76   :  { %113 = dma.hbm_to_vmem [thread:$0]  %s3871_s12, 16, %s111_s29, [#allocation15]  }
  0x77   :  { %3025 = dma.done.wait [#allocation7], 1024  }
  0x78   :  { %3026 = vsyncadd [#allocation7], 4294966272 }
  0x79   :  { %3027 = dma.done.wait [#allocation9], 2048  }
  0x7a   :  { %3028 = vsyncadd [#allocation9], 4294965248 }
  0x7b   :  { %3029 = dma.done.wait [#allocation12], 1040  }
  0x7c   :  { %3030 = vsyncadd [#allocation12], 4294966256 }
  0x7d   :  { %3031 = dma.done.wait [#allocation15], 272  }
  0x7e   :  { %3032 = vsyncadd [#allocation15], 4294967024  ;;  %v3044_v0 = vmov 0   ;;  %v2669_v1 = vld [vmem:[%s3860_s1 + $0x4] ss:$8 sps:$4 sm:$0xff]   ;;  %v2725_v43 = vld [vmem:[%s3859_s0 + $0x10] sm:$0xff]   ;;  %v136_v45 = vlaneseq }
  0x7f   :  { %317 = vmatprep.mubr.bf16.mxu0 %v3044_v0  ;;  %502 = vmatprep.mubr.bf16.mxu1 %v3044_v0  ;;  %v2671_v2 = vld [vmem:[%s3861_s2 + $0x4] ss:$8 sps:$4 sm:$0xff]   ;;  %v2673_v3 = vld [vmem:[%s3860_s1] ss:$8 sps:$4 sm:$0xff]   ;;  %v2675_v5 = vld [vmem:[%s3860_s1 + $0x14] ss:$8 sps:$4 sm:$0xff]  }
  0x80   :  { %285 = vmatprep.subr.bf16.mxu0 %v2669_v1  ;;  %v2674_v4 = vld [vmem:[%s3861_s2] ss:$8 sps:$4 sm:$0xff]   ;;  %470 = vmatprep.subr.bf16.mxu1 %v2671_v2  ;;  %v2677_v6 = vld [vmem:[%s3861_s2 + $0x14] ss:$8 sps:$4 sm:$0xff]   ;;  %v2679_v7 = vld [vmem:[%s3860_s1 + $0x10] ss:$8 sps:$4 sm:$0xff]  }
  0x81   :  { %286 = vmatpush1.bf16.msra.mxu0 %v2673_v3  ;;  %471 = vmatpush1.bf16.msra.mxu1 %v2674_v4  ;;  %v2680_v8 = vld [vmem:[%s3861_s2 + $0x10] ss:$8 sps:$4 sm:$0xff]   ;;  %v2681_v9 = vld [vmem:[%s3860_s1 + $0x24] ss:$8 sps:$4 sm:$0xff]   ;;  %v2685_v11 = vld [vmem:[%s3860_s1 + $0x20] ss:$8 sps:$4 sm:$0xff]  }
  0x82   :  { %287 = vmatprep.subr.bf16.mxu0 %v2675_v5  ;;  %472 = vmatprep.subr.bf16.mxu1 %v2677_v6  ;;  %v2683_v10 = vld [vmem:[%s3861_s2 + $0x24] ss:$8 sps:$4 sm:$0xff]   ;;  %v2686_v12 = vld [vmem:[%s3861_s2 + $0x20] ss:$8 sps:$4 sm:$0xff]   ;;  %v2687_v13 = vld [vmem:[%s3860_s1 + $0x34] ss:$8 sps:$4 sm:$0xff]  }
  0x83   :  { %v2689_v14 = vld [vmem:[%s3861_s2 + $0x34] ss:$8 sps:$4 sm:$0xff]   ;;  %v2691_v15 = vld [vmem:[%s3860_s1 + $0x30] ss:$8 sps:$4 sm:$0xff]   ;;  %v2693_v17 = vld [vmem:[%s3860_s1 + $0x44] ss:$8 sps:$4 sm:$0xff]  }
  0x84   :  { %v2692_v16 = vld [vmem:[%s3861_s2 + $0x30] ss:$8 sps:$4 sm:$0xff]   ;;  %v2695_v18 = vld [vmem:[%s3861_s2 + $0x44] ss:$8 sps:$4 sm:$0xff]   ;;  %v2697_v19 = vld [vmem:[%s3860_s1 + $0x40] ss:$8 sps:$4 sm:$0xff]  }
  0x85   :  { %288 = vmatpush1.bf16.msra.mxu0 %v2679_v7  ;;  %473 = vmatpush1.bf16.msra.mxu1 %v2680_v8  ;;  %v2698_v20 = vld [vmem:[%s3861_s2 + $0x40] ss:$8 sps:$4 sm:$0xff]   ;;  %v2699_v21 = vld [vmem:[%s3860_s1 + $0x54] ss:$8 sps:$4 sm:$0xff]   ;;  %v2703_v23 = vld [vmem:[%s3860_s1 + $0x50] ss:$8 sps:$4 sm:$0xff]  }
  0x86   :  { %289 = vmatprep.subr.bf16.mxu0 %v2681_v9  ;;  %474 = vmatprep.subr.bf16.mxu1 %v2683_v10  ;;  %v2701_v22 = vld [vmem:[%s3861_s2 + $0x54] ss:$8 sps:$4 sm:$0xff]   ;;  %v2704_v24 = vld [vmem:[%s3861_s2 + $0x50] ss:$8 sps:$4 sm:$0xff]   ;;  %v2705_v25 = vld [vmem:[%s3860_s1 + $0x64] ss:$8 sps:$4 sm:$0xff]  }
  0x87   :  { %v2707_v26 = vld [vmem:[%s3861_s2 + $0x64] ss:$8 sps:$4 sm:$0xff]   ;;  %v2709_v27 = vld [vmem:[%s3860_s1 + $0x60] ss:$8 sps:$4 sm:$0xff]   ;;  %v2711_v29 = vld [vmem:[%s3860_s1 + $0x74] ss:$8 sps:$4 sm:$0xff]  }
  0x88   :  { %v2710_v28 = vld [vmem:[%s3861_s2 + $0x60] ss:$8 sps:$4 sm:$0xff]   ;;  %v2713_v30 = vld [vmem:[%s3861_s2 + $0x74] ss:$8 sps:$4 sm:$0xff]   ;;  %v2715_v31 = vld [vmem:[%s3860_s1 + $0x70] ss:$8 sps:$4 sm:$0xff]  }
  0x89   :  { %290 = vmatpush1.bf16.msra.mxu0 %v2685_v11  ;;  %475 = vmatpush1.bf16.msra.mxu1 %v2686_v12  ;;  %v2716_v32 = vld [vmem:[%s3861_s2 + $0x70] ss:$8 sps:$4 sm:$0xff]   ;;  %v3318_v33 = vld [vmem:[#allocation6 + $0x4] ss:$8 sps:$4 sm:$0xff]   ;;  %v3323_v35 = vld [vmem:[#allocation6] ss:$8 sps:$4 sm:$0xff]  }
  0x8a   :  { %291 = vmatprep.subr.bf16.mxu0 %v2687_v13  ;;  %476 = vmatprep.subr.bf16.mxu1 %v2689_v14  ;;  %v2717_v34 = vld [vmem:[%s3859_s0] sm:$0xff]   ;;  %v3325_v36 = vld [vmem:[#allocation6 + $0x14] ss:$8 sps:$4 sm:$0xff]   ;;  %v3329_v37 = vld [vmem:[#allocation6 + $0x10] ss:$8 sps:$4 sm:$0xff]   ;;  %v3383_v46 = vshrl.u32 %v136_v45, 7 }
  0x8b   :  { %v3331_v38 = vld [vmem:[#allocation6 + $0x24] ss:$8 sps:$4 sm:$0xff]   ;;  %v3341_v40 = vld [vmem:[#allocation6 + $0x20] ss:$8 sps:$4 sm:$0xff]   ;;  %v3345_v41 = vld [vmem:[#allocation6 + $0x34] ss:$8 sps:$4 sm:$0xff]  }
  0x8c   :  { %v2721_v39 = vld [vmem:[%s3859_s0 + $0x8] sm:$0xff]   ;;  %v3352_v42 = vld [vmem:[#allocation6 + $0x30] ss:$8 sps:$4 sm:$0xff]   ;;  %v173_v47 = vsub.s32 0, %v3383_v46  ;;  %v169_v48 = vld [vmem:[%s3863_s4] sm:$0x3] }
  0x8d   :  { %292 = vmatpush1.bf16.msra.mxu0 %v2691_v15  ;;  %477 = vmatpush1.bf16.msra.mxu1 %v2692_v16  ;;  %v2729_v44 = vld [vmem:[%s3859_s0 + $0x18] sm:$0xff]   ;;  %v177_v49 = vsub.s32 1, %v3383_v46  ;;  %vm673_vm1 = vcmask 523264   ;;  %vm739_vm2 = vcmask 261120   ;;  %vm741_vm3 = vcmask 523520  }
  0x8e   :  { %293 = vmatprep.subr.bf16.mxu0 %v2693_v17  ;;  %478 = vmatprep.subr.bf16.mxu1 %v2695_v18  ;;  %v174_v52 = vrot.slane %v169_v48, %v173_v47 }
  0x8f   :  { %v178_v55 = vrot.slane %v169_v48, %v177_v49 }
  0x91   :  { %294 = vmatpush1.bf16.msra.mxu0 %v2697_v19  ;;  %479 = vmatpush1.bf16.msra.mxu1 %v2698_v20 }
  0x92   :  { %295 = vmatprep.subr.bf16.mxu0 %v2699_v21  ;;  %480 = vmatprep.subr.bf16.mxu1 %v2701_v22 }
  0x95   :  { %296 = vmatpush1.bf16.msra.mxu0 %v2703_v23  ;;  %481 = vmatpush1.bf16.msra.mxu1 %v2704_v24 }
  0x96   :  { %297 = vmatprep.subr.bf16.mxu0 %v2705_v25  ;;  %482 = vmatprep.subr.bf16.mxu1 %v2707_v26 }
  0x99   :  { %298 = vmatpush1.bf16.msra.mxu0 %v2709_v27  ;;  %483 = vmatpush1.bf16.msra.mxu1 %v2710_v28 }
  0x9a   :  { %299 = vmatprep.subr.bf16.mxu0 %v2711_v29  ;;  %484 = vmatprep.subr.bf16.mxu1 %v2713_v30 }
  0x9d   :  { %300 = vmatpush1.bf16.msra.mxu0 %v2715_v31  ;;  %485 = vmatpush1.bf16.msra.mxu1 %v2716_v32 }
  0x9e   :  { %677 = vmatprep.subr.bf16.mxu0 %v3318_v33  ;;  %752 = vmatprep.subr.bf16.mxu1 %v3318_v33 }
  0xa0   :  { %318 = vmatmul.mubr.bf16.vlgmr.msra.gmra.mrb[0].mxu0 %v2717_v34  ;;  %503 = vmatmul.mubr.bf16.vlgmr.msra.gmra.mrb[0].mxu1 %v2717_v34 }
  0xa1   :  { %678 = vmatpush1.bf16.msra.mxu0 %v3323_v35  ;;  %327 = vmatprep.mubr.bf16.mxu0 %v3044_v0 }
  0xa2   :  { %512 = vmatprep.mubr.bf16.mxu1 %v3044_v0  ;;  %679 = vmatprep.subr.bf16.mxu0 %v3325_v36 }
  0xa3   :  { %753 = vmatpush1.bf16.msra.mxu1 %v3323_v35 }
  0xa4   :  { %754 = vmatprep.subr.bf16.mxu1 %v3325_v36 }
  0xa5   :  { %680 = vmatpush1.bf16.msra.mxu0 %v3329_v37 }
  0xa6   :  { %681 = vmatprep.subr.bf16.mxu0 %v3331_v38 }
  0xa7   :  { %755 = vmatpush1.bf16.msra.mxu1 %v3329_v37 }
  0xa8   :  { %328 = vmatmul.mubr.bf16.gmra.mrb[4].mxu0 %v2721_v39  ;;  %513 = vmatmul.mubr.bf16.gmra.mrb[4].mxu1 %v2721_v39 }
  0xa9   :  { %337 = vmatprep.mubr.bf16.mxu0 %v3044_v0  ;;  %522 = vmatprep.mubr.bf16.mxu1 %v3044_v0 }
  0xaa   :  { %682 = vmatpush1.bf16.msra.mxu0 %v3341_v40  ;;  %756 = vmatprep.subr.bf16.mxu1 %v3331_v38 }
  0xab   :  { %683 = vmatprep.subr.bf16.mxu0 %v3345_v41  ;;  %757 = vmatpush1.bf16.msra.mxu1 %v3341_v40 }
  0xac   :  { %758 = vmatprep.subr.bf16.mxu1 %v3345_v41 }
  0xae   :  { %684 = vmatpush1.bf16.msra.mxu0 %v3352_v42 }
  0xaf   :  { %759 = vmatpush1.bf16.msra.mxu1 %v3352_v42  ;;  %825 = vmatprep.subr.bf16.mxu0 %v3318_v33 }
  0xb0   :  { %338 = vmatmul.mubr.bf16.gmra.mrb[8].mxu0 %v2725_v43  ;;  %523 = vmatmul.mubr.bf16.gmra.mrb[8].mxu1 %v2725_v43 }
  0xb1   :  { %347 = vmatprep.mubr.bf16.mxu0 %v3044_v0  ;;  %532 = vmatprep.mubr.bf16.mxu1 %v3044_v0 }
  0xb2   :  { %898 = vmatprep.subr.bf16.mxu1 %v3318_v33 }
  0xb8   :  { %348 = vmatmul.mubr.bf16.gmra.mrb[12].mxu0 %v2729_v44  ;;  %533 = vmatmul.mubr.bf16.gmra.mrb[12].mxu1 %v2729_v44 }
  0xb9   :  { %709 = vmatprep.mubr.bf16.mxu0 %v3044_v0  ;;  %784 = vmatprep.mubr.bf16.mxu1 %v3044_v0 }
  0xc0   :  { %710 = vmatmul.mubr.bf16.vlgmr.msra.gmra.mrb[16].mxu0 %v3044_v0 }
  0xc1   :  { %826 = vmatpush1.bf16.msra.mxu0 %v3323_v35  ;;  %857 = vmatprep.mubr.bf16.mxu0 %v3044_v0 }
  0xc2   :  { %827 = vmatprep.subr.bf16.mxu0 %v3325_v36 }
  0xc5   :  { %828 = vmatpush1.bf16.msra.mxu0 %v3329_v37 }
  0xc6   :  { %829 = vmatprep.subr.bf16.mxu0 %v3331_v38 }
  0xc9   :  { %830 = vmatpush1.bf16.msra.mxu0 %v3341_v40 }
  0xca   :  { %831 = vmatprep.subr.bf16.mxu0 %v3345_v41 }
  0xcd   :  { %832 = vmatpush1.bf16.msra.mxu0 %v3352_v42 }
  0xce   :  { %971 = vmatprep.subr.bf16.mxu0 %v3318_v33 }
 0x173   :  { %v319_v50 = vpop.f32.mrb[0].mxu0  ;;  %v3390_v51 = vpop.f32.mrb[0].mxu1 }
 0x174   :  { %v321_v53 = vpop.f32.mrb[1].mxu0  ;;  %v506_v54 = vpop.f32.mrb[1].mxu1  ;;  %v320_v34 = vadd.f32 %v319_v50, %v174_v52 }
 0x175   :  { %v323_v56 = vpop.f32.mrb[2].mxu0  ;;  %v508_v57 = vpop.f32.mrb[2].mxu1 }
 0x176   :  { %v324_v58 = vadd.f32 %v323_v56, %v174_v52  ;;  %v325_v59 = vpop.f32.mrb[3].mxu0  ;;  %v510_v60 = vpop.f32.mrb[3].mxu1  ;;  %v322_v56 = vadd.f32 %v321_v53, %v178_v55 }
 0x177   :  { %v326_v61 = vadd.f32 %v325_v59, %v178_v55 }
 0x17b   :  { %v329_v62 = vpop.f32.mrb[4].mxu0  ;;  %v514_v63 = vpop.f32.mrb[4].mxu1 }
 0x17c   :  { %v330_v1 = vadd.f32 %v329_v62, %v174_v52  ;;  %v331_v2 = vpop.f32.mrb[5].mxu0  ;;  %v516_v3 = vpop.f32.mrb[5].mxu1 }
 0x17d   :  { %v332_v4 = vadd.f32 %v331_v2, %v178_v55  ;;  %v333_v5 = vpop.f32.mrb[6].mxu0  ;;  %v518_v6 = vpop.f32.mrb[6].mxu1 }
 0x17e   :  { %v334_v7 = vadd.f32 %v333_v5, %v174_v52  ;;  %v335_v8 = vpop.f32.mrb[7].mxu0  ;;  %v520_v9 = vpop.f32.mrb[7].mxu1 }
 0x17f   :  { %v336_v10 = vadd.f32 %v335_v8, %v178_v55 }
 0x183   :  { %v339_v11 = vpop.f32.mrb[8].mxu0  ;;  %v524_v12 = vpop.f32.mrb[8].mxu1 }
 0x184   :  { %v340_v13 = vadd.f32 %v339_v11, %v174_v52  ;;  %v3396_v14 = vadd.f32 %v524_v12, %v334_v7  ;;  %v341_v15 = vpop.f32.mrb[9].mxu0  ;;  %v526_v16 = vpop.f32.mrb[9].mxu1 }
 0x185   :  { %v342_v17 = vadd.f32 %v341_v15, %v178_v55  ;;  %v3398_v18 = vadd.f32 %v526_v16, %v336_v10  ;;  %v343_v19 = vpop.f32.mrb[10].mxu0  ;;  %v528_v20 = vpop.f32.mrb[10].mxu1 }
 0x186   :  { %v344_v21 = vadd.f32 %v343_v19, %v174_v52  ;;  %v3400_v22 = vadd.f32 %v528_v20, %v330_v1  ;;  %v345_v23 = vpop.f32.mrb[11].mxu0  ;;  %v530_v24 = vpop.f32.mrb[11].mxu1  ;;  %v3402_v25 = vadd.f32 %v518_v6, %v340_v13 }
 0x187   :  { %v346_v26 = vadd.f32 %v345_v23, %v178_v55  ;;  %v3404_v27 = vadd.f32 %v530_v24, %v332_v4  ;;  %v3406_v28 = vadd.f32 %v520_v9, %v342_v17 }
 0x188   :  { %v3408_v29 = vadd.f32 %v514_v63, %v344_v21 }
 0x189   :  { %v3410_v30 = vadd.f32 %v516_v3, %v346_v26 }
 0x18b   :  { %v349_v31 = vpop.f32.mrb[12].mxu0  ;;  %v534_v32 = vpop.f32.mrb[12].mxu1 }
 0x18c   :  { %v350_v39 = vadd.f32 %v349_v31, %v174_v52  ;;  %v571_v43 = vadd.f32 %v534_v32, %v324_v58  ;;  %v351_v44 = vpop.f32.mrb[13].mxu0  ;;  %v536_v48 = vpop.f32.mrb[13].mxu1 }
 0x18d   :  { %v352_v59 = vadd.f32 %v351_v44, %v178_v55  ;;  %v572_v62 = vadd.f32 %v536_v48, %v326_v61  ;;  %v353_v1 = vpop.f32.mrb[14].mxu0  ;;  %v538_v2 = vpop.f32.mrb[14].mxu1 }
 0x18e   :  { %v354_v4 = vadd.f32 %v353_v1, %v174_v52  ;;  %v563_v5 = vadd.f32 %v538_v2, %v320_v34  ;;  %v355_v6 = vpop.f32.mrb[15].mxu0  ;;  %v540_v7 = vpop.f32.mrb[15].mxu1  ;;  %v3412_v63 = vadd.f32 %v508_v57, %v350_v39  ;;  %v137_v57 = vand.u32 127, %v136_v45 }
 0x18f   :  { %v356_v3 = vadd.f32 %v355_v6, %v178_v55  ;;  %v564_v8 = vadd.f32 %v540_v7, %v322_v56  ;;  %v3414_v9 = vadd.f32 %v510_v60, %v352_v59 }
 0x190   :  { %v3417_v50 = vadd.f32 %v3390_v51, %v354_v4  ;;  %v3422_v13 = vadd.s32 128, %v137_v57 }
 0x191   :  { %v3419_v58 = vadd.f32 %v506_v54, %v356_v3 }
 0x192   :  { %vm142_vm0 = vcmp.lt.s32.totalorder %v3422_v13, 192 }
 0x193   :  { %v711_v53 = vpop.f32.mrb[16].mxu0 }
 0x194   :  { %v712_v10 = vadd.f32 %v711_v53, %v563_v5  ;;  %v713_v61 = vpop.f32.mrb[17].mxu0 }
 0x195   :  { %v714_v11 = vadd.f32 %v713_v61, %v564_v8  ;;  %v715_v12 = vpop.f32.mrb[18].mxu0 }
 0x196   :  { %2775 = vtanh.f32 %v712_v10  ;;  %v716_v52 = vpop.f32.mrb[19].mxu0 }
 0x197   :  { %2777 = vtanh.f32 %v714_v11 }
 0x1a0   :  { %v2776_v55 = vpop.eup %2775 }
 0x1a1   :  { %v2778_v60 = vpop.eup %2777  ;;  %v720_v15 = vmul.f32 0.5, %v2776_v55 }
 0x1a2   :  { %v721_v16 = vmul.f32 0.5, %v2778_v60 }
 0x1a3   :  { %v722_v54 = vadd.f32 0.5, %v720_v15 }
 0x1a4   :  { %v723_v51 = vadd.f32 0.5, %v721_v16 }
 0x1a5   :  { %v726_v20 = vmul.f32 0.0, %v722_v54 }
 0x1a6   :  { %v725_v17 = vsel %vm142_vm0, %v2778_v60, %v723_v51 }
 0x1a7   :  { %v727_v19 = vmul.f32 %v725_v17, %v722_v54 }
 0x1a9   :  { %729 = vrot.lane.b32.xlu0 %v727_v19, %s3038_s7 }
 0x21b   :  { %v730_v21 = vpop.permute.xlu0 %729 }
 0x21c   :  { %v732_v23 = vadd.f32 %v730_v21, %v726_v20 }
 0x21e   :  { %2779 = vtanh.f32 %v732_v23 }
 0x228   :  { %v2780_v45 = vpop.eup %2779 }
 0x229   :  { %v3428_v24 = vmul.f32 %v2780_v45, %v725_v17 }
 0x22b   :  { %v743_v26 = vpack.c.bf16 %v3428_v24, %v3428_v24 }
 0x22d   :  { %747 = vrot.lane.b32.xlu0 %v743_v26, %s3038_s7 }
 0x29f   :  { %v748_v31 = vpop.permute.xlu0 %747 }
 0x2a0   :  { %2553 = vmatmul.mubr.msk.bf16.vlgmr.msra.gmra.mrb[16].mxu1 %vm673_vm1, %v748_v31 }
 0x2a1   :  { %899 = vmatpush1.bf16.msra.mxu1 %v3323_v35  ;;  %930 = vmatprep.mubr.bf16.mxu1 %v3044_v0 }
 0x2a2   :  { %900 = vmatprep.subr.bf16.mxu1 %v3325_v36 }
 0x2a5   :  { %901 = vmatpush1.bf16.msra.mxu1 %v3329_v37 }
 0x2a6   :  { %902 = vmatprep.subr.bf16.mxu1 %v3331_v38 }
 0x2a9   :  { %903 = vmatpush1.bf16.msra.mxu1 %v3341_v40 }
 0x2aa   :  { %904 = vmatprep.subr.bf16.mxu1 %v3345_v41 }
 0x2ad   :  { %905 = vmatpush1.bf16.msra.mxu1 %v3352_v42 }
 0x2ae   :  { %1044 = vmatprep.subr.bf16.mxu1 %v3318_v33 }
 0x373   :  { %v786_v32 = vpop.f32.mrb[16].mxu1 }
 0x374   :  { %v787_v34 = vadd.f32 %v786_v32, %v571_v43  ;;  %v788_v39 = vpop.f32.mrb[17].mxu1 }
 0x375   :  { %v789_v44 = vadd.f32 %v788_v39, %v572_v62  ;;  %v790_v48 = vpop.f32.mrb[18].mxu1 }
 0x376   :  { %2781 = vtanh.f32 %v787_v34  ;;  %v791_v56 = vpop.f32.mrb[19].mxu1 }
 0x377   :  { %2783 = vtanh.f32 %v789_v44 }
 0x380   :  { %v2782_v59 = vpop.eup %2781 }
 0x381   :  { %v2784_v1 = vpop.eup %2783  ;;  %v795_v2 = vmul.f32 0.5, %v2782_v59 }
 0x382   :  { %v796_v4 = vmul.f32 0.5, %v2784_v1 }
 0x383   :  { %v797_v6 = vadd.f32 0.5, %v795_v2 }
 0x384   :  { %v798_v5 = vadd.f32 0.5, %v796_v4 }
 0x385   :  { %v801_v8 = vmul.f32 %v797_v6, %v732_v23 }
 0x386   :  { %v800_v7 = vsel %vm142_vm0, %v2784_v1, %v798_v5 }
 0x387   :  { %v802_v3 = vmul.f32 %v800_v7, %v797_v6 }
 0x389   :  { %804 = vrot.lane.b32.xlu1 %v802_v3, %s3038_s7 }
 0x3fb   :  { %v805_v43 = vpop.permute.xlu1 %804 }
 0x3fc   :  { %v807_v53 = vadd.f32 %v805_v43, %v801_v8 }
 0x3fe   :  { %2785 = vtanh.f32 %v807_v53 }
 0x408   :  { %v2786_v62 = vpop.eup %2785 }
 0x409   :  { %v3446_v10 = vmul.f32 %v2786_v62, %v800_v7 }
 0x40b   :  { %v816_v61 = vpack.c.bf16 %v3446_v10, %v3446_v10 }
 0x40d   :  { %820 = vrot.lane.b32.xlu1 %v816_v61, %s3038_s7 }
 0x47f   :  { %v821_v11 = vpop.permute.xlu1 %820 }
 0x480   :  { %2554 = vmatmul.mubr.msk.bf16.vlgmr.msra.gmra.mrb[20].mxu0 %vm673_vm1, %v821_v11 }
 0x481   :  { %972 = vmatpush1.bf16.msra.mxu0 %v3323_v35  ;;  %1003 = vmatprep.mubr.bf16.mxu0 %v3044_v0 }
 0x482   :  { %973 = vmatprep.subr.bf16.mxu0 %v3325_v36 }
 0x485   :  { %974 = vmatpush1.bf16.msra.mxu0 %v3329_v37 }
 0x486   :  { %975 = vmatprep.subr.bf16.mxu0 %v3331_v38 }
 0x489   :  { %976 = vmatpush1.bf16.msra.mxu0 %v3341_v40 }
 0x48a   :  { %977 = vmatprep.subr.bf16.mxu0 %v3345_v41 }
 0x48d   :  { %978 = vmatpush1.bf16.msra.mxu0 %v3352_v42 }
 0x48e   :  { %1117 = vmatprep.subr.bf16.mxu0 %v3318_v33 }
 0x553   :  { %v859_v12 = vpop.f32.mrb[20].mxu0 }
 0x554   :  { %v860_v52 = vadd.f32 %v859_v12, %v3400_v22  ;;  %v861_v57 = vpop.f32.mrb[21].mxu0 }
 0x555   :  { %v862_v55 = vadd.f32 %v861_v57, %v3404_v27  ;;  %v863_v60 = vpop.f32.mrb[22].mxu0 }
 0x556   :  { %2787 = vtanh.f32 %v860_v52  ;;  %v864_v15 = vpop.f32.mrb[23].mxu0 }
 0x557   :  { %2789 = vtanh.f32 %v862_v55 }
 0x560   :  { %v2788_v16 = vpop.eup %2787 }
 0x561   :  { %v2790_v51 = vpop.eup %2789  ;;  %v868_v54 = vmul.f32 0.5, %v2788_v16 }
 0x562   :  { %v869_v17 = vmul.f32 0.5, %v2790_v51 }
 0x563   :  { %v870_v20 = vadd.f32 0.5, %v868_v54 }
 0x564   :  { %v871_v19 = vadd.f32 0.5, %v869_v17 }
 0x565   :  { %v874_v22 = vmul.f32 %v870_v20, %v807_v53 }
 0x566   :  { %v873_v21 = vsel %vm142_vm0, %v2790_v51, %v871_v19 }
 0x567   :  { %v875_v23 = vmul.f32 %v873_v21, %v870_v20 }
 0x569   :  { %877 = vrot.lane.b32.xlu0 %v875_v23, %s3038_s7 }
 0x5db   :  { %v878_v45 = vpop.permute.xlu0 %877 }
 0x5dc   :  { %v880_v26 = vadd.f32 %v878_v45, %v874_v22 }
 0x5de   :  { %2791 = vtanh.f32 %v880_v26 }
 0x5e8   :  { %v2792_v27 = vpop.eup %2791 }
 0x5e9   :  { %v3466_v31 = vmul.f32 %v2792_v27, %v873_v21 }
 0x5eb   :  { %v889_v32 = vpack.c.bf16 %v3466_v31, %v3466_v31 }
 0x5ed   :  { %893 = vrot.lane.b32.xlu1 %v889_v32, %s3038_s7 }
 0x65f   :  { %v894_v34 = vpop.permute.xlu1 %893 }
 0x660   :  { %2555 = vmatmul.mubr.msk.bf16.vlgmr.msra.gmra.mrb[20].mxu1 %vm673_vm1, %v894_v34 }
 0x661   :  { %1045 = vmatpush1.bf16.msra.mxu1 %v3323_v35  ;;  %1076 = vmatprep.mubr.bf16.mxu1 %v3044_v0 }
 0x662   :  { %1046 = vmatprep.subr.bf16.mxu1 %v3325_v36 }
 0x665   :  { %1047 = vmatpush1.bf16.msra.mxu1 %v3329_v37 }
 0x666   :  { %1048 = vmatprep.subr.bf16.mxu1 %v3331_v38 }
 0x669   :  { %1049 = vmatpush1.bf16.msra.mxu1 %v3341_v40 }
 0x66a   :  { %1050 = vmatprep.subr.bf16.mxu1 %v3345_v41 }
 0x66d   :  { %1051 = vmatpush1.bf16.msra.mxu1 %v3352_v42 }
 0x66e   :  { %1190 = vmatprep.subr.bf16.mxu1 %v3318_v33 }
 0x733   :  { %v932_v39 = vpop.f32.mrb[20].mxu1 }
 0x734   :  { %v933_v44 = vadd.f32 %v932_v39, %v3396_v14  ;;  %v934_v48 = vpop.f32.mrb[21].mxu1 }
 0x735   :  { %v935_v56 = vadd.f32 %v934_v48, %v3398_v18  ;;  %v936_v59 = vpop.f32.mrb[22].mxu1 }
 0x736   :  { %2793 = vtanh.f32 %v933_v44  ;;  %v937_v1 = vpop.f32.mrb[23].mxu1 }
 0x737   :  { %2795 = vtanh.f32 %v935_v56 }
 0x740   :  { %v2794_v2 = vpop.eup %2793 }
 0x741   :  { %v2796_v4 = vpop.eup %2795  ;;  %v941_v5 = vmul.f32 0.5, %v2794_v2 }
 0x742   :  { %v942_v6 = vmul.f32 0.5, %v2796_v4 }
 0x743   :  { %v943_v3 = vadd.f32 0.5, %v941_v5 }
 0x744   :  { %v944_v7 = vadd.f32 0.5, %v942_v6 }
 0x745   :  { %v947_v14 = vmul.f32 %v943_v3, %v880_v26 }
 0x746   :  { %v946_v8 = vsel %vm142_vm0, %v2796_v4, %v944_v7 }
 0x747   :  { %v948_v33 = vmul.f32 %v946_v8, %v943_v3 }
 0x749   :  { %950 = vrot.lane.b32.xlu0 %v948_v33, %s3038_s7 }
 0x7bb   :  { %v951_v43 = vpop.permute.xlu0 %950 }
 0x7bc   :  { %v953_v53 = vadd.f32 %v951_v43, %v947_v14 }
 0x7be   :  { %2797 = vtanh.f32 %v953_v53 }
 0x7c8   :  { %v2798_v18 = vpop.eup %2797 }
 0x7c9   :  { %v3486_v62 = vmul.f32 %v2798_v18, %v946_v8 }
 0x7cb   :  { %v962_v61 = vpack.c.bf16 %v3486_v62, %v3486_v62 }
 0x7cd   :  { %966 = vrot.lane.b32.xlu1 %v962_v61, %s3038_s7 }
 0x83f   :  { %v967_v11 = vpop.permute.xlu1 %966 }
 0x840   :  { %2556 = vmatmul.mubr.msk.bf16.vlgmr.msra.gmra.mrb[24].mxu0 %vm673_vm1, %v967_v11 }
 0x841   :  { %1118 = vmatpush1.bf16.msra.mxu0 %v3323_v35  ;;  %1149 = vmatprep.mubr.bf16.mxu0 %v3044_v0 }
 0x842   :  { %1119 = vmatprep.subr.bf16.mxu0 %v3325_v36 }
 0x845   :  { %1120 = vmatpush1.bf16.msra.mxu0 %v3329_v37 }
 0x846   :  { %1121 = vmatprep.subr.bf16.mxu0 %v3331_v38 }
 0x849   :  { %1122 = vmatpush1.bf16.msra.mxu0 %v3341_v40 }
 0x84a   :  { %1123 = vmatprep.subr.bf16.mxu0 %v3345_v41 }
 0x84d   :  { %1124 = vmatpush1.bf16.msra.mxu0 %v3352_v42 }
 0x913   :  { %v1005_v12 = vpop.f32.mrb[24].mxu0 }
 0x914   :  { %v1006_v52 = vadd.f32 %v1005_v12, %v3402_v25  ;;  %v1007_v57 = vpop.f32.mrb[25].mxu0 }
 0x915   :  { %v1008_v55 = vadd.f32 %v1007_v57, %v3406_v28  ;;  %v1009_v60 = vpop.f32.mrb[26].mxu0 }
 0x916   :  { %2799 = vtanh.f32 %v1006_v52  ;;  %v1010_v15 = vpop.f32.mrb[27].mxu0 }
 0x917   :  { %2801 = vtanh.f32 %v1008_v55 }
 0x920   :  { %v2800_v16 = vpop.eup %2799 }
 0x921   :  { %v2802_v51 = vpop.eup %2801  ;;  %v1014_v54 = vmul.f32 0.5, %v2800_v16 }
 0x922   :  { %v1015_v17 = vmul.f32 0.5, %v2802_v51 }
 0x923   :  { %v1016_v20 = vadd.f32 0.5, %v1014_v54 }
 0x924   :  { %v1017_v19 = vadd.f32 0.5, %v1015_v17 }
 0x925   :  { %v1020_v25 = vmul.f32 %v1016_v20, %v953_v53 }
 0x926   :  { %v1019_v21 = vsel %vm142_vm0, %v2802_v51, %v1017_v19 }
 0x927   :  { %v1021_v23 = vmul.f32 %v1019_v21, %v1016_v20 }
 0x929   :  { %1023 = vrot.lane.b32.xlu0 %v1021_v23, %s3038_s7 }
 0x99b   :  { %v1024_v22 = vpop.permute.xlu0 %1023 }
 0x99c   :  { %v1026_v45 = vadd.f32 %v1024_v22, %v1020_v25 }
 0x99e   :  { %2803 = vtanh.f32 %v1026_v45 }
 0x9a8   :  { %v2804_v28 = vpop.eup %2803 }
 0x9a9   :  { %v3505_v26 = vmul.f32 %v2804_v28, %v1019_v21 }
 0x9ab   :  { %v1035_v27 = vpack.c.bf16 %v3505_v26, %v3505_v26 }
 0x9ad   :  { %1039 = vrot.lane.b32.xlu1 %v1035_v27, %s3038_s7 }
 0xa1f   :  { %v1040_v32 = vpop.permute.xlu1 %1039 }
 0xa20   :  { %2557 = vmatmul.mubr.msk.bf16.vlgmr.msra.gmra.mrb[24].mxu1 %vm673_vm1, %v1040_v32 }
 0xa21   :  { %1191 = vmatpush1.bf16.msra.mxu1 %v3323_v35  ;;  %1222 = vmatprep.mubr.bf16.mxu1 %v3044_v0 }
 0xa22   :  { %1192 = vmatprep.subr.bf16.mxu1 %v3325_v36 }
 0xa25   :  { %1193 = vmatpush1.bf16.msra.mxu1 %v3329_v37 }
 0xa26   :  { %1194 = vmatprep.subr.bf16.mxu1 %v3331_v38 }
 0xa29   :  { %1195 = vmatpush1.bf16.msra.mxu1 %v3341_v40 }
 0xa2a   :  { %1196 = vmatprep.subr.bf16.mxu1 %v3345_v41 }
 0xa2d   :  { %1197 = vmatpush1.bf16.msra.mxu1 %v3352_v42 }
 0xaf3   :  { %v1078_v34 = vpop.f32.mrb[24].mxu1 }
 0xaf4   :  { %v1079_v39 = vadd.f32 %v1078_v34, %v3408_v29  ;;  %v1080_v44 = vpop.f32.mrb[25].mxu1 }
 0xaf5   :  { %v1081_v35 = vadd.f32 %v1080_v44, %v3410_v30  ;;  %v1082_v48 = vpop.f32.mrb[26].mxu1 }
 0xaf6   :  { %2805 = vtanh.f32 %v1079_v39  ;;  %v1083_v56 = vpop.f32.mrb[27].mxu1  ;;  %v2736_v48 = vld [vmem:[#allocation10] ss:$8 sps:$4 sm:$0xff]  }
 0xaf7   :  { %2807 = vtanh.f32 %v1081_v35  ;;  %v2738_v56 = vld [vmem:[#allocation10 + $0x4] ss:$8 sps:$4 sm:$0xff]  }
 0xaf8   :  { %1475 = vmatprep.subr.bf16.mxu1 %v2738_v56 }
 0xb00   :  { %v2806_v36 = vpop.eup %2805 }
 0xb01   :  { %v2808_v37 = vpop.eup %2807  ;;  %v1087_v59 = vmul.f32 0.5, %v2806_v36  ;;  %v2741_v36 = vld [vmem:[#allocation8 + $0x14] ss:$8 sps:$4 sm:$0xff]  }
 0xb02   :  { %v1088_v38 = vmul.f32 0.5, %v2808_v37 }
 0xb03   :  { %v1089_v40 = vadd.f32 0.5, %v1087_v59  ;;  %v2739_v59 = vld [vmem:[#allocation8 + $0x10] ss:$8 sps:$4 sm:$0xff]  }
 0xb04   :  { %v1090_v1 = vadd.f32 0.5, %v1088_v38  ;;  %v2742_v38 = vld [vmem:[#allocation10 + $0x10] ss:$8 sps:$4 sm:$0xff]  }
 0xb05   :  { %v1093_v29 = vmul.f32 %v1089_v40, %v1026_v45 }
 0xb06   :  { %v1092_v41 = vsel %vm142_vm0, %v2808_v37, %v1090_v1  ;;  %v2744_v37 = vld [vmem:[#allocation10 + $0x14] ss:$8 sps:$4 sm:$0xff]  }
 0xb07   :  { %v1094_v42 = vmul.f32 %v1092_v41, %v1089_v40 }
 0xb09   :  { %1096 = vrot.lane.b32.xlu0 %v1094_v42, %s3038_s7  ;;  %v2747_v42 = vld [vmem:[#allocation8 + $0x24] ss:$8 sps:$4 sm:$0xff]  }
 0xb7b   :  { %v1097_v2 = vpop.permute.xlu0 %1096 }
 0xb7c   :  { %v1099_v4 = vadd.f32 %v1097_v2, %v1093_v29  ;;  %v2748_v29 = vld [vmem:[#allocation10 + $0x20] ss:$8 sps:$4 sm:$0xff]  }
 0xb7e   :  { %2809 = vtanh.f32 %v1099_v4 }
 0xb88   :  { %v2810_v30 = vpop.eup %2809 }
 0xb89   :  { %v3524_v5 = vmul.f32 %v2810_v30, %v1092_v41  ;;  %v2753_v30 = vld [vmem:[#allocation8 + $0x34] ss:$8 sps:$4 sm:$0xff]  }
 0xb8b   :  { %v1108_v6 = vpack.c.bf16 %v3524_v5, %v3524_v5 }
 0xb8d   :  { %1112 = vrot.lane.b32.xlu1 %v1108_v6, %s3038_s7  ;;  %v2756_v6 = vld [vmem:[#allocation10 + $0x34] ss:$8 sps:$4 sm:$0xff]  }
 0xbff   :  { %v1113_v7 = vpop.permute.xlu1 %1112 }
 0xc00   :  { %2558 = vmatmul.mubr.msk.bf16.vlgmr.msra.gmra.mrb[28].mxu0 %vm673_vm1, %v1113_v7  ;;  %v2751_v7 = vld [vmem:[#allocation8 + $0x30] ss:$8 sps:$4 sm:$0xff]  }
 0xc01   :  { %1370 = vmatprep.mubr.bf16.mxu0 %v3044_v0 }
 0xcd3   :  { %v1151_v3 = vpop.f32.mrb[28].mxu0 }
 0xcd4   :  { %v1152_v8 = vadd.f32 %v1151_v3, %v3412_v63  ;;  %v1153_v33 = vpop.f32.mrb[29].mxu0  ;;  %v2754_v3 = vld [vmem:[#allocation10 + $0x30] ss:$8 sps:$4 sm:$0xff]  }
 0xcd5   :  { %v1154_v14 = vadd.f32 %v1153_v33, %v3414_v9  ;;  %v1155_v43 = vpop.f32.mrb[30].mxu0  ;;  %v3561_v33 = vld [vmem:[#allocation11 + $0x4] ss:$8 sps:$4 sm:$0xff]  }
 0xcd6   :  { %2811 = vtanh.f32 %v1152_v8  ;;  %v1156_v53 = vpop.f32.mrb[31].mxu0 }
 0xcd7   :  { %2813 = vtanh.f32 %v1154_v14 }
 0xce0   :  { %v2812_v18 = vpop.eup %2811 }
 0xce1   :  { %v2814_v61 = vpop.eup %2813  ;;  %v1160_v11 = vmul.f32 0.5, %v2812_v18 }
 0xce2   :  { %v1161_v12 = vmul.f32 0.5, %v2814_v61 }
 0xce3   :  { %v1162_v57 = vadd.f32 0.5, %v1160_v11 }
 0xce4   :  { %v1163_v52 = vadd.f32 0.5, %v1161_v12  ;;  %v3576_v12 = vld [vmem:[#allocation11] ss:$8 sps:$4 sm:$0xff]  }
 0xce5   :  { %v1166_v63 = vmul.f32 %v1162_v57, %v1099_v4  ;;  %v2750_v4 = vld [vmem:[#allocation10 + $0x24] ss:$8 sps:$4 sm:$0xff]  }
 0xce6   :  { %v1165_v55 = vsel %vm142_vm0, %v2814_v61, %v1163_v52  ;;  %v3580_v52 = vld [vmem:[#allocation11 + $0x14] ss:$8 sps:$4 sm:$0xff]  }
 0xce7   :  { %v1167_v60 = vmul.f32 %v1165_v55, %v1162_v57  ;;  %v3586_v57 = vld [vmem:[#allocation11 + $0x10] ss:$8 sps:$4 sm:$0xff]  }
 0xce9   :  { %1169 = vrot.lane.b32.xlu0 %v1167_v60, %s3038_s7 }
 0xd5b   :  { %v1170_v15 = vpop.permute.xlu0 %1169 }
 0xd5c   :  { %v1172_v16 = vadd.f32 %v1170_v15, %v1166_v63 }
 0xd5e   :  { %2815 = vtanh.f32 %v1172_v16 }
 0xd68   :  { %v2816_v9 = vpop.eup %2815 }
 0xd69   :  { %v1174_v51 = vmul.f32 %v2816_v9, %v1165_v55  ;;  %v3590_v55 = vld [vmem:[#allocation11 + $0x24] ss:$8 sps:$4 sm:$0xff]   ;;  %v3598_v9 = vld [vmem:[#allocation11 + $0x34] ss:$8 sps:$4 sm:$0xff]  }
 0xd6b   :  { %v1181_v54 = vpack.c.bf16 %v1174_v51, %v1174_v51 }
 0xd6d   :  { %1185 = vrot.lane.b32.xlu1 %v1181_v54, %s3038_s7 }
 0xd71   :  { %736 = vrot.lane.b32.xlu1 %v3428_v24, %s3038_s7 }
 0xd75   :  { %1176 = vrot.lane.b32.xlu1 %v1174_v51, %s3038_s7  ;;  %v3606_v51 = vld [vmem:[#allocation11 + $0x30] ss:$8 sps:$4 sm:$0xff]  }
 0xd79   :  { %884 = vrot.lane.b32.xlu1 %v3466_v31, %s3038_s7 }
 0xd7d   :  { %1030 = vrot.lane.b32.xlu1 %v3505_v26, %s3038_s7 }
 0xddf   :  { %v1186_v17 = vpop.permute.xlu1 %1185 }
 0xde0   :  { %2559 = vmatmul.mubr.msk.bf16.vlgmr.msra.gmra.mrb[28].mxu1 %vm673_vm1, %v1186_v17 }
 0xde1   :  { %1507 = vmatprep.mubr.bf16.mxu1 %v3044_v0  ;;  %1476 = vmatpush1.bf16.msra.mxu1 %v2736_v48 }
 0xde2   :  { %1477 = vmatprep.subr.bf16.mxu1 %v2744_v37 }
 0xde3   :  { %v737_v19 = vpop.permute.xlu1 %736 }
 0xde4   :  { %740 = vst.msk [vmem:[#allocation4] sm:$0xff] %vm739_vm2, %v737_v19 }
 0xde5   :  { %742 = vst.msk [vmem:[#allocation4 + $0x38] sm:$0xff] %vm741_vm3, %v737_v19  ;;  %1478 = vmatpush1.bf16.msra.mxu1 %v2742_v38 }
 0xde6   :  { %1479 = vmatprep.subr.bf16.mxu1 %v2750_v4 }
 0xde7   :  { %v1177_v24 = vpop.permute.xlu1 %1176 }
 0xde9   :  { %1480 = vmatpush1.bf16.msra.mxu1 %v2748_v29 }
 0xdea   :  { %1481 = vmatprep.subr.bf16.mxu1 %v2756_v6 }
 0xdeb   :  { %v885_v20 = vpop.permute.xlu1 %884 }
 0xdec   :  { %887 = vst.msk [vmem:[#allocation4 + $0x10] sm:$0xff] %vm739_vm2, %v885_v20 }
 0xded   :  { %888 = vst.msk [vmem:[#allocation4 + $0x28] sm:$0xff] %vm741_vm3, %v885_v20  ;;  %1482 = vmatpush1.bf16.msra.mxu1 %v2754_v3 }
 0xdee   :  { %1751 = vmatprep.subr.bf16.mxu1 %v3561_v33 }
 0xdef   :  { %v1031_v18 = vpop.permute.xlu1 %1030 }
 0xeb3   :  { %v1224_v31 = vpop.f32.mrb[28].mxu1 }
 0xeb4   :  { %v1225_v21 = vadd.f32 %v1224_v31, %v3417_v50  ;;  %v1226_v23 = vpop.f32.mrb[29].mxu1  ;;  %v2733_v50 = vld [vmem:[#allocation8] ss:$8 sps:$4 sm:$0xff]  }
 0xeb5   :  { %v1227_v25 = vadd.f32 %v1226_v23, %v3419_v58  ;;  %v1228_v22 = vpop.f32.mrb[30].mxu1  ;;  %v2735_v58 = vld [vmem:[#allocation8 + $0x4] ss:$8 sps:$4 sm:$0xff]  }
 0xeb6   :  { %2817 = vtanh.f32 %v1225_v21  ;;  %v1229_v45 = vpop.f32.mrb[31].mxu1  ;;  %1338 = vmatprep.subr.bf16.mxu0 %v2735_v58  ;;  %v1274_v21 = vld [vmem:[%s3867_s8] sm:$0x3] }
 0xeb7   :  { %2819 = vtanh.f32 %v1227_v25  ;;  %1339 = vmatpush1.bf16.msra.mxu0 %v2733_v50  ;;  %v1279_v22 = vrot.slane %v1274_v21, %v173_v47 }
 0xeb8   :  { %1340 = vmatprep.subr.bf16.mxu0 %v2741_v36 }
 0xebb   :  { %1341 = vmatpush1.bf16.msra.mxu0 %v2739_v59 }
 0xebc   :  { %1342 = vmatprep.subr.bf16.mxu0 %v2747_v42 }
 0xec0   :  { %v2818_v28 = vpop.eup %2817 }
 0xec1   :  { %v2820_v26 = vpop.eup %2819  ;;  %v1233_v27 = vmul.f32 0.5, %v2818_v28 }
 0xec2   :  { %v1234_v32 = vmul.f32 0.5, %v2820_v26 }
 0xec3   :  { %v1235_v39 = vadd.f32 0.5, %v1233_v27 }
 0xec4   :  { %v1236_v34 = vadd.f32 0.5, %v1234_v32 }
 0xec5   :  { %v1239_v1 = vmul.f32 %v1235_v39, %v1172_v16  ;;  %v3596_v16 = vld [vmem:[#allocation11 + $0x20] ss:$8 sps:$4 sm:$0xff]  }
 0xec6   :  { %v1238_v44 = vsel %vm142_vm0, %v2820_v26, %v1236_v34  ;;  %v1283_v26 = vrot.slane %v1274_v21, %v177_v49 }
 0xec7   :  { %v1240_v35 = vmul.f32 %v1238_v44, %v1235_v39 }
 0xec9   :  { %1242 = vrot.lane.b32.xlu0 %v1240_v35, %s3038_s7 }
 0xecd   :  { %811 = vrot.lane.b32.xlu0 %v3446_v10, %s3038_s7  ;;  %v2745_v10 = vld [vmem:[#allocation8 + $0x20] ss:$8 sps:$4 sm:$0xff]  }
 0xece   :  { %1343 = vmatpush1.bf16.msra.mxu0 %v2745_v10 }
 0xecf   :  { %1344 = vmatprep.subr.bf16.mxu0 %v2753_v30 }
 0xed2   :  { %1345 = vmatpush1.bf16.msra.mxu0 %v2751_v7 }
 0xed3   :  { %1678 = vmatprep.subr.bf16.mxu0 %v3561_v33 }
 0xf3b   :  { %v1243_v40 = vpop.permute.xlu0 %1242 }
 0xf3c   :  { %v1245_v41 = vadd.f32 %v1243_v40, %v1239_v1 }
 0xf3e   :  { %2821 = vtanh.f32 %v1245_v41 }
 0xf3f   :  { %v812_v2 = vpop.permute.xlu0 %811 }
 0xf40   :  { %814 = vst.msk [vmem:[#allocation4 + $0x8] sm:$0xff] %vm739_vm2, %v812_v2 }
 0xf41   :  { %815 = vst.msk [vmem:[#allocation4 + $0x30] sm:$0xff] %vm741_vm3, %v812_v2  ;;  %1180 = vst.msk [vmem:[#allocation4 + $0x8] sm:$0xff] %vm741_vm3, %v1177_v24 }
 0xf42   :  { %1179 = vst.msk [vmem:[#allocation4 + $0x30] sm:$0xff] %vm739_vm2, %v1177_v24 }
 0xf48   :  { %v2822_v8 = vpop.eup %2821  ;;  %v1255_v11 = vld [vmem:[#allocation4 + $0x8] sm:$0xff] }
 0xf49   :  { %v1247_v14 = vmul.f32 %v2822_v8, %v1238_v44  ;;  %v1260_v20 = vld [vmem:[#allocation4 + $0x30] sm:$0xff] }
 0xf4b   :  { %1249 = vrot.lane.b32.xlu0 %v1247_v14, %s3038_s7 }
 0xf4f   :  { %957 = vrot.lane.b32.xlu0 %v3486_v62, %s3038_s7 }
 0xf53   :  { %1103 = vrot.lane.b32.xlu0 %v3524_v5, %s3038_s7 }
 0xfbd   :  { %v1250_v43 = vpop.permute.xlu0 %1249 }
 0xfbe   :  { %1252 = vst.msk [vmem:[#allocation4 + $0x38] sm:$0xff] %vm739_vm2, %v1250_v43 }
 0xfbf   :  { %1253 = vst.msk [vmem:[#allocation4] sm:$0xff] %vm741_vm3, %v1250_v43 }
 0xfc1   :  { %v958_v53 = vpop.permute.xlu0 %957 }
 0xfc2   :  { %960 = vst.msk [vmem:[#allocation4 + $0x18] sm:$0xff] %vm739_vm2, %v958_v53 }
 0xfc3   :  { %961 = vst.msk [vmem:[#allocation4 + $0x20] sm:$0xff] %vm741_vm3, %v958_v53  ;;  %1034 = vst.msk [vmem:[#allocation4 + $0x18] sm:$0xff] %vm741_vm3, %v1031_v18 }
 0xfc4   :  { %1033 = vst.msk [vmem:[#allocation4 + $0x20] sm:$0xff] %vm739_vm2, %v1031_v18 }
 0xfc5   :  { %v1104_v61 = vpop.permute.xlu0 %1103  ;;  %v1261_v24 = vld [vmem:[#allocation4 + $0x38] sm:$0xff] }
 0xfc6   :  { %v1254_v62 = vld [vmem:[#allocation4] sm:$0xff]  ;;  %1106 = vst.msk [vmem:[#allocation4 + $0x28] sm:$0xff] %vm739_vm2, %v1104_v61  ;;  %v1265_v31 = vpack.c.bf16 %v1261_v24, %v1260_v20 }
 0xfc7   :  { %1107 = vst.msk [vmem:[#allocation4 + $0x10] sm:$0xff] %vm741_vm3, %v1104_v61  ;;  %v1262_v5 = vpack.c.bf16 %v1255_v11, %v1254_v62 }
 0xfc9   :  { %2568 = vmatmul.mubr.msk.bf16.vlgmr.msra.gmra.mrb[32].mxu0 %vm673_vm1, %v1262_v5  ;;  %2580 = vmatmul.mubr.msk.bf16.vlgmr.msra.gmra.mrb[32].mxu1 %vm673_vm1, %v1262_v5 }
 0xfca   :  { %1679 = vmatpush1.bf16.msra.mxu0 %v3576_v12  ;;  %1380 = vmatprep.mubr.bf16.mxu0 %v3044_v0  ;;  %v1257_v63 = vld [vmem:[#allocation4 + $0x18] sm:$0xff] }
 0xfcb   :  { %1517 = vmatprep.mubr.bf16.mxu1 %v3044_v0  ;;  %1680 = vmatprep.subr.bf16.mxu0 %v3580_v52  ;;  %v1258_v17 = vld [vmem:[#allocation4 + $0x20] sm:$0xff] }
 0xfcc   :  { %1752 = vmatpush1.bf16.msra.mxu1 %v3576_v12 }
 0xfcd   :  { %1753 = vmatprep.subr.bf16.mxu1 %v3580_v52  ;;  %v1259_v54 = vld [vmem:[#allocation4 + $0x28] sm:$0xff] }
 0xfce   :  { %v1256_v60 = vld [vmem:[#allocation4 + $0x10] sm:$0xff]  ;;  %1681 = vmatpush1.bf16.msra.mxu0 %v3586_v57  ;;  %v1264_v19 = vpack.c.bf16 %v1259_v54, %v1258_v17 }
 0xfcf   :  { %v1263_v15 = vpack.c.bf16 %v1257_v63, %v1256_v60  ;;  %1682 = vmatprep.subr.bf16.mxu0 %v3590_v55 }
 0xfd0   :  { %1754 = vmatpush1.bf16.msra.mxu1 %v3586_v57 }
 0xfd1   :  { %2569 = vmatmul.mubr.msk.bf16.gmra.mrb[36].mxu0 %vm673_vm1, %v1263_v15  ;;  %2581 = vmatmul.mubr.msk.bf16.gmra.mrb[36].mxu1 %vm673_vm1, %v1263_v15 }
 0xfd2   :  { %1390 = vmatprep.mubr.bf16.mxu0 %v3044_v0  ;;  %1527 = vmatprep.mubr.bf16.mxu1 %v3044_v0 }
 0xfd3   :  { %1683 = vmatpush1.bf16.msra.mxu0 %v3596_v16  ;;  %1755 = vmatprep.subr.bf16.mxu1 %v3590_v55 }
 0xfd4   :  { %1684 = vmatprep.subr.bf16.mxu0 %v3598_v9  ;;  %1756 = vmatpush1.bf16.msra.mxu1 %v3596_v16 }
 0xfd5   :  { %1757 = vmatprep.subr.bf16.mxu1 %v3598_v9 }
 0xfd7   :  { %1685 = vmatpush1.bf16.msra.mxu0 %v3606_v51 }
 0xfd8   :  { %1758 = vmatpush1.bf16.msra.mxu1 %v3606_v51  ;;  %1824 = vmatprep.subr.bf16.mxu0 %v3561_v33 }
 0xfd9   :  { %2570 = vmatmul.mubr.msk.bf16.gmra.mrb[40].mxu0 %vm673_vm1, %v1264_v19  ;;  %2582 = vmatmul.mubr.msk.bf16.gmra.mrb[40].mxu1 %vm673_vm1, %v1264_v19 }
 0xfda   :  { %1400 = vmatprep.mubr.bf16.mxu0 %v3044_v0  ;;  %1537 = vmatprep.mubr.bf16.mxu1 %v3044_v0 }
 0xfdb   :  { %1897 = vmatprep.subr.bf16.mxu1 %v3561_v33 }
 0xfe1   :  { %2571 = vmatmul.mubr.msk.bf16.gmra.mrb[44].mxu0 %vm673_vm1, %v1265_v31  ;;  %2583 = vmatmul.mubr.msk.bf16.gmra.mrb[44].mxu1 %vm673_vm1, %v1265_v31 }
 0xfe2   :  { %1710 = vmatprep.mubr.bf16.mxu0 %v3044_v0  ;;  %1783 = vmatprep.mubr.bf16.mxu1 %v3044_v0 }
 0xfe9   :  { %1711 = vmatmul.mubr.bf16.vlgmr.msra.gmra.mrb[48].mxu0 %v3044_v0 }
 0xfea   :  { %1825 = vmatpush1.bf16.msra.mxu0 %v3576_v12  ;;  %1856 = vmatprep.mubr.bf16.mxu0 %v3044_v0 }
 0xfeb   :  { %1826 = vmatprep.subr.bf16.mxu0 %v3580_v52 }
 0xfee   :  { %1827 = vmatpush1.bf16.msra.mxu0 %v3586_v57 }
 0xfef   :  { %1828 = vmatprep.subr.bf16.mxu0 %v3590_v55 }
 0xff2   :  { %1829 = vmatpush1.bf16.msra.mxu0 %v3596_v16 }
 0xff3   :  { %1830 = vmatprep.subr.bf16.mxu0 %v3598_v9 }
 0xff6   :  { %1831 = vmatpush1.bf16.msra.mxu0 %v3606_v51 }
 0xff7   :  { %1970 = vmatprep.subr.bf16.mxu0 %v3561_v33 }
0x109c   :  { %v1372_v23 = vpop.f32.mrb[32].mxu0  ;;  %v3637_v25 = vpop.f32.mrb[32].mxu1 }
0x109d   :  { %v1374_v45 = vpop.f32.mrb[33].mxu0  ;;  %v1511_v28 = vpop.f32.mrb[33].mxu1  ;;  %v1373_v15 = vadd.f32 %v1372_v23, %v1279_v22 }
0x109e   :  { %v1376_v27 = vpop.f32.mrb[34].mxu0  ;;  %v1513_v32 = vpop.f32.mrb[34].mxu1  ;;  %v1375_v20 = vadd.f32 %v1374_v45, %v1283_v26 }
0x109f   :  { %v1377_v34 = vadd.f32 %v1376_v27, %v1279_v22  ;;  %v1378_v39 = vpop.f32.mrb[35].mxu0  ;;  %v1515_v44 = vpop.f32.mrb[35].mxu1 }
0x10a0   :  { %v1379_v35 = vadd.f32 %v1378_v39, %v1283_v26 }
0x10a4   :  { %v1382_v50 = vpop.f32.mrb[36].mxu0  ;;  %v1519_v58 = vpop.f32.mrb[36].mxu1 }
0x10a5   :  { %v1383_v48 = vadd.f32 %v1382_v50, %v1279_v22  ;;  %v1384_v56 = vpop.f32.mrb[37].mxu0  ;;  %v1521_v36 = vpop.f32.mrb[37].mxu1 }
0x10a6   :  { %v1385_v37 = vadd.f32 %v1384_v56, %v1283_v26  ;;  %v1386_v59 = vpop.f32.mrb[38].mxu0  ;;  %v1523_v38 = vpop.f32.mrb[38].mxu1 }
0x10a7   :  { %v1387_v47 = vadd.f32 %v1386_v59, %v1279_v22  ;;  %v1388_v1 = vpop.f32.mrb[39].mxu0  ;;  %v1525_v40 = vpop.f32.mrb[39].mxu1 }
0x10a8   :  { %v1389_v41 = vadd.f32 %v1388_v1, %v1283_v26 }
0x10ac   :  { %v1392_v46 = vpop.f32.mrb[40].mxu0  ;;  %v1529_v49 = vpop.f32.mrb[40].mxu1 }
0x10ad   :  { %v1393_v10 = vadd.f32 %v1392_v46, %v1279_v22  ;;  %v3643_v42 = vadd.f32 %v1529_v49, %v1387_v47  ;;  %v1394_v29 = vpop.f32.mrb[41].mxu0  ;;  %v1531_v2 = vpop.f32.mrb[41].mxu1 }
0x10ae   :  { %v1395_v4 = vadd.f32 %v1394_v29, %v1283_v26  ;;  %v3645_v30 = vadd.f32 %v1531_v2, %v1389_v41  ;;  %v1396_v6 = vpop.f32.mrb[42].mxu0  ;;  %v1533_v7 = vpop.f32.mrb[42].mxu1 }
0x10af   :  { %v1397_v3 = vadd.f32 %v1396_v6, %v1279_v22  ;;  %v3647_v8 = vadd.f32 %v1533_v7, %v1383_v48  ;;  %v1398_v14 = vpop.f32.mrb[43].mxu0  ;;  %v1535_v43 = vpop.f32.mrb[43].mxu1  ;;  %v3649_v53 = vadd.f32 %v1523_v38, %v1393_v10 }
0x10b0   :  { %v1399_v18 = vadd.f32 %v1398_v14, %v1283_v26  ;;  %v3651_v61 = vadd.f32 %v1535_v43, %v1385_v37  ;;  %v3653_v62 = vadd.f32 %v1525_v40, %v1395_v4 }
0x10b1   :  { %v3655_v11 = vadd.f32 %v1519_v58, %v1397_v3 }
0x10b2   :  { %v3657_v5 = vadd.f32 %v1521_v36, %v1399_v18 }
0x10b4   :  { %v1402_v60 = vpop.f32.mrb[44].mxu0  ;;  %v1539_v63 = vpop.f32.mrb[44].mxu1 }
0x10b5   :  { %v1403_v54 = vadd.f32 %v1402_v60, %v1279_v22  ;;  %v1576_v17 = vadd.f32 %v1539_v63, %v1377_v34  ;;  %v1404_v19 = vpop.f32.mrb[45].mxu0  ;;  %v1541_v24 = vpop.f32.mrb[45].mxu1 }
0x10b6   :  { %v1405_v31 = vadd.f32 %v1404_v19, %v1283_v26  ;;  %v1577_v21 = vadd.f32 %v1541_v24, %v1379_v35  ;;  %v1406_v27 = vpop.f32.mrb[46].mxu0  ;;  %v1543_v39 = vpop.f32.mrb[46].mxu1 }
0x10b7   :  { %v1407_v50 = vadd.f32 %v1406_v27, %v1279_v22  ;;  %v1568_v48 = vadd.f32 %v1543_v39, %v1373_v15  ;;  %v1408_v56 = vpop.f32.mrb[47].mxu0  ;;  %v1545_v37 = vpop.f32.mrb[47].mxu1  ;;  %v3659_v58 = vadd.f32 %v1513_v32, %v1403_v54 }
0x10b8   :  { %v1409_v36 = vadd.f32 %v1408_v56, %v1283_v26  ;;  %v1569_v59 = vadd.f32 %v1545_v37, %v1375_v20  ;;  %v3661_v38 = vadd.f32 %v1515_v44, %v1405_v31 }
0x10b9   :  { %v3664_v23 = vadd.f32 %v3637_v25, %v1407_v50 }
0x10ba   :  { %v3666_v34 = vadd.f32 %v1511_v28, %v1409_v36 }
0x10bc   :  { %v1712_v45 = vpop.f32.mrb[48].mxu0 }
0x10bd   :  { %v1713_v47 = vadd.f32 %v1712_v45, %v1568_v48  ;;  %v1714_v35 = vpop.f32.mrb[49].mxu0 }
0x10be   :  { %v1715_v1 = vadd.f32 %v1714_v35, %v1569_v59  ;;  %v1716_v40 = vpop.f32.mrb[50].mxu0 }
0x10bf   :  { %2823 = vtanh.f32 %v1713_v47  ;;  %v1717_v22 = vpop.f32.mrb[51].mxu0 }
0x10c0   :  { %2825 = vtanh.f32 %v1715_v1 }
0x10c9   :  { %v2824_v41 = vpop.eup %2823 }
0x10ca   :  { %v2826_v32 = vpop.eup %2825  ;;  %v1721_v46 = vmul.f32 0.5, %v2824_v41 }
0x10cb   :  { %v1722_v26 = vmul.f32 0.5, %v2826_v32 }
0x10cc   :  { %v1723_v44 = vadd.f32 0.5, %v1721_v46 }
0x10cd   :  { %v1724_v49 = vadd.f32 0.5, %v1722_v26 }
0x10ce   :  { %v1727_v28 = vmul.f32 0.0, %v1723_v44 }
0x10cf   :  { %v1726_v25 = vsel %vm142_vm0, %v2826_v32, %v1724_v49 }
0x10d0   :  { %v1728_v10 = vmul.f32 %v1726_v25, %v1723_v44 }
0x10d2   :  { %1730 = vrot.lane.b32.xlu1 %v1728_v10, %s3038_s7 }
0x1144   :  { %v1731_v29 = vpop.permute.xlu1 %1730 }
0x1145   :  { %v1733_v2 = vadd.f32 %v1731_v29, %v1727_v28 }
0x1147   :  { %2827 = vtanh.f32 %v1733_v2 }
0x1151   :  { %v2828_v4 = vpop.eup %2827 }
0x1152   :  { %v3671_v6 = vmul.f32 %v2828_v4, %v1726_v25 }
0x1154   :  { %v1742_v7 = vpack.c.bf16 %v3671_v6, %v3671_v6 }
0x1156   :  { %1746 = vrot.lane.b32.xlu0 %v1742_v7, %s3038_s7 }
0x11c8   :  { %v1747_v3 = vpop.permute.xlu0 %1746 }
0x11c9   :  { %2592 = vmatmul.mubr.msk.bf16.vlgmr.msra.gmra.mrb[48].mxu1 %vm673_vm1, %v1747_v3 }
0x11ca   :  { %1898 = vmatpush1.bf16.msra.mxu1 %v3576_v12  ;;  %1929 = vmatprep.mubr.bf16.mxu1 %v3044_v0 }
0x11cb   :  { %1899 = vmatprep.subr.bf16.mxu1 %v3580_v52 }
0x11ce   :  { %1900 = vmatpush1.bf16.msra.mxu1 %v3586_v57 }
0x11cf   :  { %1901 = vmatprep.subr.bf16.mxu1 %v3590_v55 }
0x11d2   :  { %1902 = vmatpush1.bf16.msra.mxu1 %v3596_v16 }
0x11d3   :  { %1903 = vmatprep.subr.bf16.mxu1 %v3598_v9 }
0x11d6   :  { %1904 = vmatpush1.bf16.msra.mxu1 %v3606_v51 }
0x11d7   :  { %2043 = vmatprep.subr.bf16.mxu1 %v3561_v33 }
0x129c   :  { %v1785_v14 = vpop.f32.mrb[48].mxu1 }
0x129d   :  { %v1786_v43 = vadd.f32 %v1785_v14, %v1576_v17  ;;  %v1787_v18 = vpop.f32.mrb[49].mxu1 }
0x129e   :  { %v1788_v60 = vadd.f32 %v1787_v18, %v1577_v21  ;;  %v1789_v63 = vpop.f32.mrb[50].mxu1 }
0x129f   :  { %2829 = vtanh.f32 %v1786_v43  ;;  %v1790_v15 = vpop.f32.mrb[51].mxu1 }
0x12a0   :  { %2831 = vtanh.f32 %v1788_v60 }
0x12a9   :  { %v2830_v54 = vpop.eup %2829 }
0x12aa   :  { %v2832_v19 = vpop.eup %2831  ;;  %v1794_v24 = vmul.f32 0.5, %v2830_v54 }
0x12ab   :  { %v1795_v20 = vmul.f32 0.5, %v2832_v19 }
0x12ac   :  { %v1796_v27 = vadd.f32 0.5, %v1794_v24 }
0x12ad   :  { %v1797_v31 = vadd.f32 0.5, %v1795_v20 }
0x12ae   :  { %v1800_v48 = vmul.f32 %v1796_v27, %v1733_v2 }
0x12af   :  { %v1799_v39 = vsel %vm142_vm0, %v2832_v19, %v1797_v31 }
0x12b0   :  { %v1801_v50 = vmul.f32 %v1799_v39, %v1796_v27 }
0x12b2   :  { %1803 = vrot.lane.b32.xlu1 %v1801_v50, %s3038_s7 }
0x1324   :  { %v1804_v17 = vpop.permute.xlu1 %1803 }
0x1325   :  { %v1806_v56 = vadd.f32 %v1804_v17, %v1800_v48 }
0x1327   :  { %2833 = vtanh.f32 %v1806_v56 }
0x1331   :  { %v2834_v21 = vpop.eup %2833 }
0x1332   :  { %v3689_v37 = vmul.f32 %v2834_v21, %v1799_v39 }
0x1334   :  { %v1815_v36 = vpack.c.bf16 %v3689_v37, %v3689_v37 }
0x1336   :  { %1819 = vrot.lane.b32.xlu0 %v1815_v36, %s3038_s7 }
0x13a8   :  { %v1820_v59 = vpop.permute.xlu0 %1819 }
0x13a9   :  { %2593 = vmatmul.mubr.msk.bf16.vlgmr.msra.gmra.mrb[52].mxu0 %vm673_vm1, %v1820_v59 }
0x13aa   :  { %1971 = vmatpush1.bf16.msra.mxu0 %v3576_v12  ;;  %2002 = vmatprep.mubr.bf16.mxu0 %v3044_v0 }
0x13ab   :  { %1972 = vmatprep.subr.bf16.mxu0 %v3580_v52 }
0x13ae   :  { %1973 = vmatpush1.bf16.msra.mxu0 %v3586_v57 }
0x13af   :  { %1974 = vmatprep.subr.bf16.mxu0 %v3590_v55 }
0x13b2   :  { %1975 = vmatpush1.bf16.msra.mxu0 %v3596_v16 }
0x13b3   :  { %1976 = vmatprep.subr.bf16.mxu0 %v3598_v9 }
0x13b6   :  { %1977 = vmatpush1.bf16.msra.mxu0 %v3606_v51 }
0x13b7   :  { %2116 = vmatprep.subr.bf16.mxu0 %v3561_v33 }
0x147c   :  { %v1858_v45 = vpop.f32.mrb[52].mxu0 }
0x147d   :  { %v1859_v47 = vadd.f32 %v1858_v45, %v3647_v8  ;;  %v1860_v35 = vpop.f32.mrb[53].mxu0 }
0x147e   :  { %v1861_v1 = vadd.f32 %v1860_v35, %v3651_v61  ;;  %v1862_v40 = vpop.f32.mrb[54].mxu0 }
0x147f   :  { %2835 = vtanh.f32 %v1859_v47  ;;  %v1863_v22 = vpop.f32.mrb[55].mxu0 }
0x1480   :  { %2837 = vtanh.f32 %v1861_v1 }
0x1489   :  { %v2836_v41 = vpop.eup %2835 }
0x148a   :  { %v2838_v32 = vpop.eup %2837  ;;  %v1867_v46 = vmul.f32 0.5, %v2836_v41 }
0x148b   :  { %v1868_v26 = vmul.f32 0.5, %v2838_v32 }
0x148c   :  { %v1869_v44 = vadd.f32 0.5, %v1867_v46 }
0x148d   :  { %v1870_v49 = vadd.f32 0.5, %v1868_v26 }
0x148e   :  { %v1873_v8 = vmul.f32 %v1869_v44, %v1806_v56 }
0x148f   :  { %v1872_v25 = vsel %vm142_vm0, %v2838_v32, %v1870_v49 }
0x1490   :  { %v1874_v10 = vmul.f32 %v1872_v25, %v1869_v44 }
0x1492   :  { %1876 = vrot.lane.b32.xlu1 %v1874_v10, %s3038_s7 }
0x1504   :  { %v1877_v28 = vpop.permute.xlu1 %1876 }
0x1505   :  { %v1879_v29 = vadd.f32 %v1877_v28, %v1873_v8 }
0x1507   :  { %2839 = vtanh.f32 %v1879_v29 }
0x1511   :  { %v2840_v61 = vpop.eup %2839 }
0x1512   :  { %v3709_v2 = vmul.f32 %v2840_v61, %v1872_v25 }
0x1514   :  { %v1888_v4 = vpack.c.bf16 %v3709_v2, %v3709_v2 }
0x1516   :  { %1892 = vrot.lane.b32.xlu0 %v1888_v4, %s3038_s7 }
0x1588   :  { %v1893_v7 = vpop.permute.xlu0 %1892 }
0x1589   :  { %2594 = vmatmul.mubr.msk.bf16.vlgmr.msra.gmra.mrb[52].mxu1 %vm673_vm1, %v1893_v7 }
0x158a   :  { %2044 = vmatpush1.bf16.msra.mxu1 %v3576_v12  ;;  %2075 = vmatprep.mubr.bf16.mxu1 %v3044_v0 }
0x158b   :  { %2045 = vmatprep.subr.bf16.mxu1 %v3580_v52 }
0x158e   :  { %2046 = vmatpush1.bf16.msra.mxu1 %v3586_v57 }
0x158f   :  { %2047 = vmatprep.subr.bf16.mxu1 %v3590_v55 }
0x1592   :  { %2048 = vmatpush1.bf16.msra.mxu1 %v3596_v16 }
0x1593   :  { %2049 = vmatprep.subr.bf16.mxu1 %v3598_v9 }
0x1596   :  { %2050 = vmatpush1.bf16.msra.mxu1 %v3606_v51 }
0x1597   :  { %2189 = vmatprep.subr.bf16.mxu1 %v3561_v33 }
0x165c   :  { %v1931_v3 = vpop.f32.mrb[52].mxu1 }
0x165d   :  { %v1932_v14 = vadd.f32 %v1931_v3, %v3643_v42  ;;  %v1933_v43 = vpop.f32.mrb[53].mxu1 }
0x165e   :  { %v1934_v18 = vadd.f32 %v1933_v43, %v3645_v30  ;;  %v1935_v60 = vpop.f32.mrb[54].mxu1 }
0x165f   :  { %2841 = vtanh.f32 %v1932_v14  ;;  %v1936_v63 = vpop.f32.mrb[55].mxu1 }
0x1660   :  { %2843 = vtanh.f32 %v1934_v18 }
0x1669   :  { %v2842_v15 = vpop.eup %2841 }
0x166a   :  { %v2844_v54 = vpop.eup %2843  ;;  %v1940_v19 = vmul.f32 0.5, %v2842_v15 }
0x166b   :  { %v1941_v24 = vmul.f32 0.5, %v2844_v54 }
0x166c   :  { %v1942_v31 = vadd.f32 0.5, %v1940_v19 }
0x166d   :  { %v1943_v20 = vadd.f32 0.5, %v1941_v24 }
0x166e   :  { %v1946_v42 = vmul.f32 %v1942_v31, %v1879_v29 }
0x166f   :  { %v1945_v27 = vsel %vm142_vm0, %v2844_v54, %v1943_v20 }
0x1670   :  { %v1947_v33 = vmul.f32 %v1945_v27, %v1942_v31 }
0x1672   :  { %1949 = vrot.lane.b32.xlu1 %v1947_v33, %s3038_s7 }
0x16e4   :  { %v1950_v39 = vpop.permute.xlu1 %1949 }
0x16e5   :  { %v1952_v50 = vadd.f32 %v1950_v39, %v1946_v42 }
0x16e7   :  { %2845 = vtanh.f32 %v1952_v50 }
0x16f1   :  { %v2846_v30 = vpop.eup %2845 }
0x16f2   :  { %v3729_v48 = vmul.f32 %v2846_v30, %v1945_v27 }
0x16f4   :  { %v1961_v17 = vpack.c.bf16 %v3729_v48, %v3729_v48 }
0x16f6   :  { %1965 = vrot.lane.b32.xlu0 %v1961_v17, %s3038_s7 }
0x1768   :  { %v1966_v56 = vpop.permute.xlu0 %1965 }
0x1769   :  { %2595 = vmatmul.mubr.msk.bf16.vlgmr.msra.gmra.mrb[56].mxu0 %vm673_vm1, %v1966_v56 }
0x176a   :  { %2117 = vmatpush1.bf16.msra.mxu0 %v3576_v12  ;;  %2148 = vmatprep.mubr.bf16.mxu0 %v3044_v0 }
0x176b   :  { %2118 = vmatprep.subr.bf16.mxu0 %v3580_v52 }
0x176e   :  { %2119 = vmatpush1.bf16.msra.mxu0 %v3586_v57 }
0x176f   :  { %2120 = vmatprep.subr.bf16.mxu0 %v3590_v55 }
0x1772   :  { %2121 = vmatpush1.bf16.msra.mxu0 %v3596_v16 }
0x1773   :  { %2122 = vmatprep.subr.bf16.mxu0 %v3598_v9 }
0x1776   :  { %2123 = vmatpush1.bf16.msra.mxu0 %v3606_v51 }
0x183c   :  { %v2004_v21 = vpop.f32.mrb[56].mxu0 }
0x183d   :  { %v2005_v36 = vadd.f32 %v2004_v21, %v3649_v53  ;;  %v2006_v59 = vpop.f32.mrb[57].mxu0 }
0x183e   :  { %v2007_v45 = vadd.f32 %v2006_v59, %v3653_v62  ;;  %v2008_v47 = vpop.f32.mrb[58].mxu0 }
0x183f   :  { %2847 = vtanh.f32 %v2005_v36  ;;  %v2009_v35 = vpop.f32.mrb[59].mxu0 }
0x1840   :  { %2849 = vtanh.f32 %v2007_v45 }
0x1849   :  { %v2848_v1 = vpop.eup %2847 }
0x184a   :  { %v2850_v40 = vpop.eup %2849  ;;  %v2013_v22 = vmul.f32 0.5, %v2848_v1 }
0x184b   :  { %v2014_v41 = vmul.f32 0.5, %v2850_v40 }
0x184c   :  { %v2015_v46 = vadd.f32 0.5, %v2013_v22 }
0x184d   :  { %v2016_v32 = vadd.f32 0.5, %v2014_v41 }
0x184e   :  { %v2019_v53 = vmul.f32 %v2015_v46, %v1952_v50 }
0x184f   :  { %v2018_v26 = vsel %vm142_vm0, %v2850_v40, %v2016_v32 }
0x1850   :  { %v2020_v49 = vmul.f32 %v2018_v26, %v2015_v46 }
0x1852   :  { %2022 = vrot.lane.b32.xlu1 %v2020_v49, %s3038_s7 }
0x18c4   :  { %v2023_v44 = vpop.permute.xlu1 %2022 }
0x18c5   :  { %v2025_v25 = vadd.f32 %v2023_v44, %v2019_v53 }
0x18c7   :  { %2851 = vtanh.f32 %v2025_v25 }
0x18d1   :  { %v2852_v62 = vpop.eup %2851 }
0x18d2   :  { %v3748_v10 = vmul.f32 %v2852_v62, %v2018_v26 }
0x18d4   :  { %v2034_v8 = vpack.c.bf16 %v3748_v10, %v3748_v10 }
0x18d6   :  { %2038 = vrot.lane.b32.xlu0 %v2034_v8, %s3038_s7 }
0x1948   :  { %v2039_v28 = vpop.permute.xlu0 %2038 }
0x1949   :  { %2596 = vmatmul.mubr.msk.bf16.vlgmr.msra.gmra.mrb[56].mxu1 %vm673_vm1, %v2039_v28 }
0x194a   :  { %2190 = vmatpush1.bf16.msra.mxu1 %v3576_v12  ;;  %2221 = vmatprep.mubr.bf16.mxu1 %v3044_v0 }
0x194b   :  { %2191 = vmatprep.subr.bf16.mxu1 %v3580_v52 }
0x194e   :  { %2192 = vmatpush1.bf16.msra.mxu1 %v3586_v57 }
0x194f   :  { %2193 = vmatprep.subr.bf16.mxu1 %v3590_v55 }
0x1952   :  { %2194 = vmatpush1.bf16.msra.mxu1 %v3596_v16 }
0x1953   :  { %2195 = vmatprep.subr.bf16.mxu1 %v3598_v9 }
0x1956   :  { %2196 = vmatpush1.bf16.msra.mxu1 %v3606_v51 }
0x1a1c   :  { %v2077_v29 = vpop.f32.mrb[56].mxu1 }
0x1a1d   :  { %v2078_v61 = vadd.f32 %v2077_v29, %v3655_v11  ;;  %v2079_v4 = vpop.f32.mrb[57].mxu1 }
0x1a1e   :  { %v2080_v12 = vadd.f32 %v2079_v4, %v3657_v5  ;;  %v2081_v7 = vpop.f32.mrb[58].mxu1 }
0x1a1f   :  { %2853 = vtanh.f32 %v2078_v61  ;;  %v2082_v0 = vpop.f32.mrb[59].mxu1  ;;  %v2770_v61 = vld [vmem:[%s3868_s9 + $0x8] sm:$0xff]  }
0x1a20   :  { %2855 = vtanh.f32 %v2080_v12 }
0x1a29   :  { %v2854_v52 = vpop.eup %2853 }
0x1a2a   :  { %v2856_v57 = vpop.eup %2855  ;;  %v2086_v3 = vmul.f32 0.5, %v2854_v52 }
0x1a2b   :  { %v2087_v55 = vmul.f32 0.5, %v2856_v57 }
0x1a2c   :  { %v2088_v16 = vadd.f32 0.5, %v2086_v3 }
0x1a2d   :  { %v2089_v14 = vadd.f32 0.5, %v2087_v55 }
0x1a2e   :  { %v2092_v11 = vmul.f32 %v2088_v16, %v2025_v25 }
0x1a2f   :  { %v2091_v9 = vsel %vm142_vm0, %v2856_v57, %v2089_v14 }
0x1a30   :  { %v2093_v51 = vmul.f32 %v2091_v9, %v2088_v16 }
0x1a32   :  { %2095 = vrot.lane.b32.xlu1 %v2093_v51, %s3038_s7 }
0x1aa4   :  { %v2096_v43 = vpop.permute.xlu1 %2095 }
0x1aa5   :  { %v2098_v18 = vadd.f32 %v2096_v43, %v2092_v11 }
0x1aa7   :  { %2857 = vtanh.f32 %v2098_v18 }
0x1ab1   :  { %v2858_v5 = vpop.eup %2857 }
0x1ab2   :  { %v3767_v60 = vmul.f32 %v2858_v5, %v2091_v9 }
0x1ab4   :  { %v2107_v63 = vpack.c.bf16 %v3767_v60, %v3767_v60 }
0x1ab6   :  { %2111 = vrot.lane.b32.xlu0 %v2107_v63, %s3038_s7 }
0x1b28   :  { %v2112_v15 = vpop.permute.xlu0 %2111 }
0x1b29   :  { %2597 = vmatmul.mubr.msk.bf16.vlgmr.msra.gmra.mrb[60].mxu0 %vm673_vm1, %v2112_v15 }
0x1bfc   :  { %v2150_v54 = vpop.f32.mrb[60].mxu0 }
0x1bfd   :  { %v2151_v19 = vadd.f32 %v2150_v54, %v3659_v58  ;;  %v2152_v24 = vpop.f32.mrb[61].mxu0  ;;  %v2773_v54 = vld [vmem:[#allocation14] sm:$0xff]  }
0x1bfe   :  { %v2153_v20 = vadd.f32 %v2152_v24, %v3661_v38  ;;  %v2154_v31 = vpop.f32.mrb[62].mxu0  ;;  %2645 = vmatprep.subr.bf16.mxu1 %v2773_v54  ;;  %v2599_v24 = vld [vmem:[#allocation13] ss:$0 sm:$0xff] }
0x1bff   :  { %2859 = vtanh.f32 %v2151_v19  ;;  %v2155_v27 = vpop.f32.mrb[63].mxu0  ;;  %v2774_v19 = vld [vmem:[#allocation14 + $0x8] sm:$0xff]  }
0x1c00   :  { %2861 = vtanh.f32 %v2153_v20 }
0x1c09   :  { %v2860_v33 = vpop.eup %2859 }
0x1c0a   :  { %v2862_v42 = vpop.eup %2861  ;;  %v2159_v39 = vmul.f32 0.5, %v2860_v33 }
0x1c0b   :  { %v2160_v50 = vmul.f32 0.5, %v2862_v42 }
0x1c0c   :  { %v2161_v17 = vadd.f32 0.5, %v2159_v39 }
0x1c0d   :  { %v2162_v30 = vadd.f32 0.5, %v2160_v50 }
0x1c0e   :  { %v2165_v58 = vmul.f32 %v2161_v17, %v2098_v18 }
0x1c0f   :  { %v2164_v56 = vsel %vm142_vm0, %v2862_v42, %v2162_v30 }
0x1c10   :  { %v2166_v21 = vmul.f32 %v2164_v56, %v2161_v17 }
0x1c12   :  { %2168 = vrot.lane.b32.xlu1 %v2166_v21, %s3038_s7 }
0x1c84   :  { %v2169_v36 = vpop.permute.xlu1 %2168 }
0x1c85   :  { %v2171_v59 = vadd.f32 %v2169_v36, %v2165_v58 }
0x1c87   :  { %2863 = vtanh.f32 %v2171_v59 }
0x1c91   :  { %v2864_v38 = vpop.eup %2863 }
0x1c92   :  { %v2173_v45 = vmul.f32 %v2864_v38, %v2164_v56 }
0x1c94   :  { %v2180_v47 = vpack.c.bf16 %v2173_v45, %v2173_v45 }
0x1c96   :  { %2184 = vrot.lane.b32.xlu0 %v2180_v47, %s3038_s7 }
0x1c9a   :  { %1737 = vrot.lane.b32.xlu0 %v3671_v6, %s3038_s7 }
0x1c9e   :  { %1883 = vrot.lane.b32.xlu0 %v3709_v2, %s3038_s7 }
0x1ca2   :  { %2175 = vrot.lane.b32.xlu0 %v2173_v45, %s3038_s7 }
0x1ca6   :  { %2029 = vrot.lane.b32.xlu0 %v3748_v10, %s3038_s7 }
0x1d08   :  { %v2185_v35 = vpop.permute.xlu0 %2184 }
0x1d09   :  { %2598 = vmatmul.mubr.msk.bf16.vlgmr.msra.gmra.mrb[60].mxu1 %vm673_vm1, %v2185_v35 }
0x1d0a   :  { %2646 = vmatpush3.bf16.msra.mxu1 %v2773_v54 }
0x1d0b   :  { %2647 = vmatprep.subr.bf16.mxu1 %v2774_v19 }
0x1d0c   :  { %v1738_v1 = vpop.permute.xlu0 %1737 }
0x1d0d   :  { %1740 = vst.msk [vmem:[#allocation5] sm:$0xff] %vm739_vm2, %v1738_v1 }
0x1d0e   :  { %1741 = vst.msk [vmem:[#allocation5 + $0x38] sm:$0xff] %vm741_vm3, %v1738_v1  ;;  %2648 = vmatpush3.bf16.msra.mxu1 %v2774_v19 }
0x1d10   :  { %v1884_v40 = vpop.permute.xlu0 %1883 }
0x1d11   :  { %1886 = vst.msk [vmem:[#allocation5 + $0x10] sm:$0xff] %vm739_vm2, %v1884_v40 }
0x1d12   :  { %1887 = vst.msk [vmem:[#allocation5 + $0x28] sm:$0xff] %vm741_vm3, %v1884_v40 }
0x1d14   :  { %v2176_v13 = vpop.permute.xlu0 %2175 }
0x1d18   :  { %v2030_v7 = vpop.permute.xlu0 %2029 }
0x1ddc   :  { %v2223_v6 = vpop.f32.mrb[60].mxu1 }
0x1ddd   :  { %v2224_v2 = vadd.f32 %v2223_v6, %v3664_v23  ;;  %v2225_v22 = vpop.f32.mrb[61].mxu1  ;;  %v2769_v23 = vld [vmem:[%s3868_s9] sm:$0xff]  }
0x1dde   :  { %v2226_v41 = vadd.f32 %v2225_v22, %v3666_v34  ;;  %v2227_v32 = vpop.f32.mrb[62].mxu1  ;;  %2629 = vmatprep.subr.bf16.mxu0 %v2769_v23 }
0x1ddf   :  { %2865 = vtanh.f32 %v2224_v2  ;;  %v2228_v46 = vpop.f32.mrb[63].mxu1  ;;  %2630 = vmatpush3.bf16.msra.mxu0 %v2769_v23 }
0x1de0   :  { %2867 = vtanh.f32 %v2226_v41  ;;  %2631 = vmatprep.subr.bf16.mxu0 %v2770_v61 }
0x1de3   :  { %2632 = vmatpush3.bf16.msra.mxu0 %v2770_v61 }
0x1de9   :  { %v2866_v26 = vpop.eup %2865 }
0x1dea   :  { %v2868_v49 = vpop.eup %2867  ;;  %v2232_v53 = vmul.f32 0.5, %v2866_v26 }
0x1deb   :  { %v2233_v44 = vmul.f32 0.5, %v2868_v49 }
0x1dec   :  { %v2234_v62 = vadd.f32 0.5, %v2232_v53  ;;  %v2608_v53 = vld [vmem:[#allocation16] ss:$0 sm:$0xff] }
0x1ded   :  { %v2235_v25 = vadd.f32 0.5, %v2233_v44 }
0x1dee   :  { %v2238_v34 = vmul.f32 %v2234_v62, %v2171_v59 }
0x1def   :  { %v2237_v10 = vsel %vm142_vm0, %v2868_v49, %v2235_v25 }
0x1df0   :  { %v2239_v8 = vmul.f32 %v2237_v10, %v2234_v62 }
0x1df2   :  { %2241 = vrot.lane.b32.xlu1 %v2239_v8, %s3038_s7 }
0x1df6   :  { %1810 = vrot.lane.b32.xlu1 %v3689_v37, %s3038_s7  ;;  %v2771_v37 = vld [vmem:[%s3868_s9 + $0x10] sm:$0xff]  }
0x1df7   :  { %2633 = vmatprep.subr.bf16.mxu0 %v2771_v37 }
0x1df8   :  { %2634 = vmatpush3.bf16.msra.mxu0 %v2771_v37 }
0x1dfa   :  { %1956 = vrot.lane.b32.xlu1 %v3729_v48, %s3038_s7  ;;  %v2772_v48 = vld [vmem:[%s3868_s9 + $0x18] sm:$0xff]  }
0x1dfb   :  { %2635 = vmatprep.subr.bf16.mxu0 %v2772_v48 }
0x1dfc   :  { %2636 = vmatpush3.bf16.msra.mxu0 %v2772_v48 }
0x1e64   :  { %v2242_v28 = vpop.permute.xlu1 %2241 }
0x1e65   :  { %v2244_v29 = vadd.f32 %v2242_v28, %v2238_v34 }
0x1e67   :  { %2869 = vtanh.f32 %v2244_v29 }
0x1e68   :  { %v1811_v4 = vpop.permute.xlu1 %1810 }
0x1e69   :  { %1813 = vst.msk [vmem:[#allocation5 + $0x8] sm:$0xff] %vm739_vm2, %v1811_v4 }
0x1e6a   :  { %1814 = vst.msk [vmem:[#allocation5 + $0x30] sm:$0xff] %vm741_vm3, %v1811_v4  ;;  %2179 = vst.msk [vmem:[#allocation5 + $0x8] sm:$0xff] %vm741_vm3, %v2176_v13 }
0x1e6b   :  { %2178 = vst.msk [vmem:[#allocation5 + $0x30] sm:$0xff] %vm739_vm2, %v2176_v13 }
0x1e6c   :  { %v1957_v12 = vpop.permute.xlu1 %1956 }
0x1e6d   :  { %1959 = vst.msk [vmem:[#allocation5 + $0x18] sm:$0xff] %vm739_vm2, %v1957_v12 }
0x1e6e   :  { %1960 = vst.msk [vmem:[#allocation5 + $0x20] sm:$0xff] %vm741_vm3, %v1957_v12  ;;  %2033 = vst.msk [vmem:[#allocation5 + $0x18] sm:$0xff] %vm741_vm3, %v2030_v7 }
0x1e6f   :  { %2032 = vst.msk [vmem:[#allocation5 + $0x20] sm:$0xff] %vm739_vm2, %v2030_v7 }
0x1e71   :  { %v2870_v0 = vpop.eup %2869  ;;  %v2254_v14 = vld [vmem:[#allocation5 + $0x8] sm:$0xff] }
0x1e72   :  { %v2246_v52 = vmul.f32 %v2870_v0, %v2237_v10  ;;  %v2259_v63 = vld [vmem:[#allocation5 + $0x30] sm:$0xff] }
0x1e74   :  { %2248 = vrot.lane.b32.xlu1 %v2246_v52, %s3038_s7 }
0x1e75   :  { %v2256_v9 = vld [vmem:[#allocation5 + $0x18] sm:$0xff] }
0x1e76   :  { %v2257_v11 = vld [vmem:[#allocation5 + $0x20] sm:$0xff] }
0x1e78   :  { %2102 = vrot.lane.b32.xlu1 %v3767_v60, %s3038_s7 }
0x1ee6   :  { %v2249_v57 = vpop.permute.xlu1 %2248 }
0x1ee7   :  { %2251 = vst.msk [vmem:[#allocation5 + $0x38] sm:$0xff] %vm739_vm2, %v2249_v57 }
0x1ee8   :  { %2252 = vst.msk [vmem:[#allocation5] sm:$0xff] %vm741_vm3, %v2249_v57 }
0x1eea   :  { %v2103_v3 = vpop.permute.xlu1 %2102 }
0x1eeb   :  { %2105 = vst.msk [vmem:[#allocation5 + $0x28] sm:$0xff] %vm739_vm2, %v2103_v3 }
0x1eec   :  { %2106 = vst.msk [vmem:[#allocation5 + $0x10] sm:$0xff] %vm741_vm3, %v2103_v3 }
0x1eee   :  { %v2260_v60 = vld [vmem:[#allocation5 + $0x38] sm:$0xff] }
0x1eef   :  { %v2253_v55 = vld [vmem:[#allocation5] sm:$0xff]  ;;  %v2264_v15 = vpack.c.bf16 %v2260_v60, %v2259_v63 }
0x1ef0   :  { %v2261_v16 = vpack.c.bf16 %v2254_v14, %v2253_v55 }
0x1ef2   :  { %2637 = vmatprep.mubr.msk.bf16.mxu0 %vm673_vm1, %v2261_v16  ;;  %v2258_v43 = vld [vmem:[#allocation5 + $0x28] sm:$0xff] }
0x1ef3   :  { %v2255_v51 = vld [vmem:[#allocation5 + $0x10] sm:$0xff]  ;;  %v2263_v5 = vpack.c.bf16 %v2258_v43, %v2257_v11 }
0x1ef4   :  { %v2262_v18 = vpack.c.bf16 %v2256_v9, %v2255_v51 }
0x1ef6   :  { %2638 = vmatmul.mubr.msk.bf16.vlgmr.msra.gmra.mrb[64].mxu0 %vm673_vm1, %v2262_v18 }
0x1ef7   :  { %2641 = vmatprep.mubr.msk.bf16.mxu0 %vm673_vm1, %v2263_v5 }
0x1efe   :  { %2642 = vmatmul.mubr.msk.bf16.gmra.mrb[68].mxu0 %vm673_vm1, %v2264_v15 }
0x1fc9   :  { %v2639_v20 = vpop.f32.mrb[64].mxu0 }
0x1fca   :  { %v2359_v31 = vadd.f32 %v2639_v20, %v2599_v24  ;;  %v2350_v27 = vpop.f32.mrb[65].mxu0 }
0x1fcb   :  { %v2351_v33 = vadd.f32 %v2599_v24, %v2350_v27  ;;  %v2640_v42 = vpop.f32.mrb[66].mxu0 }
0x1fcc   :  { %v2362_v39 = vadd.f32 %v2640_v42, %v2599_v24  ;;  %v2353_v50 = vpop.f32.mrb[67].mxu0  ;;  %v2383_v17 = vmax.f32 %v2359_v31, 0.0 }
0x1fcd   :  { %v2354_v30 = vadd.f32 %v2599_v24, %v2353_v50  ;;  %v2381_v21 = vmax.f32 %v2351_v33, 0.0 }
0x1fce   :  { %v2384_v56 = vmax.f32 %v2362_v39, 0.0 }
0x1fcf   :  { %v2382_v58 = vmax.f32 %v2354_v30, 0.0 }
0x1fd0   :  { %v2390_v36 = vpack.c.bf16 %v2384_v56, %v2383_v17 }
0x1fd1   :  { %v2389_v59 = vpack.c.bf16 %v2382_v58, %v2381_v21  ;;  %v2643_v38 = vpop.f32.mrb[68].mxu0 }
0x1fd2   :  { %v2375_v45 = vadd.f32 %v2643_v38, %v2599_v24  ;;  %v2366_v47 = vpop.f32.mrb[69].mxu0 }
0x1fd3   :  { %v2367_v35 = vadd.f32 %v2599_v24, %v2366_v47  ;;  %v2644_v1 = vpop.f32.mrb[70].mxu0  ;;  %2649 = vmatprep.mubr.msk.bf16.mxu1 %vm739_vm2, %v2389_v59 }
0x1fd4   :  { %v2378_v40 = vadd.f32 %v2644_v1, %v2599_v24  ;;  %v2369_v6 = vpop.f32.mrb[71].mxu0  ;;  %2650 = vmatmul.mubr.msk.bf16.vlgmr.msra.gmra.mrb[64].mxu1 %vm739_vm2, %v2390_v36  ;;  %v2387_v22 = vmax.f32 %v2375_v45, 0.0 }
0x1fd5   :  { %v2370_v2 = vadd.f32 %v2599_v24, %v2369_v6  ;;  %v2385_v32 = vmax.f32 %v2367_v35, 0.0 }
0x1fd6   :  { %v2388_v41 = vmax.f32 %v2378_v40, 0.0 }
0x1fd7   :  { %v2386_v46 = vmax.f32 %v2370_v2, 0.0 }
0x1fd8   :  { %v2392_v26 = vpack.c.bf16 %v2388_v41, %v2387_v22 }
0x1fd9   :  { %v2391_v49 = vpack.c.bf16 %v2386_v46, %v2385_v32 }
0x1fdb   :  { %2653 = vmatprep.mubr.msk.bf16.mxu1 %vm739_vm2, %v2391_v49 }
0x1fdc   :  { %2654 = vmatmul.mubr.msk.bf16.gmra.mrb[68].mxu1 %vm739_vm2, %v2392_v26 }
0x20a7   :  { %v2651_v44 = vpop.f32.mrb[64].mxu1 }
0x20a8   :  { %v2471_v25 = vadd.f32 %v2651_v44, %v2608_v53  ;;  %v2462_v62 = vpop.f32.mrb[65].mxu1 }
0x20a9   :  { %v2463_v10 = vadd.f32 %v2608_v53, %v2462_v62  ;;  %v2652_v8 = vpop.f32.mrb[66].mxu1 }
0x20aa   :  { %2495 = vst [vmem:[%s3872_s13 + $0x10] sm:$0xff] %v2471_v25  ;;  %v2474_v23 = vadd.f32 %v2652_v8, %v2608_v53  ;;  %v2465_v34 = vpop.f32.mrb[67].mxu1 }
0x20ab   :  { %2493 = vst [vmem:[%s3872_s13] sm:$0xff] %v2463_v10  ;;  %v2466_v28 = vadd.f32 %v2608_v53, %v2465_v34 }
0x20ac   :  { %2496 = vst [vmem:[%s3872_s13 + $0x18] sm:$0xff] %v2474_v23 }
0x20ad   :  { %2494 = vst [vmem:[%s3872_s13 + $0x8] sm:$0xff] %v2466_v28 }
0x20af   :  { %v2655_v29 = vpop.f32.mrb[68].mxu1 }
0x20b0   :  { %v2487_v13 = vadd.f32 %v2655_v29, %v2608_v53  ;;  %v2478_v61 = vpop.f32.mrb[69].mxu1 }
0x20b1   :  { %v2479_v4 = vadd.f32 %v2608_v53, %v2478_v61  ;;  %v2656_v37 = vpop.f32.mrb[70].mxu1 }
0x20b2   :  { %2499 = vst [vmem:[%s3872_s13 + $0x30] sm:$0xff] %v2487_v13  ;;  %v2490_v48 = vadd.f32 %v2656_v37, %v2608_v53  ;;  %v2481_v12 = vpop.f32.mrb[71].mxu1 }
0x20b3   :  { %2497 = vst [vmem:[%s3872_s13 + $0x20] sm:$0xff] %v2479_v4  ;;  %v2482_v7 = vadd.f32 %v2608_v53, %v2481_v12 }
0x20b4   :  { %2500 = vst [vmem:[%s3872_s13 + $0x38] sm:$0xff] %v2490_v48 }
0x20b5   :  { %2498 = vst [vmem:[%s3872_s13 + $0x28] sm:$0xff] %v2482_v7 }
0x20b6   :  { %2505 = vsyncpa [#allocation7], 1 }
0x20b7   :  { %2506 = vsyncpa [#allocation9], 1 }
0x20b8   :  { %2507 = vsyncpa [#allocation12], 1 }
0x20b9   :  { %2508 = vsyncpa [#allocation15], 1 }

</bundles_post_ra>
